<compile_context>
chip_gen: v7x
topology: tpu7x:2x2x1
jax: 0.10.0
libtpu: 0.0.40
codegen_flags: <defaults>
</compile_context>

<pallas_src>
import jax
import jax.numpy as jnp
from jax.experimental import pallas as pl
from jax.experimental.pallas import tpu as pltpu

INPUT_SIZE = 24
HIDDEN = 64
LAYER_NUM = 3
CLASS_NUM = 5          # synthetic (original value comes from the CSV)
OUT_PAD = 128          # lane-dense padding for the logits output
BATCH = 8
SEQ = 14               # 336 features / 24 per step = 14 timesteps in the original script


def rnn_kernel(x_ref, h0_ref, w0_ref, wih_ref, whh_ref, b_ref,
               w_out_ref, b_out_ref, out_ref, h_out_ref, xproj_ref):
    """Whole 3-layer RNN + output Linear in one invocation (no grid).

    x_ref:     (T*B, F)      time-major, flattened over (t, b)
    h0_ref:    (L, B, H)
    w0_ref:    (F, H)        W_ih0^T   (layer-0 input projection, hoisted to the prologue)
    wih_ref:   (L-1, H, H)   W_ih_l^T for layers 1..L-1
    whh_ref:   (L, H, H)     W_hh_l^T for all layers
    b_ref:     (L, 1, H)     b_ih + b_hh per layer (layer 0's is folded into the prologue)
    w_out_ref: (H, OUT_PAD)  padded W_out^T
    b_out_ref: (1, OUT_PAD)  padded b_out
    out_ref:   (B, OUT_PAD)
    h_out_ref: (L, B, H)
    xproj_ref: (T*B, H)      VMEM scratch: staged layer-0 projection for all timesteps
    """
    L, B, H = h0_ref.shape
    T = x_ref.shape[0] // B

    # ---- Prologue: layer-0 input projection for ALL timesteps in one MXU call, staged to a
    #      VMEM scratch so it does not occupy vregs across the fully unrolled recurrence. ----
    xproj_ref[...] = (jnp.dot(x_ref[...], w0_ref[...],
                              preferred_element_type=jnp.float32)
                      + b_ref[0])                                    # (T*B, H)

    # Hoist only the small bias broadcasts (JAX does not CSE broadcast_in_dim).
    bias = [jnp.broadcast_to(b_ref[l], (B, H)) for l in range(1, L)]  # each (B, H)

    hs = [h0_ref[l] for l in range(L)]                                # running state, (B, H)

    # ---- Wavefront recurrence: step s updates layer l at time t = s - l for all valid l. ----
    # Dependencies of cell (l, t) are (l, t-1) and (l-1, t), both produced at step s-1, so the
    # per-step layer updates are mutually independent: their dots issue back-to-back and their
    # tanhs are fused into a single EUP call on the stacked pre-activations.
    for s in range(T + L - 1):
        active = [l for l in range(L) if 0 <= s - l < T]
        pre = []
        for l in active:
            t = s - l
            if l == 0:
                p = (xproj_ref[t * B:(t + 1) * B, :]                  # sublane-aligned slice
                     + jnp.dot(hs[0], whh_ref[0],
                               preferred_element_type=jnp.float32))
            else:
                p = (jnp.dot(hs[l - 1], wih_ref[l - 1],
                             preferred_element_type=jnp.float32)
                     + jnp.dot(hs[l], whh_ref[l],
                               preferred_element_type=jnp.float32)
                     + bias[l - 1])
            pre.append(p)
        if len(pre) == 1:
            new_states = [jnp.tanh(pre[0])]
        else:
            stacked = jnp.tanh(jnp.concatenate(pre, axis=0))          # one fused EUP tanh
            new_states = [stacked[i * B:(i + 1) * B, :] for i in range(len(pre))]
        for l, h_new in zip(active, new_states):
            hs[l] = h_new

    # ---- Epilogue: final Linear on r_out[:, -1, :] and h_state writeback. -------------------
    out_ref[...] = (jnp.dot(hs[L - 1], w_out_ref[...],
                            preferred_element_type=jnp.float32)
                    + b_out_ref[...])
    for l in range(L):
        h_out_ref[l] = hs[l]


@jax.jit
def rnn_forward(x, h0, w0, wih, whh, b_stack, w_out_pad, b_out_pad):
    """x: (B, T, INPUT_SIZE) batch-first f32.  Returns (out (B, C), h_state (L, B, H))."""
    B, T, F = x.shape
    # glue: transpose to time-major and flatten (t, b) so the in-kernel prologue sees one
    # (T*B, F) matmul and each timestep is a contiguous sublane-aligned row block.
    x_flat = jnp.transpose(x, (1, 0, 2)).reshape(T * B, F)

    out_pad, h_state = pl.pallas_call(
        rnn_kernel,
        out_shape=(jax.ShapeDtypeStruct((B, OUT_PAD), jnp.float32),
                   jax.ShapeDtypeStruct((LAYER_NUM, B, HIDDEN), jnp.float32)),
        scratch_shapes=[pltpu.VMEM((T * B, HIDDEN), jnp.float32)],
        # No grid: all operands (<150 KiB total) live as whole blocks in VMEM, one invocation,
        # one TensorCore (serial recurrence; splitting across cores would only add sync cost).
    )(x_flat, h0, w0, wih, whh, b_stack, w_out_pad, b_out_pad)

    return out_pad[:, :CLASS_NUM], h_state


def init_params(key):
    """Deterministic init mirroring PyTorch shapes: W_ih_l (H, in), W_hh_l (H, H), Linear (C, H)."""
    k = 1.0 / jnp.sqrt(HIDDEN)
    keys = jax.random.split(key, 4 * LAYER_NUM + 2)
    w_ih, w_hh, b_ih, b_hh = [], [], [], []
    for layer in range(LAYER_NUM):
        in_sz = INPUT_SIZE if layer == 0 else HIDDEN
        w_ih.append(jax.random.uniform(keys[4 * layer + 0], (HIDDEN, in_sz),
                                       jnp.float32, -k, k))
        w_hh.append(jax.random.uniform(keys[4 * layer + 1], (HIDDEN, HIDDEN),
                                       jnp.float32, -k, k))
        b_ih.append(jax.random.uniform(keys[4 * layer + 2], (HIDDEN,), jnp.float32, -k, k))
        b_hh.append(jax.random.uniform(keys[4 * layer + 3], (HIDDEN,), jnp.float32, -k, k))
    w_out = jax.random.uniform(keys[-2], (CLASS_NUM, HIDDEN), jnp.float32, -k, k)
    b_out = jax.random.uniform(keys[-1], (CLASS_NUM,), jnp.float32, -k, k)
    return w_ih, w_hh, b_ih, b_hh, w_out, b_out


def pack_params(w_ih, w_hh, b_ih, b_hh, w_out, b_out):
    """Transpose / stack / pad PyTorch-shaped params into the kernel's layout."""
    w0 = w_ih[0].T                                                       # (24, 64)
    wih = jnp.stack([w_ih[l].T for l in range(1, LAYER_NUM)])            # (L-1, 64, 64)
    whh = jnp.stack([w_hh[l].T for l in range(LAYER_NUM)])               # (L, 64, 64)
    b_stack = jnp.stack([(bi + bh)[None, :]
                         for bi, bh in zip(b_ih, b_hh)])                 # (L, 1, 64)
    w_out_pad = jnp.pad(w_out.T, ((0, 0), (0, OUT_PAD - CLASS_NUM)))         # (64, 128)
    b_out_pad = jnp.pad(b_out[None, :], ((0, 0), (0, OUT_PAD - CLASS_NUM)))  # (1, 128)
    return w0, wih, whh, b_stack, w_out_pad, b_out_pad


def rnn_reference(x, h0, w_ih, w_hh, b_ih, b_hh, w_out, b_out):
    """Pure-JAX reference matching torch.nn.RNN (tanh) + Linear, inference mode."""
    B, T, _ = x.shape
    h = [h0[l] for l in range(LAYER_NUM)]
    for t in range(T):
        inp = x[:, t, :]
        for l in range(LAYER_NUM):
            h[l] = jnp.tanh(inp @ w_ih[l].T + b_ih[l] + h[l] @ w_hh[l].T + b_hh[l])
            inp = h[l]
    out = h[LAYER_NUM - 1] @ w_out.T + b_out
    return out, jnp.stack(h)


if __name__ == "__main__":
    key = jax.random.PRNGKey(0)
    kx, kp = jax.random.split(key)

    x = jax.random.normal(kx, (BATCH, SEQ, INPUT_SIZE), jnp.float32)
    h0 = jnp.zeros((LAYER_NUM, BATCH, HIDDEN), jnp.float32)     # h_state = None in the module

    w_ih, w_hh, b_ih, b_hh, w_out, b_out = init_params(kp)
    w0, wih, whh, b_stack, w_out_pad, b_out_pad = pack_params(
        w_ih, w_hh, b_ih, b_hh, w_out, b_out)

    out, h_state = rnn_forward(x, h0, w0, wih, whh, b_stack, w_out_pad, b_out_pad)
    jax.block_until_ready((out, h_state))

    out_ref, h_ref = rnn_reference(x, h0, w_ih, w_hh, b_ih, b_hh, w_out, b_out)
    assert jnp.allclose(out, out_ref, atol=1e-4, rtol=1e-4), "logits mismatch vs reference"
    assert jnp.allclose(h_state, h_ref, atol=1e-4, rtol=1e-4), "h_state mismatch vs reference"

    print("KERNEL_OK")
</pallas_src>

<mosaic_0001>
module attributes {stable_mosaic.version = 11 : i64} {
  func.func @rnn_kernel(%arg0: memref<112x24xf32, #tpu.memory_space<vmem>>, %arg1: memref<3x8x64xf32, #tpu.memory_space<vmem>>, %arg2: memref<24x64xf32, #tpu.memory_space<vmem>>, %arg3: memref<2x64x64xf32, #tpu.memory_space<vmem>>, %arg4: memref<3x64x64xf32, #tpu.memory_space<vmem>>, %arg5: memref<3x1x64xf32, #tpu.memory_space<vmem>>, %arg6: memref<64x128xf32, #tpu.memory_space<vmem>>, %arg7: memref<1x128xf32, #tpu.memory_space<vmem>>, %arg8: memref<8x128xf32, #tpu.memory_space<vmem>>, %arg9: memref<3x8x64xf32, #tpu.memory_space<vmem>>, %arg10: memref<112x64xf32, #tpu.memory_space<vmem>>) attributes {dimension_semantics = [], scalar_prefetch = 0 : i64, scratch_operands = 1 : i64, tpu.core_type = #tpu.core_type<tc>} {
    %c0 = arith.constant 0 : index
    %c0_0 = arith.constant 0 : index
    %0 = vector.load %arg0[%c0, %c0_0] : memref<112x24xf32, #tpu.memory_space<vmem>>, vector<112x24xf32>
    %c0_1 = arith.constant 0 : index
    %c0_2 = arith.constant 0 : index
    %1 = vector.load %arg2[%c0_1, %c0_2] : memref<24x64xf32, #tpu.memory_space<vmem>>, vector<24x64xf32>
    %cst = arith.constant dense<0.000000e+00> : vector<112x64xf32>
    %2 = tpu.matmul %0, %1, %cst {dimension_numbers = #tpu.dot_dimension_numbers<[1], [0], [0], [1], [0, 0, 1, 1], [], []>} : vector<112x24xf32>, vector<24x64xf32>, vector<112x64xf32> -> vector<112x64xf32>
    %c0_3 = arith.constant 0 : index
    %c0_4 = arith.constant 0 : index
    %c0_5 = arith.constant 0 : index
    %3 = vector.load %arg5[%c0_3, %c0_4, %c0_5] : memref<3x1x64xf32, #tpu.memory_space<vmem>>, vector<1x1x64xf32>
    %4 = vector.shape_cast %3 : vector<1x1x64xf32> to vector<1x64xf32>
    %5 = vector.broadcast %4 : vector<1x64xf32> to vector<112x64xf32>
    %6 = arith.addf %2, %5 : vector<112x64xf32>
    %c0_6 = arith.constant 0 : index
    %c0_7 = arith.constant 0 : index
    %7 = vector.load %arg10[%c0_6, %c0_7] : memref<112x64xf32, #tpu.memory_space<vmem>>, vector<112x64xf32>
    tpu.vector_store %arg10[%c0_6, %c0_7], %6 {strides = array<i32>} : memref<112x64xf32, #tpu.memory_space<vmem>>, vector<112x64xf32>,
    %c1 = arith.constant 1 : index
    %c0_8 = arith.constant 0 : index
    %c0_9 = arith.constant 0 : index
    %8 = vector.load %arg5[%c1, %c0_8, %c0_9] : memref<3x1x64xf32, #tpu.memory_space<vmem>>, vector<1x1x64xf32>
    %9 = vector.shape_cast %8 : vector<1x1x64xf32> to vector<1x64xf32>
    %10 = vector.shape_cast %9 : vector<1x64xf32> to vector<1x64xf32>
    %11 = vector.broadcast %10 : vector<1x64xf32> to vector<8x64xf32>
    %c2 = arith.constant 2 : index
    %c0_10 = arith.constant 0 : index
    %c0_11 = arith.constant 0 : index
    %12 = vector.load %arg5[%c2, %c0_10, %c0_11] : memref<3x1x64xf32, #tpu.memory_space<vmem>>, vector<1x1x64xf32>
    %13 = vector.shape_cast %12 : vector<1x1x64xf32> to vector<1x64xf32>
    %14 = vector.shape_cast %13 : vector<1x64xf32> to vector<1x64xf32>
    %15 = vector.broadcast %14 : vector<1x64xf32> to vector<8x64xf32>
    %c0_12 = arith.constant 0 : index
    %c0_13 = arith.constant 0 : index
    %c0_14 = arith.constant 0 : index
    %16 = vector.load %arg1[%c0_12, %c0_13, %c0_14] : memref<3x8x64xf32, #tpu.memory_space<vmem>>, vector<1x8x64xf32>
    %17 = vector.shape_cast %16 : vector<1x8x64xf32> to vector<8x64xf32>
    %c1_15 = arith.constant 1 : index
    %c0_16 = arith.constant 0 : index
    %c0_17 = arith.constant 0 : index
    %18 = vector.load %arg1[%c1_15, %c0_16, %c0_17] : memref<3x8x64xf32, #tpu.memory_space<vmem>>, vector<1x8x64xf32>
    %19 = vector.shape_cast %18 : vector<1x8x64xf32> to vector<8x64xf32>
    %c2_18 = arith.constant 2 : index
    %c0_19 = arith.constant 0 : index
    %c0_20 = arith.constant 0 : index
    %20 = vector.load %arg1[%c2_18, %c0_19, %c0_20] : memref<3x8x64xf32, #tpu.memory_space<vmem>>, vector<1x8x64xf32>
    %21 = vector.shape_cast %20 : vector<1x8x64xf32> to vector<8x64xf32>
    %c0_21 = arith.constant 0 : index
    %c0_22 = arith.constant 0 : index
    %22 = vector.load %arg10[%c0_21, %c0_22] : memref<112x64xf32, #tpu.memory_space<vmem>>, vector<8x64xf32>
    %c0_23 = arith.constant 0 : index
    %c0_24 = arith.constant 0 : index
    %c0_25 = arith.constant 0 : index
    %23 = vector.load %arg4[%c0_23, %c0_24, %c0_25] : memref<3x64x64xf32, #tpu.memory_space<vmem>>, vector<1x64x64xf32>
    %24 = vector.shape_cast %23 : vector<1x64x64xf32> to vector<64x64xf32>
    %cst_26 = arith.constant dense<0.000000e+00> : vector<8x64xf32>
    %25 = tpu.matmul %17, %24, %cst_26 {dimension_numbers = #tpu.dot_dimension_numbers<[1], [0], [0], [1], [0, 0, 1, 1], [], []>} : vector<8x64xf32>, vector<64x64xf32>, vector<8x64xf32> -> vector<8x64xf32>
    %26 = arith.addf %22, %25 : vector<8x64xf32>
    %27 = math.tanh %26 : vector<8x64xf32>
    %c8 = arith.constant 8 : index
    %c0_27 = arith.constant 0 : index
    %28 = vector.load %arg10[%c8, %c0_27] : memref<112x64xf32, #tpu.memory_space<vmem>>, vector<8x64xf32>
    %c0_28 = arith.constant 0 : index
    %c0_29 = arith.constant 0 : index
    %c0_30 = arith.constant 0 : index
    %29 = vector.load %arg4[%c0_28, %c0_29, %c0_30] : memref<3x64x64xf32, #tpu.memory_space<vmem>>, vector<1x64x64xf32>
    %30 = vector.shape_cast %29 : vector<1x64x64xf32> to vector<64x64xf32>
    %cst_31 = arith.constant dense<0.000000e+00> : vector<8x64xf32>
    %31 = tpu.matmul %27, %30, %cst_31 {dimension_numbers = #tpu.dot_dimension_numbers<[1], [0], [0], [1], [0, 0, 1, 1], [], []>} : vector<8x64xf32>, vector<64x64xf32>, vector<8x64xf32> -> vector<8x64xf32>
    %32 = arith.addf %28, %31 : vector<8x64xf32>
    %c0_32 = arith.constant 0 : index
    %c0_33 = arith.constant 0 : index
    %c0_34 = arith.constant 0 : index
    %33 = vector.load %arg3[%c0_32, %c0_33, %c0_34] : memref<2x64x64xf32, #tpu.memory_space<vmem>>, vector<1x64x64xf32>
    %34 = vector.shape_cast %33 : vector<1x64x64xf32> to vector<64x64xf32>
    %cst_35 = arith.constant dense<0.000000e+00> : vector<8x64xf32>
    %35 = tpu.matmul %27, %34, %cst_35 {dimension_numbers = #tpu.dot_dimension_numbers<[1], [0], [0], [1], [0, 0, 1, 1], [], []>} : vector<8x64xf32>, vector<64x64xf32>, vector<8x64xf32> -> vector<8x64xf32>
    %c1_36 = arith.constant 1 : index
    %c0_37 = arith.constant 0 : index
    %c0_38 = arith.constant 0 : index
    %36 = vector.load %arg4[%c1_36, %c0_37, %c0_38] : memref<3x64x64xf32, #tpu.memory_space<vmem>>, vector<1x64x64xf32>
    %37 = vector.shape_cast %36 : vector<1x64x64xf32> to vector<64x64xf32>
    %cst_39 = arith.constant dense<0.000000e+00> : vector<8x64xf32>
    %38 = tpu.matmul %19, %37, %cst_39 {dimension_numbers = #tpu.dot_dimension_numbers<[1], [0], [0], [1], [0, 0, 1, 1], [], []>} : vector<8x64xf32>, vector<64x64xf32>, vector<8x64xf32> -> vector<8x64xf32>
    %39 = arith.addf %35, %38 : vector<8x64xf32>
    %40 = arith.addf %39, %11 : vector<8x64xf32>
    %41 = tpu.concatenate %32, %40 in 0 : vector<8x64xf32>, vector<8x64xf32> -> vector<16x64xf32>
    %42 = math.tanh %41 : vector<16x64xf32>
    %43 = vector.extract_strided_slice %42 {offsets = [0, 0], sizes = [8, 64], strides = [1, 1]} : vector<16x64xf32> to vector<8x64xf32>
    %44 = vector.extract_strided_slice %42 {offsets = [8, 0], sizes = [8, 64], strides = [1, 1]} : vector<16x64xf32> to vector<8x64xf32>
    %c16 = arith.constant 16 : index
    %c0_40 = arith.constant 0 : index
    %45 = vector.load %arg10[%c16, %c0_40] : memref<112x64xf32, #tpu.memory_space<vmem>>, vector<8x64xf32>
    %c0_41 = arith.constant 0 : index
    %c0_42 = arith.constant 0 : index
    %c0_43 = arith.constant 0 : index
    %46 = vector.load %arg4[%c0_41, %c0_42, %c0_43] : memref<3x64x64xf32, #tpu.memory_space<vmem>>, vector<1x64x64xf32>
    %47 = vector.shape_cast %46 : vector<1x64x64xf32> to vector<64x64xf32>
    %cst_44 = arith.constant dense<0.000000e+00> : vector<8x64xf32>
    %48 = tpu.matmul %43, %47, %cst_44 {dimension_numbers = #tpu.dot_dimension_numbers<[1], [0], [0], [1], [0, 0, 1, 1], [], []>} : vector<8x64xf32>, vector<64x64xf32>, vector<8x64xf32> -> vector<8x64xf32>
    %49 = arith.addf %45, %48 : vector<8x64xf32>
    %c0_45 = arith.constant 0 : index
    %c0_46 = arith.constant 0 : index
    %c0_47 = arith.constant 0 : index
    %50 = vector.load %arg3[%c0_45, %c0_46, %c0_47] : memref<2x64x64xf32, #tpu.memory_space<vmem>>, vector<1x64x64xf32>
    %51 = vector.shape_cast %50 : vector<1x64x64xf32> to vector<64x64xf32>
    %cst_48 = arith.constant dense<0.000000e+00> : vector<8x64xf32>
    %52 = tpu.matmul %43, %51, %cst_48 {dimension_numbers = #tpu.dot_dimension_numbers<[1], [0], [0], [1], [0, 0, 1, 1], [], []>} : vector<8x64xf32>, vector<64x64xf32>, vector<8x64xf32> -> vector<8x64xf32>
    %c1_49 = arith.constant 1 : index
    %c0_50 = arith.constant 0 : index
    %c0_51 = arith.constant 0 : index
    %53 = vector.load %arg4[%c1_49, %c0_50, %c0_51] : memref<3x64x64xf32, #tpu.memory_space<vmem>>, vector<1x64x64xf32>
    %54 = vector.shape_cast %53 : vector<1x64x64xf32> to vector<64x64xf32>
    %cst_52 = arith.constant dense<0.000000e+00> : vector<8x64xf32>
    %55 = tpu.matmul %44, %54, %cst_52 {dimension_numbers = #tpu.dot_dimension_numbers<[1], [0], [0], [1], [0, 0, 1, 1], [], []>} : vector<8x64xf32>, vector<64x64xf32>, vector<8x64xf32> -> vector<8x64xf32>
    %56 = arith.addf %52, %55 : vector<8x64xf32>
    %57 = arith.addf %56, %11 : vector<8x64xf32>
    %c1_53 = arith.constant 1 : index
    %c0_54 = arith.constant 0 : index
    %c0_55 = arith.constant 0 : index
    %58 = vector.load %arg3[%c1_53, %c0_54, %c0_55] : memref<2x64x64xf32, #tpu.memory_space<vmem>>, vector<1x64x64xf32>
    %59 = vector.shape_cast %58 : vector<1x64x64xf32> to vector<64x64xf32>
    %cst_56 = arith.constant dense<0.000000e+00> : vector<8x64xf32>
    %60 = tpu.matmul %44, %59, %cst_56 {dimension_numbers = #tpu.dot_dimension_numbers<[1], [0], [0], [1], [0, 0, 1, 1], [], []>} : vector<8x64xf32>, vector<64x64xf32>, vector<8x64xf32> -> vector<8x64xf32>
    %c2_57 = arith.constant 2 : index
    %c0_58 = arith.constant 0 : index
    %c0_59 = arith.constant 0 : index
    %61 = vector.load %arg4[%c2_57, %c0_58, %c0_59] : memref<3x64x64xf32, #tpu.memory_space<vmem>>, vector<1x64x64xf32>
    %62 = vector.shape_cast %61 : vector<1x64x64xf32> to vector<64x64xf32>
    %cst_60 = arith.constant dense<0.000000e+00> : vector<8x64xf32>
    %63 = tpu.matmul %21, %62, %cst_60 {dimension_numbers = #tpu.dot_dimension_numbers<[1], [0], [0], [1], [0, 0, 1, 1], [], []>} : vector<8x64xf32>, vector<64x64xf32>, vector<8x64xf32> -> vector<8x64xf32>
    %64 = arith.addf %60, %63 : vector<8x64xf32>
    %65 = arith.addf %64, %15 : vector<8x64xf32>
    %66 = tpu.concatenate %49, %57, %65 in 0 : vector<8x64xf32>, vector<8x64xf32>, vector<8x64xf32> -> vector<24x64xf32>
    %67 = math.tanh %66 : vector<24x64xf32>
    %68 = vector.extract_strided_slice %67 {offsets = [0, 0], sizes = [8, 64], strides = [1, 1]} : vector<24x64xf32> to vector<8x64xf32>
    %69 = vector.extract_strided_slice %67 {offsets = [8, 0], sizes = [8, 64], strides = [1, 1]} : vector<24x64xf32> to vector<8x64xf32>
    %70 = vector.extract_strided_slice %67 {offsets = [16, 0], sizes = [8, 64], strides = [1, 1]} : vector<24x64xf32> to vector<8x64xf32>
    %c24 = arith.constant 24 : index
    %c0_61 = arith.constant 0 : index
    %71 = vector.load %arg10[%c24, %c0_61] : memref<112x64xf32, #tpu.memory_space<vmem>>, vector<8x64xf32>
    %c0_62 = arith.constant 0 : index
    %c0_63 = arith.constant 0 : index
    %c0_64 = arith.constant 0 : index
    %72 = vector.load %arg4[%c0_62, %c0_63, %c0_64] : memref<3x64x64xf32, #tpu.memory_space<vmem>>, vector<1x64x64xf32>
    %73 = vector.shape_cast %72 : vector<1x64x64xf32> to vector<64x64xf32>
    %cst_65 = arith.constant dense<0.000000e+00> : vector<8x64xf32>
    %74 = tpu.matmul %68, %73, %cst_65 {dimension_numbers = #tpu.dot_dimension_numbers<[1], [0], [0], [1], [0, 0, 1, 1], [], []>} : vector<8x64xf32>, vector<64x64xf32>, vector<8x64xf32> -> vector<8x64xf32>
    %75 = arith.addf %71, %74 : vector<8x64xf32>
    %c0_66 = arith.constant 0 : index
    %c0_67 = arith.constant 0 : index
    %c0_68 = arith.constant 0 : index
    %76 = vector.load %arg3[%c0_66, %c0_67, %c0_68] : memref<2x64x64xf32, #tpu.memory_space<vmem>>, vector<1x64x64xf32>
    %77 = vector.shape_cast %76 : vector<1x64x64xf32> to vector<64x64xf32>
    %cst_69 = arith.constant dense<0.000000e+00> : vector<8x64xf32>
    %78 = tpu.matmul %68, %77, %cst_69 {dimension_numbers = #tpu.dot_dimension_numbers<[1], [0], [0], [1], [0, 0, 1, 1], [], []>} : vector<8x64xf32>, vector<64x64xf32>, vector<8x64xf32> -> vector<8x64xf32>
    %c1_70 = arith.constant 1 : index
    %c0_71 = arith.constant 0 : index
    %c0_72 = arith.constant 0 : index
    %79 = vector.load %arg4[%c1_70, %c0_71, %c0_72] : memref<3x64x64xf32, #tpu.memory_space<vmem>>, vector<1x64x64xf32>
    %80 = vector.shape_cast %79 : vector<1x64x64xf32> to vector<64x64xf32>
    %cst_73 = arith.constant dense<0.000000e+00> : vector<8x64xf32>
    %81 = tpu.matmul %69, %80, %cst_73 {dimension_numbers = #tpu.dot_dimension_numbers<[1], [0], [0], [1], [0, 0, 1, 1], [], []>} : vector<8x64xf32>, vector<64x64xf32>, vector<8x64xf32> -> vector<8x64xf32>
    %82 = arith.addf %78, %81 : vector<8x64xf32>
    %83 = arith.addf %82, %11 : vector<8x64xf32>
    %c1_74 = arith.constant 1 : index
    %c0_75 = arith.constant 0 : index
    %c0_76 = arith.constant 0 : index
    %84 = vector.load %arg3[%c1_74, %c0_75, %c0_76] : memref<2x64x64xf32, #tpu.memory_space<vmem>>, vector<1x64x64xf32>
    %85 = vector.shape_cast %84 : vector<1x64x64xf32> to vector<64x64xf32>
    %cst_77 = arith.constant dense<0.000000e+00> : vector<8x64xf32>
    %86 = tpu.matmul %69, %85, %cst_77 {dimension_numbers = #tpu.dot_dimension_numbers<[1], [0], [0], [1], [0, 0, 1, 1], [], []>} : vector<8x64xf32>, vector<64x64xf32>, vector<8x64xf32> -> vector<8x64xf32>
    %c2_78 = arith.constant 2 : index
    %c0_79 = arith.constant 0 : index
    %c0_80 = arith.constant 0 : index
    %87 = vector.load %arg4[%c2_78, %c0_79, %c0_80] : memref<3x64x64xf32, #tpu.memory_space<vmem>>, vector<1x64x64xf32>
    %88 = vector.shape_cast %87 : vector<1x64x64xf32> to vector<64x64xf32>
    %cst_81 = arith.constant dense<0.000000e+00> : vector<8x64xf32>
    %89 = tpu.matmul %70, %88, %cst_81 {dimension_numbers = #tpu.dot_dimension_numbers<[1], [0], [0], [1], [0, 0, 1, 1], [], []>} : vector<8x64xf32>, vector<64x64xf32>, vector<8x64xf32> -> vector<8x64xf32>
    %90 = arith.addf %86, %89 : vector<8x64xf32>
    %91 = arith.addf %90, %15 : vector<8x64xf32>
    %92 = tpu.concatenate %75, %83, %91 in 0 : vector<8x64xf32>, vector<8x64xf32>, vector<8x64xf32> -> vector<24x64xf32>
    %93 = math.tanh %92 : vector<24x64xf32>
    %94 = vector.extract_strided_slice %93 {offsets = [0, 0], sizes = [8, 64], strides = [1, 1]} : vector<24x64xf32> to vector<8x64xf32>
    %95 = vector.extract_strided_slice %93 {offsets = [8, 0], sizes = [8, 64], strides = [1, 1]} : vector<24x64xf32> to vector<8x64xf32>
    %96 = vector.extract_strided_slice %93 {offsets = [16, 0], sizes = [8, 64], strides = [1, 1]} : vector<24x64xf32> to vector<8x64xf32>
    %c32 = arith.constant 32 : index
    %c0_82 = arith.constant 0 : index
    %97 = vector.load %arg10[%c32, %c0_82] : memref<112x64xf32, #tpu.memory_space<vmem>>, vector<8x64xf32>
    %c0_83 = arith.constant 0 : index
    %c0_84 = arith.constant 0 : index
    %c0_85 = arith.constant 0 : index
    %98 = vector.load %arg4[%c0_83, %c0_84, %c0_85] : memref<3x64x64xf32, #tpu.memory_space<vmem>>, vector<1x64x64xf32>
    %99 = vector.shape_cast %98 : vector<1x64x64xf32> to vector<64x64xf32>
    %cst_86 = arith.constant dense<0.000000e+00> : vector<8x64xf32>
    %100 = tpu.matmul %94, %99, %cst_86 {dimension_numbers = #tpu.dot_dimension_numbers<[1], [0], [0], [1], [0, 0, 1, 1], [], []>} : vector<8x64xf32>, vector<64x64xf32>, vector<8x64xf32> -> vector<8x64xf32>
    %101 = arith.addf %97, %100 : vector<8x64xf32>
    %c0_87 = arith.constant 0 : index
    %c0_88 = arith.constant 0 : index
    %c0_89 = arith.constant 0 : index
    %102 = vector.load %arg3[%c0_87, %c0_88, %c0_89] : memref<2x64x64xf32, #tpu.memory_space<vmem>>, vector<1x64x64xf32>
    %103 = vector.shape_cast %102 : vector<1x64x64xf32> to vector<64x64xf32>
    %cst_90 = arith.constant dense<0.000000e+00> : vector<8x64xf32>
    %104 = tpu.matmul %94, %103, %cst_90 {dimension_numbers = #tpu.dot_dimension_numbers<[1], [0], [0], [1], [0, 0, 1, 1], [], []>} : vector<8x64xf32>, vector<64x64xf32>, vector<8x64xf32> -> vector<8x64xf32>
    %c1_91 = arith.constant 1 : index
    %c0_92 = arith.constant 0 : index
    %c0_93 = arith.constant 0 : index
    %105 = vector.load %arg4[%c1_91, %c0_92, %c0_93] : memref<3x64x64xf32, #tpu.memory_space<vmem>>, vector<1x64x64xf32>
    %106 = vector.shape_cast %105 : vector<1x64x64xf32> to vector<64x64xf32>
    %cst_94 = arith.constant dense<0.000000e+00> : vector<8x64xf32>
    %107 = tpu.matmul %95, %106, %cst_94 {dimension_numbers = #tpu.dot_dimension_numbers<[1], [0], [0], [1], [0, 0, 1, 1], [], []>} : vector<8x64xf32>, vector<64x64xf32>, vector<8x64xf32> -> vector<8x64xf32>
    %108 = arith.addf %104, %107 : vector<8x64xf32>
    %109 = arith.addf %108, %11 : vector<8x64xf32>
    %c1_95 = arith.constant 1 : index
    %c0_96 = arith.constant 0 : index
    %c0_97 = arith.constant 0 : index
    %110 = vector.load %arg3[%c1_95, %c0_96, %c0_97] : memref<2x64x64xf32, #tpu.memory_space<vmem>>, vector<1x64x64xf32>
    %111 = vector.shape_cast %110 : vector<1x64x64xf32> to vector<64x64xf32>
    %cst_98 = arith.constant dense<0.000000e+00> : vector<8x64xf32>
    %112 = tpu.matmul %95, %111, %cst_98 {dimension_numbers = #tpu.dot_dimension_numbers<[1], [0], [0], [1], [0, 0, 1, 1], [], []>} : vector<8x64xf32>, vector<64x64xf32>, vector<8x64xf32> -> vector<8x64xf32>
    %c2_99 = arith.constant 2 : index
    %c0_100 = arith.constant 0 : index
    %c0_101 = arith.constant 0 : index
    %113 = vector.load %arg4[%c2_99, %c0_100, %c0_101] : memref<3x64x64xf32, #tpu.memory_space<vmem>>, vector<1x64x64xf32>
    %114 = vector.shape_cast %113 : vector<1x64x64xf32> to vector<64x64xf32>
    %cst_102 = arith.constant dense<0.000000e+00> : vector<8x64xf32>
    %115 = tpu.matmul %96, %114, %cst_102 {dimension_numbers = #tpu.dot_dimension_numbers<[1], [0], [0], [1], [0, 0, 1, 1], [], []>} : vector<8x64xf32>, vector<64x64xf32>, vector<8x64xf32> -> vector<8x64xf32>
    %116 = arith.addf %112, %115 : vector<8x64xf32>
    %117 = arith.addf %116, %15 : vector<8x64xf32>
    %118 = tpu.concatenate %101, %109, %117 in 0 : vector<8x64xf32>, vector<8x64xf32>, vector<8x64xf32> -> vector<24x64xf32>
    %119 = math.tanh %118 : vector<24x64xf32>
    %120 = vector.extract_strided_slice %119 {offsets = [0, 0], sizes = [8, 64], strides = [1, 1]} : vector<24x64xf32> to vector<8x64xf32>
    %121 = vector.extract_strided_slice %119 {offsets = [8, 0], sizes = [8, 64], strides = [1, 1]} : vector<24x64xf32> to vector<8x64xf32>
    %122 = vector.extract_strided_slice %119 {offsets = [16, 0], sizes = [8, 64], strides = [1, 1]} : vector<24x64xf32> to vector<8x64xf32>
    %c40 = arith.constant 40 : index
    %c0_103 = arith.constant 0 : index
    %123 = vector.load %arg10[%c40, %c0_103] : memref<112x64xf32, #tpu.memory_space<vmem>>, vector<8x64xf32>
    %c0_104 = arith.constant 0 : index
    %c0_105 = arith.constant 0 : index
    %c0_106 = arith.constant 0 : index
    %124 = vector.load %arg4[%c0_104, %c0_105, %c0_106] : memref<3x64x64xf32, #tpu.memory_space<vmem>>, vector<1x64x64xf32>
    %125 = vector.shape_cast %124 : vector<1x64x64xf32> to vector<64x64xf32>
    %cst_107 = arith.constant dense<0.000000e+00> : vector<8x64xf32>
    %126 = tpu.matmul %120, %125, %cst_107 {dimension_numbers = #tpu.dot_dimension_numbers<[1], [0], [0], [1], [0, 0, 1, 1], [], []>} : vector<8x64xf32>, vector<64x64xf32>, vector<8x64xf32> -> vector<8x64xf32>
    %127 = arith.addf %123, %126 : vector<8x64xf32>
    %c0_108 = arith.constant 0 : index
    %c0_109 = arith.constant 0 : index
    %c0_110 = arith.constant 0 : index
    %128 = vector.load %arg3[%c0_108, %c0_109, %c0_110] : memref<2x64x64xf32, #tpu.memory_space<vmem>>, vector<1x64x64xf32>
    %129 = vector.shape_cast %128 : vector<1x64x64xf32> to vector<64x64xf32>
    %cst_111 = arith.constant dense<0.000000e+00> : vector<8x64xf32>
    %130 = tpu.matmul %120, %129, %cst_111 {dimension_numbers = #tpu.dot_dimension_numbers<[1], [0], [0], [1], [0, 0, 1, 1], [], []>} : vector<8x64xf32>, vector<64x64xf32>, vector<8x64xf32> -> vector<8x64xf32>
    %c1_112 = arith.constant 1 : index
    %c0_113 = arith.constant 0 : index
    %c0_114 = arith.constant 0 : index
    %131 = vector.load %arg4[%c1_112, %c0_113, %c0_114] : memref<3x64x64xf32, #tpu.memory_space<vmem>>, vector<1x64x64xf32>
    %132 = vector.shape_cast %131 : vector<1x64x64xf32> to vector<64x64xf32>
    %cst_115 = arith.constant dense<0.000000e+00> : vector<8x64xf32>
    %133 = tpu.matmul %121, %132, %cst_115 {dimension_numbers = #tpu.dot_dimension_numbers<[1], [0], [0], [1], [0, 0, 1, 1], [], []>} : vector<8x64xf32>, vector<64x64xf32>, vector<8x64xf32> -> vector<8x64xf32>
    %134 = arith.addf %130, %133 : vector<8x64xf32>
    %135 = arith.addf %134, %11 : vector<8x64xf32>
    %c1_116 = arith.constant 1 : index
    %c0_117 = arith.constant 0 : index
    %c0_118 = arith.constant 0 : index
    %136 = vector.load %arg3[%c1_116, %c0_117, %c0_118] : memref<2x64x64xf32, #tpu.memory_space<vmem>>, vector<1x64x64xf32>
    %137 = vector.shape_cast %136 : vector<1x64x64xf32> to vector<64x64xf32>
    %cst_119 = arith.constant dense<0.000000e+00> : vector<8x64xf32>
    %138 = tpu.matmul %121, %137, %cst_119 {dimension_numbers = #tpu.dot_dimension_numbers<[1], [0], [0], [1], [0, 0, 1, 1], [], []>} : vector<8x64xf32>, vector<64x64xf32>, vector<8x64xf32> -> vector<8x64xf32>
    %c2_120 = arith.constant 2 : index
    %c0_121 = arith.constant 0 : index
    %c0_122 = arith.constant 0 : index
    %139 = vector.load %arg4[%c2_120, %c0_121, %c0_122] : memref<3x64x64xf32, #tpu.memory_space<vmem>>, vector<1x64x64xf32>
    %140 = vector.shape_cast %139 : vector<1x64x64xf32> to vector<64x64xf32>
    %cst_123 = arith.constant dense<0.000000e+00> : vector<8x64xf32>
    %141 = tpu.matmul %122, %140, %cst_123 {dimension_numbers = #tpu.dot_dimension_numbers<[1], [0], [0], [1], [0, 0, 1, 1], [], []>} : vector<8x64xf32>, vector<64x64xf32>, vector<8x64xf32> -> vector<8x64xf32>
    %142 = arith.addf %138, %141 : vector<8x64xf32>
    %143 = arith.addf %142, %15 : vector<8x64xf32>
    %144 = tpu.concatenate %127, %135, %143 in 0 : vector<8x64xf32>, vector<8x64xf32>, vector<8x64xf32> -> vector<24x64xf32>
    %145 = math.tanh %144 : vector<24x64xf32>
    %146 = vector.extract_strided_slice %145 {offsets = [0, 0], sizes = [8, 64], strides = [1, 1]} : vector<24x64xf32> to vector<8x64xf32>
    %147 = vector.extract_strided_slice %145 {offsets = [8, 0], sizes = [8, 64], strides = [1, 1]} : vector<24x64xf32> to vector<8x64xf32>
    %148 = vector.extract_strided_slice %145 {offsets = [16, 0], sizes = [8, 64], strides = [1, 1]} : vector<24x64xf32> to vector<8x64xf32>
    %c48 = arith.constant 48 : index
    %c0_124 = arith.constant 0 : index
    %149 = vector.load %arg10[%c48, %c0_124] : memref<112x64xf32, #tpu.memory_space<vmem>>, vector<8x64xf32>
    %c0_125 = arith.constant 0 : index
    %c0_126 = arith.constant 0 : index
    %c0_127 = arith.constant 0 : index
    %150 = vector.load %arg4[%c0_125, %c0_126, %c0_127] : memref<3x64x64xf32, #tpu.memory_space<vmem>>, vector<1x64x64xf32>
    %151 = vector.shape_cast %150 : vector<1x64x64xf32> to vector<64x64xf32>
    %cst_128 = arith.constant dense<0.000000e+00> : vector<8x64xf32>
    %152 = tpu.matmul %146, %151, %cst_128 {dimension_numbers = #tpu.dot_dimension_numbers<[1], [0], [0], [1], [0, 0, 1, 1], [], []>} : vector<8x64xf32>, vector<64x64xf32>, vector<8x64xf32> -> vector<8x64xf32>
    %153 = arith.addf %149, %152 : vector<8x64xf32>
    %c0_129 = arith.constant 0 : index
    %c0_130 = arith.constant 0 : index
    %c0_131 = arith.constant 0 : index
    %154 = vector.load %arg3[%c0_129, %c0_130, %c0_131] : memref<2x64x64xf32, #tpu.memory_space<vmem>>, vector<1x64x64xf32>
    %155 = vector.shape_cast %154 : vector<1x64x64xf32> to vector<64x64xf32>
    %cst_132 = arith.constant dense<0.000000e+00> : vector<8x64xf32>
    %156 = tpu.matmul %146, %155, %cst_132 {dimension_numbers = #tpu.dot_dimension_numbers<[1], [0], [0], [1], [0, 0, 1, 1], [], []>} : vector<8x64xf32>, vector<64x64xf32>, vector<8x64xf32> -> vector<8x64xf32>
    %c1_133 = arith.constant 1 : index
    %c0_134 = arith.constant 0 : index
    %c0_135 = arith.constant 0 : index
    %157 = vector.load %arg4[%c1_133, %c0_134, %c0_135] : memref<3x64x64xf32, #tpu.memory_space<vmem>>, vector<1x64x64xf32>
    %158 = vector.shape_cast %157 : vector<1x64x64xf32> to vector<64x64xf32>
    %cst_136 = arith.constant dense<0.000000e+00> : vector<8x64xf32>
    %159 = tpu.matmul %147, %158, %cst_136 {dimension_numbers = #tpu.dot_dimension_numbers<[1], [0], [0], [1], [0, 0, 1, 1], [], []>} : vector<8x64xf32>, vector<64x64xf32>, vector<8x64xf32> -> vector<8x64xf32>
    %160 = arith.addf %156, %159 : vector<8x64xf32>
    %161 = arith.addf %160, %11 : vector<8x64xf32>
    %c1_137 = arith.constant 1 : index
    %c0_138 = arith.constant 0 : index
    %c0_139 = arith.constant 0 : index
    %162 = vector.load %arg3[%c1_137, %c0_138, %c0_139] : memref<2x64x64xf32, #tpu.memory_space<vmem>>, vector<1x64x64xf32>
    %163 = vector.shape_cast %162 : vector<1x64x64xf32> to vector<64x64xf32>
    %cst_140 = arith.constant dense<0.000000e+00> : vector<8x64xf32>
    %164 = tpu.matmul %147, %163, %cst_140 {dimension_numbers = #tpu.dot_dimension_numbers<[1], [0], [0], [1], [0, 0, 1, 1], [], []>} : vector<8x64xf32>, vector<64x64xf32>, vector<8x64xf32> -> vector<8x64xf32>
    %c2_141 = arith.constant 2 : index
    %c0_142 = arith.constant 0 : index
    %c0_143 = arith.constant 0 : index
    %165 = vector.load %arg4[%c2_141, %c0_142, %c0_143] : memref<3x64x64xf32, #tpu.memory_space<vmem>>, vector<1x64x64xf32>
    %166 = vector.shape_cast %165 : vector<1x64x64xf32> to vector<64x64xf32>
    %cst_144 = arith.constant dense<0.000000e+00> : vector<8x64xf32>
    %167 = tpu.matmul %148, %166, %cst_144 {dimension_numbers = #tpu.dot_dimension_numbers<[1], [0], [0], [1], [0, 0, 1, 1], [], []>} : vector<8x64xf32>, vector<64x64xf32>, vector<8x64xf32> -> vector<8x64xf32>
    %168 = arith.addf %164, %167 : vector<8x64xf32>
    %169 = arith.addf %168, %15 : vector<8x64xf32>
    %170 = tpu.concatenate %153, %161, %169 in 0 : vector<8x64xf32>, vector<8x64xf32>, vector<8x64xf32> -> vector<24x64xf32>
    %171 = math.tanh %170 : vector<24x64xf32>
    %172 = vector.extract_strided_slice %171 {offsets = [0, 0], sizes = [8, 64], strides = [1, 1]} : vector<24x64xf32> to vector<8x64xf32>
    %173 = vector.extract_strided_slice %171 {offsets = [8, 0], sizes = [8, 64], strides = [1, 1]} : vector<24x64xf32> to vector<8x64xf32>
    %174 = vector.extract_strided_slice %171 {offsets = [16, 0], sizes = [8, 64], strides = [1, 1]} : vector<24x64xf32> to vector<8x64xf32>
    %c56 = arith.constant 56 : index
    %c0_145 = arith.constant 0 : index
    %175 = vector.load %arg10[%c56, %c0_145] : memref<112x64xf32, #tpu.memory_space<vmem>>, vector<8x64xf32>
    %c0_146 = arith.constant 0 : index
    %c0_147 = arith.constant 0 : index
    %c0_148 = arith.constant 0 : index
    %176 = vector.load %arg4[%c0_146, %c0_147, %c0_148] : memref<3x64x64xf32, #tpu.memory_space<vmem>>, vector<1x64x64xf32>
    %177 = vector.shape_cast %176 : vector<1x64x64xf32> to vector<64x64xf32>
    %cst_149 = arith.constant dense<0.000000e+00> : vector<8x64xf32>
    %178 = tpu.matmul %172, %177, %cst_149 {dimension_numbers = #tpu.dot_dimension_numbers<[1], [0], [0], [1], [0, 0, 1, 1], [], []>} : vector<8x64xf32>, vector<64x64xf32>, vector<8x64xf32> -> vector<8x64xf32>
    %179 = arith.addf %175, %178 : vector<8x64xf32>
    %c0_150 = arith.constant 0 : index
    %c0_151 = arith.constant 0 : index
    %c0_152 = arith.constant 0 : index
    %180 = vector.load %arg3[%c0_150, %c0_151, %c0_152] : memref<2x64x64xf32, #tpu.memory_space<vmem>>, vector<1x64x64xf32>
    %181 = vector.shape_cast %180 : vector<1x64x64xf32> to vector<64x64xf32>
    %cst_153 = arith.constant dense<0.000000e+00> : vector<8x64xf32>
    %182 = tpu.matmul %172, %181, %cst_153 {dimension_numbers = #tpu.dot_dimension_numbers<[1], [0], [0], [1], [0, 0, 1, 1], [], []>} : vector<8x64xf32>, vector<64x64xf32>, vector<8x64xf32> -> vector<8x64xf32>
    %c1_154 = arith.constant 1 : index
    %c0_155 = arith.constant 0 : index
    %c0_156 = arith.constant 0 : index
    %183 = vector.load %arg4[%c1_154, %c0_155, %c0_156] : memref<3x64x64xf32, #tpu.memory_space<vmem>>, vector<1x64x64xf32>
    %184 = vector.shape_cast %183 : vector<1x64x64xf32> to vector<64x64xf32>
    %cst_157 = arith.constant dense<0.000000e+00> : vector<8x64xf32>
    %185 = tpu.matmul %173, %184, %cst_157 {dimension_numbers = #tpu.dot_dimension_numbers<[1], [0], [0], [1], [0, 0, 1, 1], [], []>} : vector<8x64xf32>, vector<64x64xf32>, vector<8x64xf32> -> vector<8x64xf32>
    %186 = arith.addf %182, %185 : vector<8x64xf32>
    %187 = arith.addf %186, %11 : vector<8x64xf32>
    %c1_158 = arith.constant 1 : index
    %c0_159 = arith.constant 0 : index
    %c0_160 = arith.constant 0 : index
    %188 = vector.load %arg3[%c1_158, %c0_159, %c0_160] : memref<2x64x64xf32, #tpu.memory_space<vmem>>, vector<1x64x64xf32>
    %189 = vector.shape_cast %188 : vector<1x64x64xf32> to vector<64x64xf32>
    %cst_161 = arith.constant dense<0.000000e+00> : vector<8x64xf32>
    %190 = tpu.matmul %173, %189, %cst_161 {dimension_numbers = #tpu.dot_dimension_numbers<[1], [0], [0], [1], [0, 0, 1, 1], [], []>} : vector<8x64xf32>, vector<64x64xf32>, vector<8x64xf32> -> vector<8x64xf32>
    %c2_162 = arith.constant 2 : index
    %c0_163 = arith.constant 0 : index
    %c0_164 = arith.constant 0 : index
    %191 = vector.load %arg4[%c2_162, %c0_163, %c0_164] : memref<3x64x64xf32, #tpu.memory_space<vmem>>, vector<1x64x64xf32>
    %192 = vector.shape_cast %191 : vector<1x64x64xf32> to vector<64x64xf32>
    %cst_165 = arith.constant dense<0.000000e+00> : vector<8x64xf32>
    %193 = tpu.matmul %174, %192, %cst_165 {dimension_numbers = #tpu.dot_dimension_numbers<[1], [0], [0], [1], [0, 0, 1, 1], [], []>} : vector<8x64xf32>, vector<64x64xf32>, vector<8x64xf32> -> vector<8x64xf32>
    %194 = arith.addf %190, %193 : vector<8x64xf32>
    %195 = arith.addf %194, %15 : vector<8x64xf32>
    %196 = tpu.concatenate %179, %187, %195 in 0 : vector<8x64xf32>, vector<8x64xf32>, vector<8x64xf32> -> vector<24x64xf32>
    %197 = math.tanh %196 : vector<24x64xf32>
    %198 = vector.extract_strided_slice %197 {offsets = [0, 0], sizes = [8, 64], strides = [1, 1]} : vector<24x64xf32> to vector<8x64xf32>
    %199 = vector.extract_strided_slice %197 {offsets = [8, 0], sizes = [8, 64], strides = [1, 1]} : vector<24x64xf32> to vector<8x64xf32>
    %200 = vector.extract_strided_slice %197 {offsets = [16, 0], sizes = [8, 64], strides = [1, 1]} : vector<24x64xf32> to vector<8x64xf32>
    %c64 = arith.constant 64 : index
    %c0_166 = arith.constant 0 : index
    %201 = vector.load %arg10[%c64, %c0_166] : memref<112x64xf32, #tpu.memory_space<vmem>>, vector<8x64xf32>
    %c0_167 = arith.constant 0 : index
    %c0_168 = arith.constant 0 : index
    %c0_169 = arith.constant 0 : index
    %202 = vector.load %arg4[%c0_167, %c0_168, %c0_169] : memref<3x64x64xf32, #tpu.memory_space<vmem>>, vector<1x64x64xf32>
    %203 = vector.shape_cast %202 : vector<1x64x64xf32> to vector<64x64xf32>
    %cst_170 = arith.constant dense<0.000000e+00> : vector<8x64xf32>
    %204 = tpu.matmul %198, %203, %cst_170 {dimension_numbers = #tpu.dot_dimension_numbers<[1], [0], [0], [1], [0, 0, 1, 1], [], []>} : vector<8x64xf32>, vector<64x64xf32>, vector<8x64xf32> -> vector<8x64xf32>
    %205 = arith.addf %201, %204 : vector<8x64xf32>
    %c0_171 = arith.constant 0 : index
    %c0_172 = arith.constant 0 : index
    %c0_173 = arith.constant 0 : index
    %206 = vector.load %arg3[%c0_171, %c0_172, %c0_173] : memref<2x64x64xf32, #tpu.memory_space<vmem>>, vector<1x64x64xf32>
    %207 = vector.shape_cast %206 : vector<1x64x64xf32> to vector<64x64xf32>
    %cst_174 = arith.constant dense<0.000000e+00> : vector<8x64xf32>
    %208 = tpu.matmul %198, %207, %cst_174 {dimension_numbers = #tpu.dot_dimension_numbers<[1], [0], [0], [1], [0, 0, 1, 1], [], []>} : vector<8x64xf32>, vector<64x64xf32>, vector<8x64xf32> -> vector<8x64xf32>
    %c1_175 = arith.constant 1 : index
    %c0_176 = arith.constant 0 : index
    %c0_177 = arith.constant 0 : index
    %209 = vector.load %arg4[%c1_175, %c0_176, %c0_177] : memref<3x64x64xf32, #tpu.memory_space<vmem>>, vector<1x64x64xf32>
    %210 = vector.shape_cast %209 : vector<1x64x64xf32> to vector<64x64xf32>
    %cst_178 = arith.constant dense<0.000000e+00> : vector<8x64xf32>
    %211 = tpu.matmul %199, %210, %cst_178 {dimension_numbers = #tpu.dot_dimension_numbers<[1], [0], [0], [1], [0, 0, 1, 1], [], []>} : vector<8x64xf32>, vector<64x64xf32>, vector<8x64xf32> -> vector<8x64xf32>
    %212 = arith.addf %208, %211 : vector<8x64xf32>
    %213 = arith.addf %212, %11 : vector<8x64xf32>
    %c1_179 = arith.constant 1 : index
    %c0_180 = arith.constant 0 : index
    %c0_181 = arith.constant 0 : index
    %214 = vector.load %arg3[%c1_179, %c0_180, %c0_181] : memref<2x64x64xf32, #tpu.memory_space<vmem>>, vector<1x64x64xf32>
    %215 = vector.shape_cast %214 : vector<1x64x64xf32> to vector<64x64xf32>
    %cst_182 = arith.constant dense<0.000000e+00> : vector<8x64xf32>
    %216 = tpu.matmul %199, %215, %cst_182 {dimension_numbers = #tpu.dot_dimension_numbers<[1], [0], [0], [1], [0, 0, 1, 1], [], []>} : vector<8x64xf32>, vector<64x64xf32>, vector<8x64xf32> -> vector<8x64xf32>
    %c2_183 = arith.constant 2 : index
    %c0_184 = arith.constant 0 : index
    %c0_185 = arith.constant 0 : index
    %217 = vector.load %arg4[%c2_183, %c0_184, %c0_185] : memref<3x64x64xf32, #tpu.memory_space<vmem>>, vector<1x64x64xf32>
    %218 = vector.shape_cast %217 : vector<1x64x64xf32> to vector<64x64xf32>
    %cst_186 = arith.constant dense<0.000000e+00> : vector<8x64xf32>
    %219 = tpu.matmul %200, %218, %cst_186 {dimension_numbers = #tpu.dot_dimension_numbers<[1], [0], [0], [1], [0, 0, 1, 1], [], []>} : vector<8x64xf32>, vector<64x64xf32>, vector<8x64xf32> -> vector<8x64xf32>
    %220 = arith.addf %216, %219 : vector<8x64xf32>
    %221 = arith.addf %220, %15 : vector<8x64xf32>
    %222 = tpu.concatenate %205, %213, %221 in 0 : vector<8x64xf32>, vector<8x64xf32>, vector<8x64xf32> -> vector<24x64xf32>
    %223 = math.tanh %222 : vector<24x64xf32>
    %224 = vector.extract_strided_slice %223 {offsets = [0, 0], sizes = [8, 64], strides = [1, 1]} : vector<24x64xf32> to vector<8x64xf32>
    %225 = vector.extract_strided_slice %223 {offsets = [8, 0], sizes = [8, 64], strides = [1, 1]} : vector<24x64xf32> to vector<8x64xf32>
    %226 = vector.extract_strided_slice %223 {offsets = [16, 0], sizes = [8, 64], strides = [1, 1]} : vector<24x64xf32> to vector<8x64xf32>
    %c72 = arith.constant 72 : index
    %c0_187 = arith.constant 0 : index
    %227 = vector.load %arg10[%c72, %c0_187] : memref<112x64xf32, #tpu.memory_space<vmem>>, vector<8x64xf32>
    %c0_188 = arith.constant 0 : index
    %c0_189 = arith.constant 0 : index
    %c0_190 = arith.constant 0 : index
    %228 = vector.load %arg4[%c0_188, %c0_189, %c0_190] : memref<3x64x64xf32, #tpu.memory_space<vmem>>, vector<1x64x64xf32>
    %229 = vector.shape_cast %228 : vector<1x64x64xf32> to vector<64x64xf32>
    %cst_191 = arith.constant dense<0.000000e+00> : vector<8x64xf32>
    %230 = tpu.matmul %224, %229, %cst_191 {dimension_numbers = #tpu.dot_dimension_numbers<[1], [0], [0], [1], [0, 0, 1, 1], [], []>} : vector<8x64xf32>, vector<64x64xf32>, vector<8x64xf32> -> vector<8x64xf32>
    %231 = arith.addf %227, %230 : vector<8x64xf32>
    %c0_192 = arith.constant 0 : index
    %c0_193 = arith.constant 0 : index
    %c0_194 = arith.constant 0 : index
    %232 = vector.load %arg3[%c0_192, %c0_193, %c0_194] : memref<2x64x64xf32, #tpu.memory_space<vmem>>, vector<1x64x64xf32>
    %233 = vector.shape_cast %232 : vector<1x64x64xf32> to vector<64x64xf32>
    %cst_195 = arith.constant dense<0.000000e+00> : vector<8x64xf32>
    %234 = tpu.matmul %224, %233, %cst_195 {dimension_numbers = #tpu.dot_dimension_numbers<[1], [0], [0], [1], [0, 0, 1, 1], [], []>} : vector<8x64xf32>, vector<64x64xf32>, vector<8x64xf32> -> vector<8x64xf32>
    %c1_196 = arith.constant 1 : index
    %c0_197 = arith.constant 0 : index
    %c0_198 = arith.constant 0 : index
    %235 = vector.load %arg4[%c1_196, %c0_197, %c0_198] : memref<3x64x64xf32, #tpu.memory_space<vmem>>, vector<1x64x64xf32>
    %236 = vector.shape_cast %235 : vector<1x64x64xf32> to vector<64x64xf32>
    %cst_199 = arith.constant dense<0.000000e+00> : vector<8x64xf32>
    %237 = tpu.matmul %225, %236, %cst_199 {dimension_numbers = #tpu.dot_dimension_numbers<[1], [0], [0], [1], [0, 0, 1, 1], [], []>} : vector<8x64xf32>, vector<64x64xf32>, vector<8x64xf32> -> vector<8x64xf32>
    %238 = arith.addf %234, %237 : vector<8x64xf32>
    %239 = arith.addf %238, %11 : vector<8x64xf32>
    %c1_200 = arith.constant 1 : index
    %c0_201 = arith.constant 0 : index
    %c0_202 = arith.constant 0 : index
    %240 = vector.load %arg3[%c1_200, %c0_201, %c0_202] : memref<2x64x64xf32, #tpu.memory_space<vmem>>, vector<1x64x64xf32>
    %241 = vector.shape_cast %240 : vector<1x64x64xf32> to vector<64x64xf32>
    %cst_203 = arith.constant dense<0.000000e+00> : vector<8x64xf32>
    %242 = tpu.matmul %225, %241, %cst_203 {dimension_numbers = #tpu.dot_dimension_numbers<[1], [0], [0], [1], [0, 0, 1, 1], [], []>} : vector<8x64xf32>, vector<64x64xf32>, vector<8x64xf32> -> vector<8x64xf32>
    %c2_204 = arith.constant 2 : index
    %c0_205 = arith.constant 0 : index
    %c0_206 = arith.constant 0 : index
    %243 = vector.load %arg4[%c2_204, %c0_205, %c0_206] : memref<3x64x64xf32, #tpu.memory_space<vmem>>, vector<1x64x64xf32>
    %244 = vector.shape_cast %243 : vector<1x64x64xf32> to vector<64x64xf32>
    %cst_207 = arith.constant dense<0.000000e+00> : vector<8x64xf32>
    %245 = tpu.matmul %226, %244, %cst_207 {dimension_numbers = #tpu.dot_dimension_numbers<[1], [0], [0], [1], [0, 0, 1, 1], [], []>} : vector<8x64xf32>, vector<64x64xf32>, vector<8x64xf32> -> vector<8x64xf32>
    %246 = arith.addf %242, %245 : vector<8x64xf32>
    %247 = arith.addf %246, %15 : vector<8x64xf32>
    %248 = tpu.concatenate %231, %239, %247 in 0 : vector<8x64xf32>, vector<8x64xf32>, vector<8x64xf32> -> vector<24x64xf32>
    %249 = math.tanh %248 : vector<24x64xf32>
    %250 = vector.extract_strided_slice %249 {offsets = [0, 0], sizes = [8, 64], strides = [1, 1]} : vector<24x64xf32> to vector<8x64xf32>
    %251 = vector.extract_strided_slice %249 {offsets = [8, 0], sizes = [8, 64], strides = [1, 1]} : vector<24x64xf32> to vector<8x64xf32>
    %252 = vector.extract_strided_slice %249 {offsets = [16, 0], sizes = [8, 64], strides = [1, 1]} : vector<24x64xf32> to vector<8x64xf32>
    %c80 = arith.constant 80 : index
    %c0_208 = arith.constant 0 : index
    %253 = vector.load %arg10[%c80, %c0_208] : memref<112x64xf32, #tpu.memory_space<vmem>>, vector<8x64xf32>
    %c0_209 = arith.constant 0 : index
    %c0_210 = arith.constant 0 : index
    %c0_211 = arith.constant 0 : index
    %254 = vector.load %arg4[%c0_209, %c0_210, %c0_211] : memref<3x64x64xf32, #tpu.memory_space<vmem>>, vector<1x64x64xf32>
    %255 = vector.shape_cast %254 : vector<1x64x64xf32> to vector<64x64xf32>
    %cst_212 = arith.constant dense<0.000000e+00> : vector<8x64xf32>
    %256 = tpu.matmul %250, %255, %cst_212 {dimension_numbers = #tpu.dot_dimension_numbers<[1], [0], [0], [1], [0, 0, 1, 1], [], []>} : vector<8x64xf32>, vector<64x64xf32>, vector<8x64xf32> -> vector<8x64xf32>
    %257 = arith.addf %253, %256 : vector<8x64xf32>
    %c0_213 = arith.constant 0 : index
    %c0_214 = arith.constant 0 : index
    %c0_215 = arith.constant 0 : index
    %258 = vector.load %arg3[%c0_213, %c0_214, %c0_215] : memref<2x64x64xf32, #tpu.memory_space<vmem>>, vector<1x64x64xf32>
    %259 = vector.shape_cast %258 : vector<1x64x64xf32> to vector<64x64xf32>
    %cst_216 = arith.constant dense<0.000000e+00> : vector<8x64xf32>
    %260 = tpu.matmul %250, %259, %cst_216 {dimension_numbers = #tpu.dot_dimension_numbers<[1], [0], [0], [1], [0, 0, 1, 1], [], []>} : vector<8x64xf32>, vector<64x64xf32>, vector<8x64xf32> -> vector<8x64xf32>
    %c1_217 = arith.constant 1 : index
    %c0_218 = arith.constant 0 : index
    %c0_219 = arith.constant 0 : index
    %261 = vector.load %arg4[%c1_217, %c0_218, %c0_219] : memref<3x64x64xf32, #tpu.memory_space<vmem>>, vector<1x64x64xf32>
    %262 = vector.shape_cast %261 : vector<1x64x64xf32> to vector<64x64xf32>
    %cst_220 = arith.constant dense<0.000000e+00> : vector<8x64xf32>
    %263 = tpu.matmul %251, %262, %cst_220 {dimension_numbers = #tpu.dot_dimension_numbers<[1], [0], [0], [1], [0, 0, 1, 1], [], []>} : vector<8x64xf32>, vector<64x64xf32>, vector<8x64xf32> -> vector<8x64xf32>
    %264 = arith.addf %260, %263 : vector<8x64xf32>
    %265 = arith.addf %264, %11 : vector<8x64xf32>
    %c1_221 = arith.constant 1 : index
    %c0_222 = arith.constant 0 : index
    %c0_223 = arith.constant 0 : index
    %266 = vector.load %arg3[%c1_221, %c0_222, %c0_223] : memref<2x64x64xf32, #tpu.memory_space<vmem>>, vector<1x64x64xf32>
    %267 = vector.shape_cast %266 : vector<1x64x64xf32> to vector<64x64xf32>
    %cst_224 = arith.constant dense<0.000000e+00> : vector<8x64xf32>
    %268 = tpu.matmul %251, %267, %cst_224 {dimension_numbers = #tpu.dot_dimension_numbers<[1], [0], [0], [1], [0, 0, 1, 1], [], []>} : vector<8x64xf32>, vector<64x64xf32>, vector<8x64xf32> -> vector<8x64xf32>
    %c2_225 = arith.constant 2 : index
    %c0_226 = arith.constant 0 : index
    %c0_227 = arith.constant 0 : index
    %269 = vector.load %arg4[%c2_225, %c0_226, %c0_227] : memref<3x64x64xf32, #tpu.memory_space<vmem>>, vector<1x64x64xf32>
    %270 = vector.shape_cast %269 : vector<1x64x64xf32> to vector<64x64xf32>
    %cst_228 = arith.constant dense<0.000000e+00> : vector<8x64xf32>
    %271 = tpu.matmul %252, %270, %cst_228 {dimension_numbers = #tpu.dot_dimension_numbers<[1], [0], [0], [1], [0, 0, 1, 1], [], []>} : vector<8x64xf32>, vector<64x64xf32>, vector<8x64xf32> -> vector<8x64xf32>
    %272 = arith.addf %268, %271 : vector<8x64xf32>
    %273 = arith.addf %272, %15 : vector<8x64xf32>
    %274 = tpu.concatenate %257, %265, %273 in 0 : vector<8x64xf32>, vector<8x64xf32>, vector<8x64xf32> -> vector<24x64xf32>
    %275 = math.tanh %274 : vector<24x64xf32>
    %276 = vector.extract_strided_slice %275 {offsets = [0, 0], sizes = [8, 64], strides = [1, 1]} : vector<24x64xf32> to vector<8x64xf32>
    %277 = vector.extract_strided_slice %275 {offsets = [8, 0], sizes = [8, 64], strides = [1, 1]} : vector<24x64xf32> to vector<8x64xf32>
    %278 = vector.extract_strided_slice %275 {offsets = [16, 0], sizes = [8, 64], strides = [1, 1]} : vector<24x64xf32> to vector<8x64xf32>
    %c88 = arith.constant 88 : index
    %c0_229 = arith.constant 0 : index
    %279 = vector.load %arg10[%c88, %c0_229] : memref<112x64xf32, #tpu.memory_space<vmem>>, vector<8x64xf32>
    %c0_230 = arith.constant 0 : index
    %c0_231 = arith.constant 0 : index
    %c0_232 = arith.constant 0 : index
    %280 = vector.load %arg4[%c0_230, %c0_231, %c0_232] : memref<3x64x64xf32, #tpu.memory_space<vmem>>, vector<1x64x64xf32>
    %281 = vector.shape_cast %280 : vector<1x64x64xf32> to vector<64x64xf32>
    %cst_233 = arith.constant dense<0.000000e+00> : vector<8x64xf32>
    %282 = tpu.matmul %276, %281, %cst_233 {dimension_numbers = #tpu.dot_dimension_numbers<[1], [0], [0], [1], [0, 0, 1, 1], [], []>} : vector<8x64xf32>, vector<64x64xf32>, vector<8x64xf32> -> vector<8x64xf32>
    %283 = arith.addf %279, %282 : vector<8x64xf32>
    %c0_234 = arith.constant 0 : index
    %c0_235 = arith.constant 0 : index
    %c0_236 = arith.constant 0 : index
    %284 = vector.load %arg3[%c0_234, %c0_235, %c0_236] : memref<2x64x64xf32, #tpu.memory_space<vmem>>, vector<1x64x64xf32>
    %285 = vector.shape_cast %284 : vector<1x64x64xf32> to vector<64x64xf32>
    %cst_237 = arith.constant dense<0.000000e+00> : vector<8x64xf32>
    %286 = tpu.matmul %276, %285, %cst_237 {dimension_numbers = #tpu.dot_dimension_numbers<[1], [0], [0], [1], [0, 0, 1, 1], [], []>} : vector<8x64xf32>, vector<64x64xf32>, vector<8x64xf32> -> vector<8x64xf32>
    %c1_238 = arith.constant 1 : index
    %c0_239 = arith.constant 0 : index
    %c0_240 = arith.constant 0 : index
    %287 = vector.load %arg4[%c1_238, %c0_239, %c0_240] : memref<3x64x64xf32, #tpu.memory_space<vmem>>, vector<1x64x64xf32>
    %288 = vector.shape_cast %287 : vector<1x64x64xf32> to vector<64x64xf32>
    %cst_241 = arith.constant dense<0.000000e+00> : vector<8x64xf32>
    %289 = tpu.matmul %277, %288, %cst_241 {dimension_numbers = #tpu.dot_dimension_numbers<[1], [0], [0], [1], [0, 0, 1, 1], [], []>} : vector<8x64xf32>, vector<64x64xf32>, vector<8x64xf32> -> vector<8x64xf32>
    %290 = arith.addf %286, %289 : vector<8x64xf32>
    %291 = arith.addf %290, %11 : vector<8x64xf32>
    %c1_242 = arith.constant 1 : index
    %c0_243 = arith.constant 0 : index
    %c0_244 = arith.constant 0 : index
    %292 = vector.load %arg3[%c1_242, %c0_243, %c0_244] : memref<2x64x64xf32, #tpu.memory_space<vmem>>, vector<1x64x64xf32>
    %293 = vector.shape_cast %292 : vector<1x64x64xf32> to vector<64x64xf32>
    %cst_245 = arith.constant dense<0.000000e+00> : vector<8x64xf32>
    %294 = tpu.matmul %277, %293, %cst_245 {dimension_numbers = #tpu.dot_dimension_numbers<[1], [0], [0], [1], [0, 0, 1, 1], [], []>} : vector<8x64xf32>, vector<64x64xf32>, vector<8x64xf32> -> vector<8x64xf32>
    %c2_246 = arith.constant 2 : index
    %c0_247 = arith.constant 0 : index
    %c0_248 = arith.constant 0 : index
    %295 = vector.load %arg4[%c2_246, %c0_247, %c0_248] : memref<3x64x64xf32, #tpu.memory_space<vmem>>, vector<1x64x64xf32>
    %296 = vector.shape_cast %295 : vector<1x64x64xf32> to vector<64x64xf32>
    %cst_249 = arith.constant dense<0.000000e+00> : vector<8x64xf32>
    %297 = tpu.matmul %278, %296, %cst_249 {dimension_numbers = #tpu.dot_dimension_numbers<[1], [0], [0], [1], [0, 0, 1, 1], [], []>} : vector<8x64xf32>, vector<64x64xf32>, vector<8x64xf32> -> vector<8x64xf32>
    %298 = arith.addf %294, %297 : vector<8x64xf32>
    %299 = arith.addf %298, %15 : vector<8x64xf32>
    %300 = tpu.concatenate %283, %291, %299 in 0 : vector<8x64xf32>, vector<8x64xf32>, vector<8x64xf32> -> vector<24x64xf32>
    %301 = math.tanh %300 : vector<24x64xf32>
    %302 = vector.extract_strided_slice %301 {offsets = [0, 0], sizes = [8, 64], strides = [1, 1]} : vector<24x64xf32> to vector<8x64xf32>
    %303 = vector.extract_strided_slice %301 {offsets = [8, 0], sizes = [8, 64], strides = [1, 1]} : vector<24x64xf32> to vector<8x64xf32>
    %304 = vector.extract_strided_slice %301 {offsets = [16, 0], sizes = [8, 64], strides = [1, 1]} : vector<24x64xf32> to vector<8x64xf32>
    %c96 = arith.constant 96 : index
    %c0_250 = arith.constant 0 : index
    %305 = vector.load %arg10[%c96, %c0_250] : memref<112x64xf32, #tpu.memory_space<vmem>>, vector<8x64xf32>
    %c0_251 = arith.constant 0 : index
    %c0_252 = arith.constant 0 : index
    %c0_253 = arith.constant 0 : index
    %306 = vector.load %arg4[%c0_251, %c0_252, %c0_253] : memref<3x64x64xf32, #tpu.memory_space<vmem>>, vector<1x64x64xf32>
    %307 = vector.shape_cast %306 : vector<1x64x64xf32> to vector<64x64xf32>
    %cst_254 = arith.constant dense<0.000000e+00> : vector<8x64xf32>
    %308 = tpu.matmul %302, %307, %cst_254 {dimension_numbers = #tpu.dot_dimension_numbers<[1], [0], [0], [1], [0, 0, 1, 1], [], []>} : vector<8x64xf32>, vector<64x64xf32>, vector<8x64xf32> -> vector<8x64xf32>
    %309 = arith.addf %305, %308 : vector<8x64xf32>
    %c0_255 = arith.constant 0 : index
    %c0_256 = arith.constant 0 : index
    %c0_257 = arith.constant 0 : index
    %310 = vector.load %arg3[%c0_255, %c0_256, %c0_257] : memref<2x64x64xf32, #tpu.memory_space<vmem>>, vector<1x64x64xf32>
    %311 = vector.shape_cast %310 : vector<1x64x64xf32> to vector<64x64xf32>
    %cst_258 = arith.constant dense<0.000000e+00> : vector<8x64xf32>
    %312 = tpu.matmul %302, %311, %cst_258 {dimension_numbers = #tpu.dot_dimension_numbers<[1], [0], [0], [1], [0, 0, 1, 1], [], []>} : vector<8x64xf32>, vector<64x64xf32>, vector<8x64xf32> -> vector<8x64xf32>
    %c1_259 = arith.constant 1 : index
    %c0_260 = arith.constant 0 : index
    %c0_261 = arith.constant 0 : index
    %313 = vector.load %arg4[%c1_259, %c0_260, %c0_261] : memref<3x64x64xf32, #tpu.memory_space<vmem>>, vector<1x64x64xf32>
    %314 = vector.shape_cast %313 : vector<1x64x64xf32> to vector<64x64xf32>
    %cst_262 = arith.constant dense<0.000000e+00> : vector<8x64xf32>
    %315 = tpu.matmul %303, %314, %cst_262 {dimension_numbers = #tpu.dot_dimension_numbers<[1], [0], [0], [1], [0, 0, 1, 1], [], []>} : vector<8x64xf32>, vector<64x64xf32>, vector<8x64xf32> -> vector<8x64xf32>
    %316 = arith.addf %312, %315 : vector<8x64xf32>
    %317 = arith.addf %316, %11 : vector<8x64xf32>
    %c1_263 = arith.constant 1 : index
    %c0_264 = arith.constant 0 : index
    %c0_265 = arith.constant 0 : index
    %318 = vector.load %arg3[%c1_263, %c0_264, %c0_265] : memref<2x64x64xf32, #tpu.memory_space<vmem>>, vector<1x64x64xf32>
    %319 = vector.shape_cast %318 : vector<1x64x64xf32> to vector<64x64xf32>
    %cst_266 = arith.constant dense<0.000000e+00> : vector<8x64xf32>
    %320 = tpu.matmul %303, %319, %cst_266 {dimension_numbers = #tpu.dot_dimension_numbers<[1], [0], [0], [1], [0, 0, 1, 1], [], []>} : vector<8x64xf32>, vector<64x64xf32>, vector<8x64xf32> -> vector<8x64xf32>
    %c2_267 = arith.constant 2 : index
    %c0_268 = arith.constant 0 : index
    %c0_269 = arith.constant 0 : index
    %321 = vector.load %arg4[%c2_267, %c0_268, %c0_269] : memref<3x64x64xf32, #tpu.memory_space<vmem>>, vector<1x64x64xf32>
    %322 = vector.shape_cast %321 : vector<1x64x64xf32> to vector<64x64xf32>
    %cst_270 = arith.constant dense<0.000000e+00> : vector<8x64xf32>
    %323 = tpu.matmul %304, %322, %cst_270 {dimension_numbers = #tpu.dot_dimension_numbers<[1], [0], [0], [1], [0, 0, 1, 1], [], []>} : vector<8x64xf32>, vector<64x64xf32>, vector<8x64xf32> -> vector<8x64xf32>
    %324 = arith.addf %320, %323 : vector<8x64xf32>
    %325 = arith.addf %324, %15 : vector<8x64xf32>
    %326 = tpu.concatenate %309, %317, %325 in 0 : vector<8x64xf32>, vector<8x64xf32>, vector<8x64xf32> -> vector<24x64xf32>
    %327 = math.tanh %326 : vector<24x64xf32>
    %328 = vector.extract_strided_slice %327 {offsets = [0, 0], sizes = [8, 64], strides = [1, 1]} : vector<24x64xf32> to vector<8x64xf32>
    %329 = vector.extract_strided_slice %327 {offsets = [8, 0], sizes = [8, 64], strides = [1, 1]} : vector<24x64xf32> to vector<8x64xf32>
    %330 = vector.extract_strided_slice %327 {offsets = [16, 0], sizes = [8, 64], strides = [1, 1]} : vector<24x64xf32> to vector<8x64xf32>
    %c104 = arith.constant 104 : index
    %c0_271 = arith.constant 0 : index
    %331 = vector.load %arg10[%c104, %c0_271] : memref<112x64xf32, #tpu.memory_space<vmem>>, vector<8x64xf32>
    %c0_272 = arith.constant 0 : index
    %c0_273 = arith.constant 0 : index
    %c0_274 = arith.constant 0 : index
    %332 = vector.load %arg4[%c0_272, %c0_273, %c0_274] : memref<3x64x64xf32, #tpu.memory_space<vmem>>, vector<1x64x64xf32>
    %333 = vector.shape_cast %332 : vector<1x64x64xf32> to vector<64x64xf32>
    %cst_275 = arith.constant dense<0.000000e+00> : vector<8x64xf32>
    %334 = tpu.matmul %328, %333, %cst_275 {dimension_numbers = #tpu.dot_dimension_numbers<[1], [0], [0], [1], [0, 0, 1, 1], [], []>} : vector<8x64xf32>, vector<64x64xf32>, vector<8x64xf32> -> vector<8x64xf32>
    %335 = arith.addf %331, %334 : vector<8x64xf32>
    %c0_276 = arith.constant 0 : index
    %c0_277 = arith.constant 0 : index
    %c0_278 = arith.constant 0 : index
    %336 = vector.load %arg3[%c0_276, %c0_277, %c0_278] : memref<2x64x64xf32, #tpu.memory_space<vmem>>, vector<1x64x64xf32>
    %337 = vector.shape_cast %336 : vector<1x64x64xf32> to vector<64x64xf32>
    %cst_279 = arith.constant dense<0.000000e+00> : vector<8x64xf32>
    %338 = tpu.matmul %328, %337, %cst_279 {dimension_numbers = #tpu.dot_dimension_numbers<[1], [0], [0], [1], [0, 0, 1, 1], [], []>} : vector<8x64xf32>, vector<64x64xf32>, vector<8x64xf32> -> vector<8x64xf32>
    %c1_280 = arith.constant 1 : index
    %c0_281 = arith.constant 0 : index
    %c0_282 = arith.constant 0 : index
    %339 = vector.load %arg4[%c1_280, %c0_281, %c0_282] : memref<3x64x64xf32, #tpu.memory_space<vmem>>, vector<1x64x64xf32>
    %340 = vector.shape_cast %339 : vector<1x64x64xf32> to vector<64x64xf32>
    %cst_283 = arith.constant dense<0.000000e+00> : vector<8x64xf32>
    %341 = tpu.matmul %329, %340, %cst_283 {dimension_numbers = #tpu.dot_dimension_numbers<[1], [0], [0], [1], [0, 0, 1, 1], [], []>} : vector<8x64xf32>, vector<64x64xf32>, vector<8x64xf32> -> vector<8x64xf32>
    %342 = arith.addf %338, %341 : vector<8x64xf32>
    %343 = arith.addf %342, %11 : vector<8x64xf32>
    %c1_284 = arith.constant 1 : index
    %c0_285 = arith.constant 0 : index
    %c0_286 = arith.constant 0 : index
    %344 = vector.load %arg3[%c1_284, %c0_285, %c0_286] : memref<2x64x64xf32, #tpu.memory_space<vmem>>, vector<1x64x64xf32>
    %345 = vector.shape_cast %344 : vector<1x64x64xf32> to vector<64x64xf32>
    %cst_287 = arith.constant dense<0.000000e+00> : vector<8x64xf32>
    %346 = tpu.matmul %329, %345, %cst_287 {dimension_numbers = #tpu.dot_dimension_numbers<[1], [0], [0], [1], [0, 0, 1, 1], [], []>} : vector<8x64xf32>, vector<64x64xf32>, vector<8x64xf32> -> vector<8x64xf32>
    %c2_288 = arith.constant 2 : index
    %c0_289 = arith.constant 0 : index
    %c0_290 = arith.constant 0 : index
    %347 = vector.load %arg4[%c2_288, %c0_289, %c0_290] : memref<3x64x64xf32, #tpu.memory_space<vmem>>, vector<1x64x64xf32>
    %348 = vector.shape_cast %347 : vector<1x64x64xf32> to vector<64x64xf32>
    %cst_291 = arith.constant dense<0.000000e+00> : vector<8x64xf32>
    %349 = tpu.matmul %330, %348, %cst_291 {dimension_numbers = #tpu.dot_dimension_numbers<[1], [0], [0], [1], [0, 0, 1, 1], [], []>} : vector<8x64xf32>, vector<64x64xf32>, vector<8x64xf32> -> vector<8x64xf32>
    %350 = arith.addf %346, %349 : vector<8x64xf32>
    %351 = arith.addf %350, %15 : vector<8x64xf32>
    %352 = tpu.concatenate %335, %343, %351 in 0 : vector<8x64xf32>, vector<8x64xf32>, vector<8x64xf32> -> vector<24x64xf32>
    %353 = math.tanh %352 : vector<24x64xf32>
    %354 = vector.extract_strided_slice %353 {offsets = [0, 0], sizes = [8, 64], strides = [1, 1]} : vector<24x64xf32> to vector<8x64xf32>
    %355 = vector.extract_strided_slice %353 {offsets = [8, 0], sizes = [8, 64], strides = [1, 1]} : vector<24x64xf32> to vector<8x64xf32>
    %356 = vector.extract_strided_slice %353 {offsets = [16, 0], sizes = [8, 64], strides = [1, 1]} : vector<24x64xf32> to vector<8x64xf32>
    %c0_292 = arith.constant 0 : index
    %c0_293 = arith.constant 0 : index
    %c0_294 = arith.constant 0 : index
    %357 = vector.load %arg3[%c0_292, %c0_293, %c0_294] : memref<2x64x64xf32, #tpu.memory_space<vmem>>, vector<1x64x64xf32>
    %358 = vector.shape_cast %357 : vector<1x64x64xf32> to vector<64x64xf32>
    %cst_295 = arith.constant dense<0.000000e+00> : vector<8x64xf32>
    %359 = tpu.matmul %354, %358, %cst_295 {dimension_numbers = #tpu.dot_dimension_numbers<[1], [0], [0], [1], [0, 0, 1, 1], [], []>} : vector<8x64xf32>, vector<64x64xf32>, vector<8x64xf32> -> vector<8x64xf32>
    %c1_296 = arith.constant 1 : index
    %c0_297 = arith.constant 0 : index
    %c0_298 = arith.constant 0 : index
    %360 = vector.load %arg4[%c1_296, %c0_297, %c0_298] : memref<3x64x64xf32, #tpu.memory_space<vmem>>, vector<1x64x64xf32>
    %361 = vector.shape_cast %360 : vector<1x64x64xf32> to vector<64x64xf32>
    %cst_299 = arith.constant dense<0.000000e+00> : vector<8x64xf32>
    %362 = tpu.matmul %355, %361, %cst_299 {dimension_numbers = #tpu.dot_dimension_numbers<[1], [0], [0], [1], [0, 0, 1, 1], [], []>} : vector<8x64xf32>, vector<64x64xf32>, vector<8x64xf32> -> vector<8x64xf32>
    %363 = arith.addf %359, %362 : vector<8x64xf32>
    %364 = arith.addf %363, %11 : vector<8x64xf32>
    %c1_300 = arith.constant 1 : index
    %c0_301 = arith.constant 0 : index
    %c0_302 = arith.constant 0 : index
    %365 = vector.load %arg3[%c1_300, %c0_301, %c0_302] : memref<2x64x64xf32, #tpu.memory_space<vmem>>, vector<1x64x64xf32>
    %366 = vector.shape_cast %365 : vector<1x64x64xf32> to vector<64x64xf32>
    %cst_303 = arith.constant dense<0.000000e+00> : vector<8x64xf32>
    %367 = tpu.matmul %355, %366, %cst_303 {dimension_numbers = #tpu.dot_dimension_numbers<[1], [0], [0], [1], [0, 0, 1, 1], [], []>} : vector<8x64xf32>, vector<64x64xf32>, vector<8x64xf32> -> vector<8x64xf32>
    %c2_304 = arith.constant 2 : index
    %c0_305 = arith.constant 0 : index
    %c0_306 = arith.constant 0 : index
    %368 = vector.load %arg4[%c2_304, %c0_305, %c0_306] : memref<3x64x64xf32, #tpu.memory_space<vmem>>, vector<1x64x64xf32>
    %369 = vector.shape_cast %368 : vector<1x64x64xf32> to vector<64x64xf32>
    %cst_307 = arith.constant dense<0.000000e+00> : vector<8x64xf32>
    %370 = tpu.matmul %356, %369, %cst_307 {dimension_numbers = #tpu.dot_dimension_numbers<[1], [0], [0], [1], [0, 0, 1, 1], [], []>} : vector<8x64xf32>, vector<64x64xf32>, vector<8x64xf32> -> vector<8x64xf32>
    %371 = arith.addf %367, %370 : vector<8x64xf32>
    %372 = arith.addf %371, %15 : vector<8x64xf32>
    %373 = tpu.concatenate %364, %372 in 0 : vector<8x64xf32>, vector<8x64xf32> -> vector<16x64xf32>
    %374 = math.tanh %373 : vector<16x64xf32>
    %375 = vector.extract_strided_slice %374 {offsets = [0, 0], sizes = [8, 64], strides = [1, 1]} : vector<16x64xf32> to vector<8x64xf32>
    %376 = vector.extract_strided_slice %374 {offsets = [8, 0], sizes = [8, 64], strides = [1, 1]} : vector<16x64xf32> to vector<8x64xf32>
    %c1_308 = arith.constant 1 : index
    %c0_309 = arith.constant 0 : index
    %c0_310 = arith.constant 0 : index
    %377 = vector.load %arg3[%c1_308, %c0_309, %c0_310] : memref<2x64x64xf32, #tpu.memory_space<vmem>>, vector<1x64x64xf32>
    %378 = vector.shape_cast %377 : vector<1x64x64xf32> to vector<64x64xf32>
    %cst_311 = arith.constant dense<0.000000e+00> : vector<8x64xf32>
    %379 = tpu.matmul %375, %378, %cst_311 {dimension_numbers = #tpu.dot_dimension_numbers<[1], [0], [0], [1], [0, 0, 1, 1], [], []>} : vector<8x64xf32>, vector<64x64xf32>, vector<8x64xf32> -> vector<8x64xf32>
    %c2_312 = arith.constant 2 : index
    %c0_313 = arith.constant 0 : index
    %c0_314 = arith.constant 0 : index
    %380 = vector.load %arg4[%c2_312, %c0_313, %c0_314] : memref<3x64x64xf32, #tpu.memory_space<vmem>>, vector<1x64x64xf32>
    %381 = vector.shape_cast %380 : vector<1x64x64xf32> to vector<64x64xf32>
    %cst_315 = arith.constant dense<0.000000e+00> : vector<8x64xf32>
    %382 = tpu.matmul %376, %381, %cst_315 {dimension_numbers = #tpu.dot_dimension_numbers<[1], [0], [0], [1], [0, 0, 1, 1], [], []>} : vector<8x64xf32>, vector<64x64xf32>, vector<8x64xf32> -> vector<8x64xf32>
    %383 = arith.addf %379, %382 : vector<8x64xf32>
    %384 = arith.addf %383, %15 : vector<8x64xf32>
    %385 = math.tanh %384 : vector<8x64xf32>
    %c0_316 = arith.constant 0 : index
    %c0_317 = arith.constant 0 : index
    %386 = vector.load %arg6[%c0_316, %c0_317] : memref<64x128xf32, #tpu.memory_space<vmem>>, vector<64x128xf32>
    %cst_318 = arith.constant dense<0.000000e+00> : vector<8x128xf32>
    %387 = tpu.matmul %385, %386, %cst_318 {dimension_numbers = #tpu.dot_dimension_numbers<[1], [0], [0], [1], [0, 0, 1, 1], [], []>} : vector<8x64xf32>, vector<64x128xf32>, vector<8x128xf32> -> vector<8x128xf32>
    %c0_319 = arith.constant 0 : index
    %c0_320 = arith.constant 0 : index
    %388 = vector.load %arg7[%c0_319, %c0_320] : memref<1x128xf32, #tpu.memory_space<vmem>>, vector<1x128xf32>
    %389 = vector.broadcast %388 : vector<1x128xf32> to vector<8x128xf32>
    %390 = arith.addf %387, %389 : vector<8x128xf32>
    %c0_321 = arith.constant 0 : index
    %c0_322 = arith.constant 0 : index
    %391 = vector.load %arg8[%c0_321, %c0_322] : memref<8x128xf32, #tpu.memory_space<vmem>>, vector<8x128xf32>
    tpu.vector_store %arg8[%c0_321, %c0_322], %390 {strides = array<i32>} : memref<8x128xf32, #tpu.memory_space<vmem>>, vector<8x128xf32>,
    %c0_323 = arith.constant 0 : index
    %c0_324 = arith.constant 0 : index
    %c0_325 = arith.constant 0 : index
    %392 = vector.load %arg9[%c0_323, %c0_324, %c0_325] : memref<3x8x64xf32, #tpu.memory_space<vmem>>, vector<1x8x64xf32>
    %393 = vector.shape_cast %392 : vector<1x8x64xf32> to vector<8x64xf32>
    %394 = vector.shape_cast %354 : vector<8x64xf32> to vector<1x8x64xf32>
    tpu.vector_store %arg9[%c0_323, %c0_324, %c0_325], %394 {strides = array<i32>} : memref<3x8x64xf32, #tpu.memory_space<vmem>>, vector<1x8x64xf32>,
    %c1_326 = arith.constant 1 : index
    %c0_327 = arith.constant 0 : index
    %c0_328 = arith.constant 0 : index
    %395 = vector.load %arg9[%c1_326, %c0_327, %c0_328] : memref<3x8x64xf32, #tpu.memory_space<vmem>>, vector<1x8x64xf32>
    %396 = vector.shape_cast %395 : vector<1x8x64xf32> to vector<8x64xf32>
    %397 = vector.shape_cast %375 : vector<8x64xf32> to vector<1x8x64xf32>
    tpu.vector_store %arg9[%c1_326, %c0_327, %c0_328], %397 {strides = array<i32>} : memref<3x8x64xf32, #tpu.memory_space<vmem>>, vector<1x8x64xf32>,
    %c2_329 = arith.constant 2 : index
    %c0_330 = arith.constant 0 : index
    %c0_331 = arith.constant 0 : index
    %398 = vector.load %arg9[%c2_329, %c0_330, %c0_331] : memref<3x8x64xf32, #tpu.memory_space<vmem>>, vector<1x8x64xf32>
    %399 = vector.shape_cast %398 : vector<1x8x64xf32> to vector<8x64xf32>
    %400 = vector.shape_cast %385 : vector<8x64xf32> to vector<1x8x64xf32>
    tpu.vector_store %arg9[%c2_329, %c0_330, %c0_331], %400 {strides = array<i32>} : memref<3x8x64xf32, #tpu.memory_space<vmem>>, vector<1x8x64xf32>,
    return
  }
}

</mosaic_0001>

<bundles_post_ra>
// kernel: rnn_forward.1
= control target key start
LH: loop header
LB: loop body
LE: loop exit
PB: predicated region body
PF: predicated region fallthrough
CT: control target
= control target key end

     0   :  { %15 = vsyncpa [#allocation4], 0  ;;  %s10039_s0 = inlined_call_operand.hbm [shape: f32[112,24], index: 0, kind: input, shape index: {}]   ;;  %s10040_s1 = inlined_call_operand.hbm [shape: f32[3,8,64], index: 1, kind: input, shape index: {}]   ;;  %s10041_s2 = inlined_call_operand.hbm [shape: f32[24,64], index: 2, kind: input, shape index: {}]   ;;  %s10042_s3 = inlined_call_operand.hbm [shape: f32[2,64,64], index: 3, kind: input, shape index: {}]   ;;  %s10043_s4 = inlined_call_operand.hbm [shape: f32[3,64,64], index: 4, kind: input, shape index: {}]   ;;  %s10044_s5 = inlined_call_operand.vmem [shape: f32[3,1,64], index: 5, kind: input, shape index: {}]   ;;  %s10045_s6 = inlined_call_operand.hbm [shape: f32[64,128], index: 6, kind: input, shape index: {}]   ;;  %s10046_s7 = inlined_call_operand.vmem [shape: f32[1,128], index: 7, kind: input, shape index: {}]   ;;  %s10047_s8 = inlined_call_operand.hbm [shape: f32[8,128], index: 8, kind: output, shape index: {0}]   ;;  %s10048_s9 = inlined_call_operand.hbm [shape: f32[3,8,64], index: 9, kind: output, shape index: {1}]  }
   0x1   :  { %16 = vsyncpa [#allocation7], 0 }
   0x2   :  { %17 = vsyncpa [#allocation10], 0 }
   0x3   :  { %18 = vsyncpa [#allocation13], 0 }
   0x4   :  { %19 = vsyncpa [#allocation5], 0 }
   0x5   :  { %20 = vsyncpa [#allocation16], 0  ;;  %s8920_s30 = smov [#allocation6]   ;;  %s8921_s11 = smov [#allocation9]  }
   0x6   :  { %s38_s10 = sshll.u32 %s8920_s30, 4  ;;  %s62_s12 = sshll.u32 %s8921_s11, 4  ;;  %s39_s10 = int_to_ptr.vmem [resolvable:$true] %s38_s10  ;;  %s8983_s12 = int_to_ptr.vmem [resolvable:$true] %s62_s12 }
   0x7   :  { %s8732_s15 = scalar_lea.hbm %s10040_s1, 384 }
   0x8   :  { %p8733_p0 = scmp.ne.s32.totalorder %s10040_s1, %s8732_s15  ;;  %p8736_p1 = scmp.lt.u32.totalorder %s8732_s15, %s10040_s1 }
   0xa   :  { %p8738_p2 = pnand %p8736_p1, %p8733_p0 }
   0xc   :  { %8741 = shalt.err (!%p8738_p2)
}
   0xd   :  { %s8742_s20 = scalar_lea.vmem %s39_s10, 384  ;;  %p8747_p4 = scmp.lt.s32.totalorder %s39_s10, %s39_s10 }
   0xe   :  { %p8743_p3 = scmp.ne.s32.totalorder %s39_s10, %s8742_s20  ;;  %p8748_p5 = scmp.lt.s32.totalorder %s8742_s20, %s8742_s20 }
  0x10   :  { %p8749_p6 = por %p8748_p5, %p8747_p4 }
  0x12   :  { %p8750_p7 = pnand %p8749_p6, %p8743_p3 }
  0x14   :  { %8753 = shalt.err (!%p8750_p7)
}
  0x15   :  { %s8922_s21 = smov 128   ;;  %s8923_s22 = smov 8  }
  0x16   :  { %44 = dma.hbm_to_vmem [thread:$0]  %s10040_s1, 384, %s39_s10, [#allocation7], %s8922_s21, %s8922_s21, %s8923_s22  }
  0x17   :  { %s8754_s27 = scalar_lea.hbm %s10042_s3, 2048 }
  0x18   :  { %p8755_p8 = scmp.ne.s32.totalorder %s10042_s3, %s8754_s27  ;;  %p8758_p9 = scmp.lt.u32.totalorder %s8754_s27, %s10042_s3 }
  0x1a   :  { %p8760_p10 = pnand %p8758_p9, %p8755_p8 }
  0x1c   :  { %8763 = shalt.err (!%p8760_p10)
}
  0x1d   :  { %s8764_s13 = scalar_lea.vmem %s8983_s12, 2048  ;;  %p8769_p12 = scmp.lt.s32.totalorder %s8983_s12, %s8983_s12 }
  0x1e   :  { %p8765_p11 = scmp.ne.s32.totalorder %s8983_s12, %s8764_s13  ;;  %p8770_p13 = scmp.lt.s32.totalorder %s8764_s13, %s8764_s13 }
  0x20   :  { %p8771_p0 = por %p8770_p13, %p8769_p12 }
  0x22   :  { %p8772_p1 = pnand %p8771_p0, %p8765_p11 }
  0x24   :  { %8775 = shalt.err (!%p8772_p1)
}
  0x25   :  { %68 = dma.hbm_to_vmem [thread:$0]  %s10042_s3, 2048, %s8983_s12, [#allocation10], %s8922_s21, %s8922_s21, %s8923_s22  }
  0x26   :  { %s8924_s14 = smov [#allocation3]   ;;  %s8925_s16 = smov [#allocation8]  }
  0x27   :  { %s26_s15 = sshll.u32 %s8924_s14, 4  ;;  %s50_s17 = sshll.u32 %s8925_s16, 4  ;;  %s27_s15 = int_to_ptr.vmem [resolvable:$true] %s26_s15  ;;  %s9020_s17 = int_to_ptr.vmem [resolvable:$true] %s50_s17 }
  0x28   :  { %s8776_s20 = scalar_lea.hbm %s10039_s0, 1792 }
  0x29   :  { %p8777_p2 = scmp.ne.s32.totalorder %s10039_s0, %s8776_s20  ;;  %p8780_p3 = scmp.lt.u32.totalorder %s8776_s20, %s10039_s0 }
  0x2b   :  { %p8782_p4 = pnand %p8780_p3, %p8777_p2 }
  0x2d   :  { %8785 = shalt.err (!%p8782_p4)
}
  0x2e   :  { %s8786_s3 = scalar_lea.vmem %s27_s15, 1792  ;;  %p8791_p6 = scmp.lt.s32.totalorder %s27_s15, %s27_s15 }
  0x2f   :  { %p8787_p5 = scmp.ne.s32.totalorder %s27_s15, %s8786_s3  ;;  %p8792_p7 = scmp.lt.s32.totalorder %s8786_s3, %s8786_s3 }
  0x31   :  { %p8793_p8 = por %p8792_p7, %p8791_p6 }
  0x33   :  { %p8794_p9 = pnand %p8793_p8, %p8787_p5 }
  0x35   :  { %8797 = shalt.err (!%p8794_p9)
}
  0x36   :  { %32 = dma.hbm_to_vmem [thread:$0]  %s10039_s0, 1792, %s27_s15, [#allocation4], %s8922_s21, %s8922_s21, %s8923_s22  }
  0x37   :  { %s8798_s30 = scalar_lea.hbm %s10041_s2, 384 }
  0x38   :  { %p8799_p10 = scmp.ne.s32.totalorder %s10041_s2, %s8798_s30  ;;  %p8802_p11 = scmp.lt.u32.totalorder %s8798_s30, %s10041_s2 }
  0x3a   :  { %p8804_p12 = pnand %p8802_p11, %p8799_p10 }
  0x3c   :  { %8807 = shalt.err (!%p8804_p12)
}
  0x3d   :  { %s8808_s14 = scalar_lea.vmem %s9020_s17, 384  ;;  %p8813_p0 = scmp.lt.s32.totalorder %s9020_s17, %s9020_s17 }
  0x3e   :  { %p8809_p13 = scmp.ne.s32.totalorder %s9020_s17, %s8808_s14  ;;  %p8814_p1 = scmp.lt.s32.totalorder %s8808_s14, %s8808_s14 }
  0x40   :  { %p8815_p2 = por %p8814_p1, %p8813_p0 }
  0x42   :  { %p8816_p3 = pnand %p8815_p2, %p8809_p13 }
  0x44   :  { %8819 = shalt.err (!%p8816_p3)
}
  0x45   :  { %56 = dma.hbm_to_vmem [thread:$0]  %s10041_s2, 384, %s9020_s17, [#allocation7], %s8922_s21, %s8922_s21, %s8923_s22  }
  0x46   :  { %s8926_s16 = smov [#allocation11]   ;;  %s8927_s19 = smov [#allocation12]  }
  0x47   :  { %s74_s18 = sshll.u32 %s8926_s16, 4  ;;  %s88_s20 = sshll.u32 %s8927_s19, 4  ;;  %s75_s18 = int_to_ptr.vmem [resolvable:$true] %s74_s18  ;;  %s9057_s20 = int_to_ptr.vmem [resolvable:$true] %s88_s20 }
  0x48   :  { %s8820_s25 = scalar_lea.hbm %s10043_s4, 3072 }
  0x49   :  { %p8821_p4 = scmp.ne.s32.totalorder %s10043_s4, %s8820_s25  ;;  %p8824_p5 = scmp.lt.u32.totalorder %s8820_s25, %s10043_s4 }
  0x4b   :  { %p8826_p6 = pnand %p8824_p5, %p8821_p4 }
  0x4d   :  { %8829 = shalt.err (!%p8826_p6)
}
  0x4e   :  { %s8830_s2 = scalar_lea.vmem %s75_s18, 3072  ;;  %p8835_p8 = scmp.lt.s32.totalorder %s75_s18, %s75_s18 }
  0x4f   :  { %p8831_p7 = scmp.ne.s32.totalorder %s75_s18, %s8830_s2  ;;  %p8836_p9 = scmp.lt.s32.totalorder %s8830_s2, %s8830_s2 }
  0x51   :  { %p8837_p10 = por %p8836_p9, %p8835_p8 }
  0x53   :  { %p8838_p11 = pnand %p8837_p10, %p8831_p7 }
  0x55   :  { %8841 = shalt.err (!%p8838_p11)
}
  0x56   :  { %80 = dma.hbm_to_vmem [thread:$0]  %s10043_s4, 3072, %s75_s18, [#allocation10], %s8922_s21, %s8922_s21, %s8923_s22  }
  0x57   :  { %s8842_s11 = scalar_lea.hbm %s10045_s6, 1024 }
  0x58   :  { %p8843_p12 = scmp.ne.s32.totalorder %s10045_s6, %s8842_s11  ;;  %p8846_p13 = scmp.lt.u32.totalorder %s8842_s11, %s10045_s6 }
  0x5a   :  { %p8848_p0 = pnand %p8846_p13, %p8843_p12 }
  0x5c   :  { %8851 = shalt.err (!%p8848_p0)
}
  0x5d   :  { %s8852_s0 = scalar_lea.vmem %s9057_s20, 1024  ;;  %p8857_p2 = scmp.lt.s32.totalorder %s9057_s20, %s9057_s20 }
  0x5e   :  { %p8853_p1 = scmp.ne.s32.totalorder %s9057_s20, %s8852_s0  ;;  %p8858_p3 = scmp.lt.s32.totalorder %s8852_s0, %s8852_s0 }
  0x60   :  { %p8859_p4 = por %p8858_p3, %p8857_p2 }
  0x62   :  { %p8860_p5 = pnand %p8859_p4, %p8853_p1 }
  0x64   :  { %8863 = shalt.err (!%p8860_p5)
}
  0x65   :  { %94 = dma.hbm_to_vmem [thread:$0]  %s10045_s6, 1024, %s9057_s20, [#allocation13], %s8922_s21, %s8922_s21, %s8923_s22  }
  0x66   :  { %8908 = dma.done.wait [#allocation4], 1792  }
  0x67   :  { %8909 = vsyncadd [#allocation4], 4294965504 }
  0x68   :  { %8910 = dma.done.wait [#allocation7], 768  }
  0x69   :  { %8911 = vsyncadd [#allocation7], 4294966528 }
  0x6a   :  { %8912 = dma.done.wait [#allocation10], 5120  }
  0x6b   :  { %8913 = vsyncadd [#allocation10], 4294962176 }
  0x6c   :  { %8914 = dma.done.wait [#allocation13], 1024  }
  0x6d   :  { %8915 = vsyncadd [#allocation13], 4294966272  ;;  %v8928_v0 = vmov 0.0|0.0   ;;  %vm8929_vm0 = vmmov 0   ;;  %v8930_v1 = vmov 0.0   ;;  %vm139_vm1 = vcmask 195584  }
  0x6e   :  { %7781 = vmatprep.subr.bf16.mxu1 %v8928_v0  ;;  %6444 = vmatprep.mubr.msk.f32.mxu1 %vm8929_vm0, %v8930_v1  ;;  %v129_v2 = vld [vmem:[#allocation8] sm:$0xff]  ;;  %v130_v3 = vld [vmem:[#allocation8 + $0x8] sm:$0xff]  ;;  %v354_v4 = vld [vmem:[#allocation11] sm:$0xff]  ;;  %vm317_vm2 = vcmask 523264  }
  0x6f   :  { %v7777_v5 = vpack.c.bf16 %v130_v3, %v129_v2  ;;  %v355_v6 = vld [vmem:[#allocation11 + $0x8] sm:$0xff]  ;;  %v115_v7 = vld [vmem:[#allocation3] sm:$0xff]  ;;  %v131_v9 = vld [vmem:[#allocation8 + $0x10] sm:$0xff] }
  0x70   :  { %v9097_v8 = vpack.c.bf16 %v355_v6, %v354_v4  ;;  %6407 = vmatprep.mubr.msk.f32.mxu0 %vm139_vm1, %v115_v7  ;;  %v356_v10 = vld [vmem:[#allocation11 + $0x10] sm:$0xff]  ;;  %v357_v11 = vld [vmem:[#allocation11 + $0x18] sm:$0xff]  ;;  %v358_v13 = vld [vmem:[#allocation11 + $0x20] sm:$0xff] }
  0x71   :  { %7778 = vmatprep.subr.bf16.mxu0 %v7777_v5  ;;  %v9101_v12 = vpack.c.bf16 %v357_v11, %v356_v10  ;;  %v359_v14 = vld [vmem:[#allocation11 + $0x28] sm:$0xff]  ;;  %v360_v17 = vld [vmem:[#allocation11 + $0x30] sm:$0xff]  ;;  %v361_v18 = vld [vmem:[#allocation11 + $0x38] sm:$0xff] }
  0x72   :  { %7780 = vmatpush3.bf16.msra.mxu0 %v7777_v5  ;;  %7783 = vmatpush3.bf16.msra.mxu1 %v9097_v8  ;;  %v116_v15 = vld [vmem:[#allocation3 + $0x8] sm:$0xff]  ;;  %v9105_v16 = vpack.c.bf16 %v359_v14, %v358_v13  ;;  %v9111_v19 = vpack.c.bf16 %v361_v18, %v360_v17  ;;  %v348_v20 = vld [vmem:[#allocation6] sm:$0xff]  ;;  %v521_v22 = vld [vmem:[#allocation11 + $0x40] sm:$0xff] }
  0x73   :  { %6405 = vmatprep.subr.mxu0 %v131_v9  ;;  %7784 = vmatprep.subr.bf16.mxu1 %v8928_v0  ;;  %v117_v21 = vld [vmem:[#allocation3 + $0x10] sm:$0xff]  ;;  %v522_v23 = vld [vmem:[#allocation11 + $0x48] sm:$0xff]  ;;  %v118_v24 = vld [vmem:[#allocation3 + $0x18] sm:$0xff] }
  0x74   :  { %v9128_v25 = vpack.c.bf16 %v522_v23, %v521_v22  ;;  %v119_v26 = vld [vmem:[#allocation3 + $0x20] sm:$0xff]  ;;  %v523_v27 = vld [vmem:[#allocation11 + $0x50] sm:$0xff]  ;;  %v120_v28 = vld [vmem:[#allocation3 + $0x28] sm:$0xff] }
  0x75   :  { %v524_v29 = vld [vmem:[#allocation11 + $0x58] sm:$0xff]  ;;  %v121_v31 = vld [vmem:[#allocation3 + $0x30] sm:$0xff]  ;;  %v123_v33 = vld [vmem:[#allocation3 + $0x40] sm:$0xff] }
  0x76   :  { %6406 = vmatpush3.msra.mxu0 %v131_v9  ;;  %7786 = vmatpush3.bf16.msra.mxu1 %v9101_v12  ;;  %v9133_v30 = vpack.c.bf16 %v524_v29, %v523_v27  ;;  %v122_v32 = vld [vmem:[#allocation3 + $0x38] sm:$0xff]  ;;  %v525_v34 = vld [vmem:[#allocation11 + $0x60] sm:$0xff]  ;;  %v526_v35 = vld [vmem:[#allocation11 + $0x68] sm:$0xff] }
  0x77   :  { %6408 = vmatmul.mubr.msk.f32.vlgmr.msra.gmra.mrb[0].mxu0 %vm139_vm1, %v116_v15  ;;  %7787 = vmatprep.subr.bf16.mxu1 %v8928_v0  ;;  %v9142_v36 = vpack.c.bf16 %v526_v35, %v525_v34  ;;  %v124_v37 = vld [vmem:[#allocation3 + $0x48] sm:$0xff]  ;;  %v125_v38 = vld [vmem:[#allocation3 + $0x50] sm:$0xff]  ;;  %v126_v39 = vld [vmem:[#allocation3 + $0x58] sm:$0xff] }
  0x78   :  { %7805 = vmatprep.subr.bf16.mxu0 %v8928_v0  ;;  %6410 = vmatprep.mubr.msk.f32.mxu0 %vm139_vm1, %v117_v21  ;;  %v527_v40 = vld [vmem:[#allocation11 + $0x70] sm:$0xff]  ;;  %v528_v41 = vld [vmem:[#allocation11 + $0x78] sm:$0xff]  ;;  %v127_v43 = vld [vmem:[#allocation3 + $0x60] sm:$0xff] }
  0x79   :  { %7807 = vmatpush3.bf16.msra.mxu0 %v9128_v25  ;;  %v9149_v42 = vpack.c.bf16 %v528_v41, %v527_v40  ;;  %v128_v44 = vld [vmem:[#allocation3 + $0x68] sm:$0xff]  ;;  %v350_v45 = vld [vmem:[#allocation6 + $0x8] sm:$0xff]  ;;  %v9171_v46 = vld [vmem:[%s10044_s5] ss:$0 sm:$0xff] }
  0x7a   :  { %7789 = vmatpush3.bf16.msra.mxu1 %v9105_v16  ;;  %7808 = vmatprep.subr.bf16.mxu0 %v8928_v0  ;;  %v512_v55 = vld [vmem:[#allocation9] sm:$0xff]  ;;  %v513_v56 = vld [vmem:[#allocation9 + $0x8] sm:$0xff]  ;;  %v514_v58 = vld [vmem:[#allocation9 + $0x10] sm:$0xff] }
  0x7b   :  { %7790 = vmatprep.subr.bf16.mxu1 %v8928_v0  ;;  %6411 = vmatmul.mubr.msk.f32.gmra.mrb[2].mxu0 %vm139_vm1, %v118_v24  ;;  %v9177_v57 = vpack.c.bf16 %v513_v56, %v512_v55  ;;  %v515_v59 = vld [vmem:[#allocation9 + $0x18] sm:$0xff]  ;;  %v516_v62 = vld [vmem:[#allocation9 + $0x20] sm:$0xff]  ;;  %v517_v63 = vld [vmem:[#allocation9 + $0x28] sm:$0xff] }
  0x7c   :  { %6413 = vmatprep.mubr.msk.f32.mxu0 %vm139_vm1, %v119_v26  ;;  %v9181_v61 = vpack.c.bf16 %v515_v59, %v514_v58  ;;  %v9187_v2 = vpack.c.bf16 %v517_v63, %v516_v62  ;;  %v518_v3 = vld [vmem:[#allocation9 + $0x30] sm:$0xff]  ;;  %v519_v4 = vld [vmem:[#allocation9 + $0x38] sm:$0xff] }
  0x7d   :  { %7810 = vmatpush3.bf16.msra.mxu0 %v9133_v30  ;;  %v9191_v5 = vpack.c.bf16 %v519_v4, %v518_v3  ;;  %v897_v55 = vld [vmem:[#allocation9 + $0x50] sm:$0xff]  ;;  %v898_v56 = vld [vmem:[#allocation9 + $0x58] sm:$0xff]  ;;  %v899_v3 = vld [vmem:[#allocation9 + $0x60] sm:$0xff] }
  0x7e   :  { %7792 = vmatpush3.bf16.msra.mxu1 %v9111_v19  ;;  %7811 = vmatprep.subr.bf16.mxu0 %v8928_v0  ;;  %v906_v59 = vld [vmem:[#allocation11 + $0x90] sm:$0xff]  ;;  %v9254_v63 = vpack.c.bf16 %v898_v56, %v897_v55  ;;  %v900_v4 = vld [vmem:[#allocation9 + $0x68] sm:$0xff] }
  0x7f   :  { %7793 = vmatprep.subr.bf16.mxu1 %v8928_v0  ;;  %6414 = vmatmul.mubr.msk.f32.gmra.mrb[4].mxu0 %vm139_vm1, %v120_v28 }
  0x80   :  { %6416 = vmatprep.mubr.msk.f32.mxu0 %vm139_vm1, %v121_v31 }
  0x81   :  { %6445 = vmatmul.mubr.msk.f32.vlgmr.msra.gmra.mrb[0].mxu1 %vm317_vm2, %v348_v20  ;;  %7813 = vmatpush3.bf16.msra.mxu0 %v9142_v36 }
  0x82   :  { %7795 = vmatpush3.bf16.msra.mxu1 %v9097_v8  ;;  %6463 = vmatprep.mubr.msk.f32.mxu1 %vm8929_vm0, %v8930_v1 }
  0x83   :  { %7796 = vmatprep.subr.bf16.mxu1 %v8928_v0  ;;  %6417 = vmatmul.mubr.msk.f32.gmra.mrb[6].mxu0 %vm139_vm1, %v122_v32 }
  0x84   :  { %6419 = vmatprep.mubr.msk.f32.mxu0 %vm139_vm1, %v123_v33  ;;  %7814 = vmatprep.subr.bf16.mxu0 %v8928_v0 }
  0x85   :  { %7816 = vmatpush3.bf16.msra.mxu0 %v9149_v42 }
  0x86   :  { %7798 = vmatpush3.bf16.msra.mxu1 %v9101_v12  ;;  %7829 = vmatprep.subr.bf16.mxu0 %v8928_v0 }
  0x87   :  { %7799 = vmatprep.subr.bf16.mxu1 %v8928_v0  ;;  %6420 = vmatmul.mubr.msk.f32.gmra.mrb[8].mxu0 %vm139_vm1, %v124_v37 }
  0x88   :  { %6422 = vmatprep.mubr.msk.f32.mxu0 %vm139_vm1, %v125_v38 }
  0x8a   :  { %7801 = vmatpush3.bf16.msra.mxu1 %v9105_v16 }
  0x8b   :  { %7802 = vmatprep.subr.bf16.mxu1 %v8928_v0  ;;  %6423 = vmatmul.mubr.msk.f32.gmra.mrb[10].mxu0 %vm139_vm1, %v126_v39 }
  0x8c   :  { %6425 = vmatprep.mubr.msk.f32.mxu0 %vm139_vm1, %v127_v43 }
  0x8e   :  { %7804 = vmatpush3.bf16.msra.mxu1 %v9111_v19 }
  0x8f   :  { %7817 = vmatprep.subr.bf16.mxu1 %v8928_v0  ;;  %6426 = vmatmul.mubr.msk.f32.gmra.mrb[12].mxu0 %vm139_vm1, %v128_v44 }
  0x90   :  { %6482 = vmatprep.mubr.msk.f32.mxu0 %vm8929_vm0, %v8930_v1 }
  0x93   :  { %6483 = vmatmul.mubr.msk.f32.vlgmr.msra.gmra.mrb[14].mxu0 %vm317_vm2, %v350_v45  ;;  %v9238_v45 = vld [vmem:[%s10044_s5 + $0x1] ss:$0 sm:$0xff] }
  0x94   :  { %7831 = vmatpush3.bf16.msra.mxu0 %v9097_v8  ;;  %6520 = vmatprep.mubr.msk.f32.mxu0 %vm8929_vm0, %v8930_v1 }
  0x95   :  { %7832 = vmatprep.subr.bf16.mxu0 %v8928_v0 }
  0x98   :  { %7834 = vmatpush3.bf16.msra.mxu0 %v9101_v12 }
  0x99   :  { %7835 = vmatprep.subr.bf16.mxu0 %v8928_v0 }
  0x9c   :  { %7837 = vmatpush3.bf16.msra.mxu0 %v9105_v16 }
  0x9d   :  { %7838 = vmatprep.subr.bf16.mxu0 %v8928_v0 }
  0xa0   :  { %7840 = vmatpush3.bf16.msra.mxu0 %v9111_v19 }
  0xa1   :  { %7853 = vmatprep.subr.bf16.mxu0 %v8928_v0 }
 0x14a   :  { %v6409_v47 = vpop.f32.mrb[0].mxu0 }
 0x14b   :  { %v254_v48 = vadd.f32 %v6409_v47, %v9171_v46  ;;  %v248_v49 = vpop.f32.mrb[1].mxu0 }
 0x14c   :  { %v249_v50 = vadd.f32 %v9171_v46, %v248_v49 }
 0x14d   :  { %319 = vst.msk [vmem:[#allocation2 + $0x8] sm:$0xff] %vm317_vm2, %v254_v48 }
 0x14e   :  { %318 = vst.msk [vmem:[#allocation2] sm:$0xff] %vm317_vm2, %v249_v50  ;;  %v6412_v6 = vpop.f32.mrb[2].mxu0  ;;  %v895_v50 = vld [vmem:[#allocation9 + $0x40] sm:$0xff] }
 0x14f   :  { %v264_v7 = vadd.f32 %v6412_v6, %v9171_v46  ;;  %v258_v9 = vpop.f32.mrb[3].mxu0 }
 0x150   :  { %v259_v10 = vadd.f32 %v9171_v46, %v258_v9  ;;  %v909_v9 = vld [vmem:[#allocation11 + $0xa8] sm:$0xff] }
 0x151   :  { %321 = vst.msk [vmem:[#allocation2 + $0x18] sm:$0xff] %vm317_vm2, %v264_v7  ;;  %v908_v7 = vld [vmem:[#allocation11 + $0xa0] sm:$0xff] }
 0x152   :  { %320 = vst.msk [vmem:[#allocation2 + $0x10] sm:$0xff] %vm317_vm2, %v259_v10  ;;  %v6415_v11 = vpop.f32.mrb[4].mxu0  ;;  %v9267_v10 = vpack.c.bf16 %v900_v4, %v899_v3 }
 0x153   :  { %v274_v13 = vadd.f32 %v6415_v11, %v9171_v46  ;;  %v268_v14 = vpop.f32.mrb[5].mxu0  ;;  %v901_v11 = vld [vmem:[#allocation9 + $0x70] sm:$0xff] }
 0x154   :  { %v431_v51 = vpop.f32.mrb[0].mxu1  ;;  %v269_v15 = vadd.f32 %v9171_v46, %v268_v14  ;;  %v437_v39 = vld [vmem:[#allocation2 + $0x8] sm:$0xff]  ;;  %v9271_v14 = vpack.c.bf16 %v909_v9, %v908_v7 }
 0x155   :  { %v353_v52 = vld [vmem:[#allocation2] sm:$0xff]  ;;  %v6446_v53 = vpop.f32.mrb[1].mxu1  ;;  %323 = vst.msk [vmem:[#allocation2 + $0x28] sm:$0xff] %vm317_vm2, %v274_v13  ;;  %v902_v13 = vld [vmem:[#allocation9 + $0x78] sm:$0xff] }
 0x156   :  { %v435_v54 = vadd.f32 %v431_v51, %v353_v52  ;;  %322 = vst.msk [vmem:[#allocation2 + $0x20] sm:$0xff] %vm317_vm2, %v269_v15  ;;  %v6418_v17 = vpop.f32.mrb[6].mxu0  ;;  %v896_v51 = vld [vmem:[#allocation9 + $0x48] sm:$0xff]  ;;  %v904_v52 = vld [vmem:[#allocation11 + $0x80] sm:$0xff]  ;;  %v910_v15 = vld [vmem:[#allocation11 + $0xb0] sm:$0xff] }
 0x157   :  { %v284_v18 = vadd.f32 %v6418_v17, %v9171_v46  ;;  %v278_v20 = vpop.f32.mrb[7].mxu0  ;;  %v905_v53 = vld [vmem:[#allocation11 + $0x88] sm:$0xff]  ;;  %v911_v17 = vld [vmem:[#allocation11 + $0xb8] sm:$0xff] }
 0x158   :  { %8646 = vtanh.f32 %v435_v54  ;;  %v279_v21 = vadd.f32 %v9171_v46, %v278_v20  ;;  %v9247_v54 = vpack.c.bf16 %v896_v51, %v895_v50  ;;  %v9250_v58 = vpack.c.bf16 %v905_v53, %v904_v52 }
 0x159   :  { %325 = vst.msk [vmem:[#allocation2 + $0x38] sm:$0xff] %vm317_vm2, %v284_v18  ;;  %v9275_v18 = vpack.c.bf16 %v902_v13, %v901_v11  ;;  %v9279_v20 = vpack.c.bf16 %v911_v17, %v910_v15 }
 0x15a   :  { %324 = vst.msk [vmem:[#allocation2 + $0x30] sm:$0xff] %vm317_vm2, %v279_v21  ;;  %v6421_v22 = vpop.f32.mrb[8].mxu0  ;;  %v352_v21 = vld [vmem:[#allocation6 + $0x10] sm:$0xff] }
 0x15b   :  { %v294_v23 = vadd.f32 %v6421_v22, %v9171_v46  ;;  %v288_v24 = vpop.f32.mrb[9].mxu0  ;;  %v675_v22 = vld [vmem:[#allocation2 + $0x10] sm:$0xff] }
 0x15c   :  { %v289_v26 = vadd.f32 %v9171_v46, %v288_v24 }
 0x15d   :  { %327 = vst.msk [vmem:[#allocation2 + $0x48] sm:$0xff] %vm317_vm2, %v294_v23  ;;  %v1425_v17 = vld [vmem:[#allocation2 + $0x20] sm:$0xff] }
 0x15e   :  { %326 = vst.msk [vmem:[#allocation2 + $0x40] sm:$0xff] %vm317_vm2, %v289_v26  ;;  %v6424_v27 = vpop.f32.mrb[10].mxu0 }
 0x15f   :  { %v304_v28 = vadd.f32 %v6424_v27, %v9171_v46  ;;  %v298_v29 = vpop.f32.mrb[11].mxu0 }
 0x160   :  { %v299_v31 = vadd.f32 %v9171_v46, %v298_v29 }
 0x161   :  { %329 = vst.msk [vmem:[#allocation2 + $0x58] sm:$0xff] %vm317_vm2, %v304_v28 }
 0x162   :  { %v8647_v60 = vpop.eup %8646  ;;  %328 = vst.msk [vmem:[#allocation2 + $0x50] sm:$0xff] %vm317_vm2, %v299_v31  ;;  %v6427_v32 = vpop.f32.mrb[12].mxu0 }
 0x163   :  { %6464 = vmatmul.mubr.msk.f32.vlgmr.msra.gmra.mrb[2].mxu1 %vm317_vm2, %v8647_v60  ;;  %v314_v33 = vadd.f32 %v6427_v32, %v9171_v46  ;;  %v308_v34 = vpop.f32.mrb[13].mxu0 }
 0x164   :  { %7819 = vmatpush3.bf16.msra.mxu1 %v9177_v57  ;;  %6501 = vmatprep.mubr.msk.f32.mxu1 %vm8929_vm0, %v8930_v1  ;;  %v309_v35 = vadd.f32 %v9171_v46, %v308_v34 }
 0x165   :  { %7820 = vmatprep.subr.bf16.mxu1 %v8928_v0  ;;  %331 = vst.msk [vmem:[#allocation2 + $0x68] sm:$0xff] %vm317_vm2, %v314_v33 }
 0x166   :  { %330 = vst.msk [vmem:[#allocation2 + $0x60] sm:$0xff] %vm317_vm2, %v309_v35  ;;  %v598_v37 = vpop.f32.mrb[14].mxu0 }
 0x167   :  { %v6484_v38 = vpop.f32.mrb[15].mxu0 }
 0x168   :  { %7822 = vmatpush3.bf16.msra.mxu1 %v9181_v61 }
 0x169   :  { %7823 = vmatprep.subr.bf16.mxu1 %v8928_v0 }
 0x16c   :  { %7825 = vmatpush3.bf16.msra.mxu1 %v9187_v2 }
 0x16d   :  { %7826 = vmatprep.subr.bf16.mxu1 %v8928_v0 }
 0x170   :  { %7828 = vmatpush3.bf16.msra.mxu1 %v9191_v5 }
 0x171   :  { %7841 = vmatprep.subr.bf16.mxu1 %v8928_v0 }
 0x173   :  { %6502 = vmatmul.mubr.msk.f32.vlgmr.msra.gmra.mrb[4].mxu1 %vm317_vm2, %v8647_v60  ;;  %v907_v60 = vld [vmem:[#allocation11 + $0x98] sm:$0xff] }
 0x174   :  { %7843 = vmatpush3.bf16.msra.mxu1 %v9128_v25  ;;  %6539 = vmatprep.mubr.msk.f32.mxu1 %vm8929_vm0, %v8930_v1  ;;  %v9261_v6 = vpack.c.bf16 %v907_v60, %v906_v59 }
 0x175   :  { %7844 = vmatprep.subr.bf16.mxu1 %v8928_v0 }
 0x178   :  { %7846 = vmatpush3.bf16.msra.mxu1 %v9133_v30 }
 0x179   :  { %7847 = vmatprep.subr.bf16.mxu1 %v8928_v0 }
 0x17c   :  { %7849 = vmatpush3.bf16.msra.mxu1 %v9142_v36 }
 0x17d   :  { %7850 = vmatprep.subr.bf16.mxu1 %v8928_v0 }
 0x180   :  { %7852 = vmatpush3.bf16.msra.mxu1 %v9149_v42 }
 0x181   :  { %7865 = vmatprep.subr.bf16.mxu1 %v8928_v0 }
 0x236   :  { %v507_v40 = vpop.f32.mrb[2].mxu1 }
 0x237   :  { %v511_v41 = vadd.f32 %v507_v40, %v437_v39  ;;  %v6465_v43 = vpop.f32.mrb[3].mxu1  ;;  %v9328_v39 = vld [vmem:[%s10044_s5 + $0x2] ss:$0 sm:$0xff] }
 0x239   :  { %8648 = vtanh.f32 %v511_v41 }
 0x243   :  { %v8649_v44 = vpop.eup %8648 }
 0x244   :  { %6521 = vmatmul.mubr.msk.f32.vlgmr.msra.gmra.mrb[16].mxu0 %vm317_vm2, %v8649_v44 }
 0x245   :  { %7855 = vmatpush3.bf16.msra.mxu0 %v9177_v57  ;;  %6558 = vmatprep.mubr.msk.f32.mxu0 %vm8929_vm0, %v8930_v1 }
 0x246   :  { %v668_v46 = vpop.f32.mrb[4].mxu1  ;;  %7856 = vmatprep.subr.bf16.mxu0 %v8928_v0 }
 0x247   :  { %v669_v47 = vadd.f32 %v668_v46, %v598_v37  ;;  %v6503_v48 = vpop.f32.mrb[5].mxu1 }
 0x249   :  { %v672_v49 = vadd.f32 %v9238_v45, %v669_v47  ;;  %7858 = vmatpush3.bf16.msra.mxu0 %v9181_v61  ;;  %v1059_v47 = vld [vmem:[#allocation2 + $0x18] sm:$0xff] }
 0x24a   :  { %7859 = vmatprep.subr.bf16.mxu0 %v8928_v0 }
 0x24b   :  { %8650 = vtanh.f32 %v672_v49 }
 0x24d   :  { %7861 = vmatpush3.bf16.msra.mxu0 %v9187_v2 }
 0x24e   :  { %7862 = vmatprep.subr.bf16.mxu0 %v8928_v0 }
 0x251   :  { %7864 = vmatpush3.bf16.msra.mxu0 %v9191_v5 }
 0x252   :  { %7877 = vmatprep.subr.bf16.mxu0 %v8928_v0 }
 0x254   :  { %6559 = vmatmul.mubr.msk.f32.vlgmr.msra.gmra.mrb[18].mxu0 %vm317_vm2, %v8649_v44 }
 0x255   :  { %v8651_v62 = vpop.eup %8650  ;;  %7879 = vmatpush3.bf16.msra.mxu0 %v9247_v54  ;;  %6596 = vmatprep.mubr.msk.f32.mxu0 %vm8929_vm0, %v8930_v1 }
 0x256   :  { %6540 = vmatmul.mubr.msk.f32.vlgmr.msra.gmra.mrb[6].mxu1 %vm317_vm2, %v8651_v62  ;;  %7880 = vmatprep.subr.bf16.mxu0 %v8928_v0 }
 0x257   :  { %7867 = vmatpush3.bf16.msra.mxu1 %v9250_v58  ;;  %6577 = vmatprep.mubr.msk.f32.mxu1 %vm8929_vm0, %v8930_v1 }
 0x258   :  { %7868 = vmatprep.subr.bf16.mxu1 %v8928_v0 }
 0x259   :  { %7882 = vmatpush3.bf16.msra.mxu0 %v9254_v63 }
 0x25a   :  { %7883 = vmatprep.subr.bf16.mxu0 %v8928_v0 }
 0x25b   :  { %7870 = vmatpush3.bf16.msra.mxu1 %v9261_v6 }
 0x25c   :  { %7871 = vmatprep.subr.bf16.mxu1 %v8928_v0 }
 0x25d   :  { %7885 = vmatpush3.bf16.msra.mxu0 %v9267_v10 }
 0x25e   :  { %7886 = vmatprep.subr.bf16.mxu0 %v8928_v0 }
 0x25f   :  { %7873 = vmatpush3.bf16.msra.mxu1 %v9271_v14 }
 0x260   :  { %7874 = vmatprep.subr.bf16.mxu1 %v8928_v0 }
 0x261   :  { %7888 = vmatpush3.bf16.msra.mxu0 %v9275_v18 }
 0x262   :  { %7901 = vmatprep.subr.bf16.mxu0 %v8928_v0 }
 0x263   :  { %7876 = vmatpush3.bf16.msra.mxu1 %v9279_v20 }
 0x264   :  { %6597 = vmatmul.mubr.msk.f32.vlgmr.msra.gmra.mrb[20].mxu0 %vm317_vm2, %v8651_v62  ;;  %7889 = vmatprep.subr.bf16.mxu1 %v8928_v0 }
 0x265   :  { %7903 = vmatpush3.bf16.msra.mxu0 %v9128_v25  ;;  %6634 = vmatprep.mubr.msk.f32.mxu0 %vm8929_vm0, %v8930_v1 }
 0x266   :  { %6578 = vmatmul.mubr.msk.f32.vlgmr.msra.gmra.mrb[8].mxu1 %vm317_vm2, %v352_v21  ;;  %7904 = vmatprep.subr.bf16.mxu0 %v8928_v0 }
 0x267   :  { %7891 = vmatpush3.bf16.msra.mxu1 %v9097_v8  ;;  %6615 = vmatprep.mubr.msk.f32.mxu1 %vm8929_vm0, %v8930_v1 }
 0x268   :  { %7892 = vmatprep.subr.bf16.mxu1 %v8928_v0 }
 0x269   :  { %7906 = vmatpush3.bf16.msra.mxu0 %v9133_v30 }
 0x26a   :  { %7907 = vmatprep.subr.bf16.mxu0 %v8928_v0 }
 0x26b   :  { %7894 = vmatpush3.bf16.msra.mxu1 %v9101_v12 }
 0x26c   :  { %7895 = vmatprep.subr.bf16.mxu1 %v8928_v0 }
 0x26d   :  { %7909 = vmatpush3.bf16.msra.mxu0 %v9142_v36 }
 0x26e   :  { %7910 = vmatprep.subr.bf16.mxu0 %v8928_v0 }
 0x26f   :  { %7897 = vmatpush3.bf16.msra.mxu1 %v9105_v16 }
 0x270   :  { %7898 = vmatprep.subr.bf16.mxu1 %v8928_v0 }
 0x271   :  { %7912 = vmatpush3.bf16.msra.mxu0 %v9149_v42 }
 0x272   :  { %7925 = vmatprep.subr.bf16.mxu0 %v8928_v0 }
 0x273   :  { %7900 = vmatpush3.bf16.msra.mxu1 %v9111_v19 }
 0x274   :  { %7913 = vmatprep.subr.bf16.mxu1 %v8928_v0 }
 0x317   :  { %v745_v23 = vpop.f32.mrb[16].mxu0 }
 0x318   :  { %v749_v24 = vadd.f32 %v745_v23, %v675_v22  ;;  %v6522_v26 = vpop.f32.mrb[17].mxu0 }
 0x31a   :  { %8652 = vtanh.f32 %v749_v24 }
 0x324   :  { %v8653_v27 = vpop.eup %8652 }
 0x325   :  { %6616 = vmatmul.mubr.msk.f32.vlgmr.msra.gmra.mrb[10].mxu1 %vm317_vm2, %v8653_v27 }
 0x326   :  { %7915 = vmatpush3.bf16.msra.mxu1 %v9177_v57  ;;  %6653 = vmatprep.mubr.msk.f32.mxu1 %vm8929_vm0, %v8930_v1 }
 0x327   :  { %v889_v28 = vpop.f32.mrb[18].mxu0  ;;  %7916 = vmatprep.subr.bf16.mxu1 %v8928_v0 }
 0x328   :  { %v6560_v29 = vpop.f32.mrb[19].mxu0 }
 0x329   :  { %v819_v31 = vpop.f32.mrb[6].mxu1 }
 0x32a   :  { %v890_v32 = vadd.f32 %v889_v28, %v819_v31  ;;  %v6541_v33 = vpop.f32.mrb[7].mxu1  ;;  %7918 = vmatpush3.bf16.msra.mxu1 %v9181_v61 }
 0x32b   :  { %7919 = vmatprep.subr.bf16.mxu1 %v8928_v0 }
 0x32c   :  { %v893_v34 = vadd.f32 %v9238_v45, %v890_v32 }
 0x32e   :  { %8654 = vtanh.f32 %v893_v34  ;;  %7921 = vmatpush3.bf16.msra.mxu1 %v9187_v2 }
 0x32f   :  { %7922 = vmatprep.subr.bf16.mxu1 %v8928_v0 }
 0x332   :  { %7924 = vmatpush3.bf16.msra.mxu1 %v9191_v5 }
 0x333   :  { %7937 = vmatprep.subr.bf16.mxu1 %v8928_v0 }
 0x335   :  { %6654 = vmatmul.mubr.msk.f32.vlgmr.msra.gmra.mrb[12].mxu1 %vm317_vm2, %v8653_v27 }
 0x336   :  { %7939 = vmatpush3.bf16.msra.mxu1 %v9247_v54  ;;  %6691 = vmatprep.mubr.msk.f32.mxu1 %vm8929_vm0, %v8930_v1 }
 0x337   :  { %v1051_v35 = vpop.f32.mrb[20].mxu0  ;;  %7940 = vmatprep.subr.bf16.mxu1 %v8928_v0 }
 0x338   :  { %v8655_v37 = vpop.eup %8654  ;;  %v6598_v38 = vpop.f32.mrb[21].mxu0 }
 0x339   :  { %v981_v40 = vpop.f32.mrb[8].mxu1  ;;  %6635 = vmatmul.mubr.msk.f32.vlgmr.msra.gmra.mrb[22].mxu0 %vm317_vm2, %v8655_v37 }
 0x33a   :  { %v1052_v41 = vadd.f32 %v1051_v35, %v981_v40  ;;  %v6579_v43 = vpop.f32.mrb[9].mxu1  ;;  %7927 = vmatpush3.bf16.msra.mxu0 %v9250_v58  ;;  %7942 = vmatpush3.bf16.msra.mxu1 %v9254_v63 }
 0x33b   :  { %7928 = vmatprep.subr.bf16.mxu0 %v8928_v0  ;;  %7943 = vmatprep.subr.bf16.mxu1 %v8928_v0 }
 0x33c   :  { %v1055_v44 = vadd.f32 %v9328_v39, %v1052_v41  ;;  %6672 = vmatprep.mubr.msk.f32.mxu0 %vm8929_vm0, %v8930_v1 }
 0x33e   :  { %8656 = vtanh.f32 %v1055_v44  ;;  %7930 = vmatpush3.bf16.msra.mxu0 %v9261_v6  ;;  %7945 = vmatpush3.bf16.msra.mxu1 %v9267_v10  ;;  %v1791_v44 = vld [vmem:[#allocation2 + $0x28] sm:$0xff] }
 0x33f   :  { %7931 = vmatprep.subr.bf16.mxu0 %v8928_v0  ;;  %7946 = vmatprep.subr.bf16.mxu1 %v8928_v0 }
 0x342   :  { %7933 = vmatpush3.bf16.msra.mxu0 %v9271_v14  ;;  %7948 = vmatpush3.bf16.msra.mxu1 %v9275_v18 }
 0x343   :  { %7934 = vmatprep.subr.bf16.mxu0 %v8928_v0  ;;  %7961 = vmatprep.subr.bf16.mxu1 %v8928_v0 }
 0x345   :  { %6692 = vmatmul.mubr.msk.f32.vlgmr.msra.gmra.mrb[14].mxu1 %vm317_vm2, %v8655_v37 }
 0x346   :  { %7936 = vmatpush3.bf16.msra.mxu0 %v9279_v20  ;;  %7963 = vmatpush3.bf16.msra.mxu1 %v9128_v25 }
 0x347   :  { %7949 = vmatprep.subr.bf16.mxu0 %v8928_v0  ;;  %7964 = vmatprep.subr.bf16.mxu1 %v8928_v0 }
 0x348   :  { %v8657_v46 = vpop.eup %8656  ;;  %6729 = vmatprep.mubr.msk.f32.mxu1 %vm8929_vm0, %v8930_v1 }
 0x349   :  { %6673 = vmatmul.mubr.msk.f32.vlgmr.msra.gmra.mrb[24].mxu0 %vm317_vm2, %v8657_v46 }
 0x34a   :  { %7951 = vmatpush3.bf16.msra.mxu0 %v9097_v8  ;;  %6710 = vmatprep.mubr.msk.f32.mxu0 %vm8929_vm0, %v8930_v1 }
 0x34b   :  { %7952 = vmatprep.subr.bf16.mxu0 %v8928_v0  ;;  %7966 = vmatpush3.bf16.msra.mxu1 %v9133_v30 }
 0x34c   :  { %7967 = vmatprep.subr.bf16.mxu1 %v8928_v0 }
 0x34e   :  { %7954 = vmatpush3.bf16.msra.mxu0 %v9101_v12 }
 0x34f   :  { %7955 = vmatprep.subr.bf16.mxu0 %v8928_v0  ;;  %7969 = vmatpush3.bf16.msra.mxu1 %v9142_v36 }
 0x350   :  { %7970 = vmatprep.subr.bf16.mxu1 %v8928_v0 }
 0x352   :  { %7957 = vmatpush3.bf16.msra.mxu0 %v9105_v16 }
 0x353   :  { %7958 = vmatprep.subr.bf16.mxu0 %v8928_v0  ;;  %7972 = vmatpush3.bf16.msra.mxu1 %v9149_v42 }
 0x354   :  { %7985 = vmatprep.subr.bf16.mxu1 %v8928_v0 }
 0x356   :  { %7960 = vmatpush3.bf16.msra.mxu0 %v9111_v19 }
 0x357   :  { %7973 = vmatprep.subr.bf16.mxu0 %v8928_v0 }
 0x3f8   :  { %v1129_v48 = vpop.f32.mrb[10].mxu1 }
 0x3f9   :  { %v1133_v49 = vadd.f32 %v1129_v48, %v1059_v47  ;;  %v6617_v50 = vpop.f32.mrb[11].mxu1 }
 0x3fb   :  { %8658 = vtanh.f32 %v1133_v49 }
 0x405   :  { %v8659_v51 = vpop.eup %8658 }
 0x406   :  { %6711 = vmatmul.mubr.msk.f32.vlgmr.msra.gmra.mrb[26].mxu0 %vm317_vm2, %v8659_v51 }
 0x407   :  { %7975 = vmatpush3.bf16.msra.mxu0 %v9177_v57  ;;  %6748 = vmatprep.mubr.msk.f32.mxu0 %vm8929_vm0, %v8930_v1 }
 0x408   :  { %v1273_v52 = vpop.f32.mrb[12].mxu1  ;;  %7976 = vmatprep.subr.bf16.mxu0 %v8928_v0 }
 0x409   :  { %v6655_v53 = vpop.f32.mrb[13].mxu1 }
 0x40b   :  { %7978 = vmatpush3.bf16.msra.mxu0 %v9181_v61 }
 0x40c   :  { %v1203_v55 = vpop.f32.mrb[22].mxu0  ;;  %7979 = vmatprep.subr.bf16.mxu0 %v8928_v0 }
 0x40d   :  { %v1274_v56 = vadd.f32 %v1273_v52, %v1203_v55  ;;  %v6636_v59 = vpop.f32.mrb[23].mxu0 }
 0x40f   :  { %v1277_v60 = vadd.f32 %v9238_v45, %v1274_v56  ;;  %7981 = vmatpush3.bf16.msra.mxu0 %v9187_v2 }
 0x410   :  { %7982 = vmatprep.subr.bf16.mxu0 %v8928_v0 }
 0x411   :  { %8660 = vtanh.f32 %v1277_v60 }
 0x413   :  { %7984 = vmatpush3.bf16.msra.mxu0 %v9191_v5 }
 0x414   :  { %7997 = vmatprep.subr.bf16.mxu0 %v8928_v0 }
 0x416   :  { %6749 = vmatmul.mubr.msk.f32.vlgmr.msra.gmra.mrb[28].mxu0 %vm317_vm2, %v8659_v51 }
 0x417   :  { %7999 = vmatpush3.bf16.msra.mxu0 %v9247_v54  ;;  %6786 = vmatprep.mubr.msk.f32.mxu0 %vm8929_vm0, %v8930_v1 }
 0x418   :  { %v1417_v62 = vpop.f32.mrb[14].mxu1  ;;  %8000 = vmatprep.subr.bf16.mxu0 %v8928_v0 }
 0x419   :  { %v6693_v3 = vpop.f32.mrb[15].mxu1 }
 0x41b   :  { %v8661_v4 = vpop.eup %8660  ;;  %8002 = vmatpush3.bf16.msra.mxu0 %v9254_v63 }
 0x41c   :  { %v1347_v7 = vpop.f32.mrb[24].mxu0  ;;  %6730 = vmatmul.mubr.msk.f32.vlgmr.msra.gmra.mrb[16].mxu1 %vm317_vm2, %v8661_v4  ;;  %8003 = vmatprep.subr.bf16.mxu0 %v8928_v0 }
 0x41d   :  { %v1418_v9 = vadd.f32 %v1417_v62, %v1347_v7  ;;  %v6674_v11 = vpop.f32.mrb[25].mxu0  ;;  %7987 = vmatpush3.bf16.msra.mxu1 %v9250_v58  ;;  %6767 = vmatprep.mubr.msk.f32.mxu1 %vm8929_vm0, %v8930_v1 }
 0x41e   :  { %7988 = vmatprep.subr.bf16.mxu1 %v8928_v0 }
 0x41f   :  { %v1421_v13 = vadd.f32 %v9328_v39, %v1418_v9  ;;  %8005 = vmatpush3.bf16.msra.mxu0 %v9267_v10 }
 0x420   :  { %8006 = vmatprep.subr.bf16.mxu0 %v8928_v0 }
 0x421   :  { %8662 = vtanh.f32 %v1421_v13  ;;  %7990 = vmatpush3.bf16.msra.mxu1 %v9261_v6  ;;  %v2157_v13 = vld [vmem:[#allocation2 + $0x30] sm:$0xff] }
 0x422   :  { %7991 = vmatprep.subr.bf16.mxu1 %v8928_v0 }
 0x423   :  { %8008 = vmatpush3.bf16.msra.mxu0 %v9275_v18 }
 0x424   :  { %8021 = vmatprep.subr.bf16.mxu0 %v8928_v0 }
 0x425   :  { %7993 = vmatpush3.bf16.msra.mxu1 %v9271_v14 }
 0x426   :  { %6787 = vmatmul.mubr.msk.f32.vlgmr.msra.gmra.mrb[30].mxu0 %vm317_vm2, %v8661_v4  ;;  %7994 = vmatprep.subr.bf16.mxu1 %v8928_v0 }
 0x427   :  { %8023 = vmatpush3.bf16.msra.mxu0 %v9128_v25  ;;  %6824 = vmatprep.mubr.msk.f32.mxu0 %vm8929_vm0, %v8930_v1 }
 0x428   :  { %8024 = vmatprep.subr.bf16.mxu0 %v8928_v0 }
 0x429   :  { %7996 = vmatpush3.bf16.msra.mxu1 %v9279_v20 }
 0x42a   :  { %8009 = vmatprep.subr.bf16.mxu1 %v8928_v0 }
 0x42b   :  { %v8663_v15 = vpop.eup %8662  ;;  %8026 = vmatpush3.bf16.msra.mxu0 %v9133_v30 }
 0x42c   :  { %6768 = vmatmul.mubr.msk.f32.vlgmr.msra.gmra.mrb[18].mxu1 %vm317_vm2, %v8663_v15  ;;  %8027 = vmatprep.subr.bf16.mxu0 %v8928_v0 }
 0x42d   :  { %8011 = vmatpush3.bf16.msra.mxu1 %v9097_v8  ;;  %6805 = vmatprep.mubr.msk.f32.mxu1 %vm8929_vm0, %v8930_v1 }
 0x42e   :  { %8012 = vmatprep.subr.bf16.mxu1 %v8928_v0 }
 0x42f   :  { %8029 = vmatpush3.bf16.msra.mxu0 %v9142_v36 }
 0x430   :  { %8030 = vmatprep.subr.bf16.mxu0 %v8928_v0 }
 0x431   :  { %8014 = vmatpush3.bf16.msra.mxu1 %v9101_v12 }
 0x432   :  { %8015 = vmatprep.subr.bf16.mxu1 %v8928_v0 }
 0x433   :  { %8032 = vmatpush3.bf16.msra.mxu0 %v9149_v42 }
 0x434   :  { %8045 = vmatprep.subr.bf16.mxu0 %v8928_v0 }
 0x435   :  { %8017 = vmatpush3.bf16.msra.mxu1 %v9105_v16 }
 0x436   :  { %8018 = vmatprep.subr.bf16.mxu1 %v8928_v0 }
 0x439   :  { %8020 = vmatpush3.bf16.msra.mxu1 %v9111_v19 }
 0x43a   :  { %8033 = vmatprep.subr.bf16.mxu1 %v8928_v0 }
 0x4d9   :  { %v1495_v21 = vpop.f32.mrb[26].mxu0 }
 0x4da   :  { %v1499_v22 = vadd.f32 %v1495_v21, %v1425_v17  ;;  %v6712_v23 = vpop.f32.mrb[27].mxu0 }
 0x4dc   :  { %8664 = vtanh.f32 %v1499_v22 }
 0x4e6   :  { %v8665_v24 = vpop.eup %8664 }
 0x4e7   :  { %6806 = vmatmul.mubr.msk.f32.vlgmr.msra.gmra.mrb[20].mxu1 %vm317_vm2, %v8665_v24 }
 0x4e8   :  { %8035 = vmatpush3.bf16.msra.mxu1 %v9177_v57  ;;  %6843 = vmatprep.mubr.msk.f32.mxu1 %vm8929_vm0, %v8930_v1 }
 0x4e9   :  { %v1639_v26 = vpop.f32.mrb[28].mxu0  ;;  %8036 = vmatprep.subr.bf16.mxu1 %v8928_v0 }
 0x4ea   :  { %v6750_v27 = vpop.f32.mrb[29].mxu0 }
 0x4ec   :  { %8038 = vmatpush3.bf16.msra.mxu1 %v9181_v61 }
 0x4ed   :  { %8039 = vmatprep.subr.bf16.mxu1 %v8928_v0 }
 0x4ef   :  { %v1569_v28 = vpop.f32.mrb[16].mxu1 }
 0x4f0   :  { %v1640_v29 = vadd.f32 %v1639_v26, %v1569_v28  ;;  %v6731_v31 = vpop.f32.mrb[17].mxu1  ;;  %8041 = vmatpush3.bf16.msra.mxu1 %v9187_v2 }
 0x4f1   :  { %8042 = vmatprep.subr.bf16.mxu1 %v8928_v0 }
 0x4f2   :  { %v1643_v32 = vadd.f32 %v9238_v45, %v1640_v29 }
 0x4f4   :  { %8666 = vtanh.f32 %v1643_v32  ;;  %8044 = vmatpush3.bf16.msra.mxu1 %v9191_v5 }
 0x4f5   :  { %8057 = vmatprep.subr.bf16.mxu1 %v8928_v0 }
 0x4f7   :  { %6844 = vmatmul.mubr.msk.f32.vlgmr.msra.gmra.mrb[22].mxu1 %vm317_vm2, %v8665_v24 }
 0x4f8   :  { %8059 = vmatpush3.bf16.msra.mxu1 %v9247_v54  ;;  %6881 = vmatprep.mubr.msk.f32.mxu1 %vm8929_vm0, %v8930_v1 }
 0x4f9   :  { %v1783_v33 = vpop.f32.mrb[30].mxu0  ;;  %8060 = vmatprep.subr.bf16.mxu1 %v8928_v0 }
 0x4fa   :  { %v6788_v34 = vpop.f32.mrb[31].mxu0 }
 0x4fc   :  { %8062 = vmatpush3.bf16.msra.mxu1 %v9254_v63 }
 0x4fd   :  { %8063 = vmatprep.subr.bf16.mxu1 %v8928_v0 }
 0x4fe   :  { %v8667_v35 = vpop.eup %8666 }
 0x4ff   :  { %v1713_v37 = vpop.f32.mrb[18].mxu1  ;;  %6825 = vmatmul.mubr.msk.f32.vlgmr.msra.gmra.mrb[32].mxu0 %vm317_vm2, %v8667_v35 }
 0x500   :  { %v1784_v38 = vadd.f32 %v1783_v33, %v1713_v37  ;;  %v6769_v40 = vpop.f32.mrb[19].mxu1  ;;  %8047 = vmatpush3.bf16.msra.mxu0 %v9250_v58  ;;  %8065 = vmatpush3.bf16.msra.mxu1 %v9267_v10 }
 0x501   :  { %8048 = vmatprep.subr.bf16.mxu0 %v8928_v0  ;;  %8066 = vmatprep.subr.bf16.mxu1 %v8928_v0 }
 0x502   :  { %v1787_v41 = vadd.f32 %v9328_v39, %v1784_v38  ;;  %6862 = vmatprep.mubr.msk.f32.mxu0 %vm8929_vm0, %v8930_v1 }
 0x504   :  { %8668 = vtanh.f32 %v1787_v41  ;;  %8050 = vmatpush3.bf16.msra.mxu0 %v9261_v6  ;;  %8068 = vmatpush3.bf16.msra.mxu1 %v9275_v18  ;;  %v2523_v41 = vld [vmem:[#allocation2 + $0x38] sm:$0xff] }
 0x505   :  { %8051 = vmatprep.subr.bf16.mxu0 %v8928_v0  ;;  %8081 = vmatprep.subr.bf16.mxu1 %v8928_v0 }
 0x507   :  { %6882 = vmatmul.mubr.msk.f32.vlgmr.msra.gmra.mrb[24].mxu1 %vm317_vm2, %v8667_v35 }
 0x508   :  { %8053 = vmatpush3.bf16.msra.mxu0 %v9271_v14  ;;  %8083 = vmatpush3.bf16.msra.mxu1 %v9128_v25 }
 0x509   :  { %8054 = vmatprep.subr.bf16.mxu0 %v8928_v0  ;;  %8084 = vmatprep.subr.bf16.mxu1 %v8928_v0 }
 0x50a   :  { %6919 = vmatprep.mubr.msk.f32.mxu1 %vm8929_vm0, %v8930_v1 }
 0x50c   :  { %8056 = vmatpush3.bf16.msra.mxu0 %v9279_v20  ;;  %8086 = vmatpush3.bf16.msra.mxu1 %v9133_v30 }
 0x50d   :  { %8069 = vmatprep.subr.bf16.mxu0 %v8928_v0  ;;  %8087 = vmatprep.subr.bf16.mxu1 %v8928_v0 }
 0x50e   :  { %v8669_v43 = vpop.eup %8668 }
 0x50f   :  { %6863 = vmatmul.mubr.msk.f32.vlgmr.msra.gmra.mrb[34].mxu0 %vm317_vm2, %v8669_v43 }
 0x510   :  { %8071 = vmatpush3.bf16.msra.mxu0 %v9097_v8  ;;  %6900 = vmatprep.mubr.msk.f32.mxu0 %vm8929_vm0, %v8930_v1 }
 0x511   :  { %8072 = vmatprep.subr.bf16.mxu0 %v8928_v0  ;;  %8089 = vmatpush3.bf16.msra.mxu1 %v9142_v36 }
 0x512   :  { %8090 = vmatprep.subr.bf16.mxu1 %v8928_v0 }
 0x514   :  { %8074 = vmatpush3.bf16.msra.mxu0 %v9101_v12 }
 0x515   :  { %8075 = vmatprep.subr.bf16.mxu0 %v8928_v0  ;;  %8092 = vmatpush3.bf16.msra.mxu1 %v9149_v42 }
 0x516   :  { %8105 = vmatprep.subr.bf16.mxu1 %v8928_v0 }
 0x518   :  { %8077 = vmatpush3.bf16.msra.mxu0 %v9105_v16 }
 0x519   :  { %8078 = vmatprep.subr.bf16.mxu0 %v8928_v0 }
 0x51c   :  { %8080 = vmatpush3.bf16.msra.mxu0 %v9111_v19 }
 0x51d   :  { %8093 = vmatprep.subr.bf16.mxu0 %v8928_v0 }
 0x5ba   :  { %v1861_v46 = vpop.f32.mrb[20].mxu1 }
 0x5bb   :  { %v1865_v47 = vadd.f32 %v1861_v46, %v1791_v44  ;;  %v6807_v48 = vpop.f32.mrb[21].mxu1 }
 0x5bd   :  { %8670 = vtanh.f32 %v1865_v47 }
 0x5c7   :  { %v8671_v49 = vpop.eup %8670 }
 0x5c8   :  { %6901 = vmatmul.mubr.msk.f32.vlgmr.msra.gmra.mrb[36].mxu0 %vm317_vm2, %v8671_v49 }
 0x5c9   :  { %8095 = vmatpush3.bf16.msra.mxu0 %v9177_v57  ;;  %6938 = vmatprep.mubr.msk.f32.mxu0 %vm8929_vm0, %v8930_v1 }
 0x5ca   :  { %v2005_v50 = vpop.f32.mrb[22].mxu1  ;;  %8096 = vmatprep.subr.bf16.mxu0 %v8928_v0 }
 0x5cb   :  { %v6845_v51 = vpop.f32.mrb[23].mxu1 }
 0x5cd   :  { %8098 = vmatpush3.bf16.msra.mxu0 %v9181_v61 }
 0x5ce   :  { %8099 = vmatprep.subr.bf16.mxu0 %v8928_v0 }
 0x5d1   :  { %8101 = vmatpush3.bf16.msra.mxu0 %v9187_v2 }
 0x5d2   :  { %v1935_v52 = vpop.f32.mrb[32].mxu0  ;;  %8102 = vmatprep.subr.bf16.mxu0 %v8928_v0 }
 0x5d3   :  { %v2006_v53 = vadd.f32 %v2005_v50, %v1935_v52  ;;  %v6826_v55 = vpop.f32.mrb[33].mxu0 }
 0x5d5   :  { %v2009_v56 = vadd.f32 %v9238_v45, %v2006_v53  ;;  %8104 = vmatpush3.bf16.msra.mxu0 %v9191_v5 }
 0x5d6   :  { %8117 = vmatprep.subr.bf16.mxu0 %v8928_v0 }
 0x5d7   :  { %8672 = vtanh.f32 %v2009_v56 }
 0x5d8   :  { %6939 = vmatmul.mubr.msk.f32.vlgmr.msra.gmra.mrb[38].mxu0 %vm317_vm2, %v8671_v49 }
 0x5d9   :  { %8119 = vmatpush3.bf16.msra.mxu0 %v9247_v54  ;;  %6976 = vmatprep.mubr.msk.f32.mxu0 %vm8929_vm0, %v8930_v1 }
 0x5da   :  { %v2149_v59 = vpop.f32.mrb[24].mxu1  ;;  %8120 = vmatprep.subr.bf16.mxu0 %v8928_v0 }
 0x5db   :  { %v6883_v60 = vpop.f32.mrb[25].mxu1 }
 0x5dd   :  { %8122 = vmatpush3.bf16.msra.mxu0 %v9254_v63 }
 0x5de   :  { %8123 = vmatprep.subr.bf16.mxu0 %v8928_v0 }
 0x5e1   :  { %v8673_v62 = vpop.eup %8672  ;;  %8125 = vmatpush3.bf16.msra.mxu0 %v9267_v10 }
 0x5e2   :  { %v2079_v3 = vpop.f32.mrb[34].mxu0  ;;  %6920 = vmatmul.mubr.msk.f32.vlgmr.msra.gmra.mrb[26].mxu1 %vm317_vm2, %v8673_v62  ;;  %8126 = vmatprep.subr.bf16.mxu0 %v8928_v0 }
 0x5e3   :  { %v2150_v4 = vadd.f32 %v2149_v59, %v2079_v3  ;;  %v6864_v7 = vpop.f32.mrb[35].mxu0  ;;  %8107 = vmatpush3.bf16.msra.mxu1 %v9250_v58  ;;  %6957 = vmatprep.mubr.msk.f32.mxu1 %vm8929_vm0, %v8930_v1 }
 0x5e4   :  { %8108 = vmatprep.subr.bf16.mxu1 %v8928_v0  ;;  %v2889_v7 = vld [vmem:[#allocation2 + $0x40] sm:$0xff] }
 0x5e5   :  { %v2153_v9 = vadd.f32 %v9328_v39, %v2150_v4  ;;  %8128 = vmatpush3.bf16.msra.mxu0 %v9275_v18 }
 0x5e6   :  { %8141 = vmatprep.subr.bf16.mxu0 %v8928_v0 }
 0x5e7   :  { %8674 = vtanh.f32 %v2153_v9  ;;  %8110 = vmatpush3.bf16.msra.mxu1 %v9261_v6 }
 0x5e8   :  { %6977 = vmatmul.mubr.msk.f32.vlgmr.msra.gmra.mrb[40].mxu0 %vm317_vm2, %v8673_v62  ;;  %8111 = vmatprep.subr.bf16.mxu1 %v8928_v0 }
 0x5e9   :  { %8143 = vmatpush3.bf16.msra.mxu0 %v9128_v25  ;;  %7014 = vmatprep.mubr.msk.f32.mxu0 %vm8929_vm0, %v8930_v1 }
 0x5ea   :  { %8144 = vmatprep.subr.bf16.mxu0 %v8928_v0 }
 0x5eb   :  { %8113 = vmatpush3.bf16.msra.mxu1 %v9271_v14 }
 0x5ec   :  { %8114 = vmatprep.subr.bf16.mxu1 %v8928_v0 }
 0x5ed   :  { %8146 = vmatpush3.bf16.msra.mxu0 %v9133_v30 }
 0x5ee   :  { %8147 = vmatprep.subr.bf16.mxu0 %v8928_v0 }
 0x5ef   :  { %8116 = vmatpush3.bf16.msra.mxu1 %v9279_v20 }
 0x5f0   :  { %8129 = vmatprep.subr.bf16.mxu1 %v8928_v0 }
 0x5f1   :  { %v8675_v11 = vpop.eup %8674  ;;  %8149 = vmatpush3.bf16.msra.mxu0 %v9142_v36 }
 0x5f2   :  { %6958 = vmatmul.mubr.msk.f32.vlgmr.msra.gmra.mrb[28].mxu1 %vm317_vm2, %v8675_v11  ;;  %8150 = vmatprep.subr.bf16.mxu0 %v8928_v0 }
 0x5f3   :  { %8131 = vmatpush3.bf16.msra.mxu1 %v9097_v8  ;;  %6995 = vmatprep.mubr.msk.f32.mxu1 %vm8929_vm0, %v8930_v1 }
 0x5f4   :  { %8132 = vmatprep.subr.bf16.mxu1 %v8928_v0 }
 0x5f5   :  { %8152 = vmatpush3.bf16.msra.mxu0 %v9149_v42 }
 0x5f6   :  { %8165 = vmatprep.subr.bf16.mxu0 %v8928_v0 }
 0x5f7   :  { %8134 = vmatpush3.bf16.msra.mxu1 %v9101_v12 }
 0x5f8   :  { %8135 = vmatprep.subr.bf16.mxu1 %v8928_v0 }
 0x5fb   :  { %8137 = vmatpush3.bf16.msra.mxu1 %v9105_v16 }
 0x5fc   :  { %8138 = vmatprep.subr.bf16.mxu1 %v8928_v0 }
 0x5ff   :  { %8140 = vmatpush3.bf16.msra.mxu1 %v9111_v19 }
 0x600   :  { %8153 = vmatprep.subr.bf16.mxu1 %v8928_v0 }
 0x69b   :  { %v2227_v15 = vpop.f32.mrb[36].mxu0 }
 0x69c   :  { %v2231_v17 = vadd.f32 %v2227_v15, %v2157_v13  ;;  %v6902_v21 = vpop.f32.mrb[37].mxu0 }
 0x69e   :  { %8676 = vtanh.f32 %v2231_v17 }
 0x6a8   :  { %v8677_v22 = vpop.eup %8676 }
 0x6a9   :  { %6996 = vmatmul.mubr.msk.f32.vlgmr.msra.gmra.mrb[30].mxu1 %vm317_vm2, %v8677_v22 }
 0x6aa   :  { %8155 = vmatpush3.bf16.msra.mxu1 %v9177_v57  ;;  %7033 = vmatprep.mubr.msk.f32.mxu1 %vm8929_vm0, %v8930_v1 }
 0x6ab   :  { %v2371_v23 = vpop.f32.mrb[38].mxu0  ;;  %8156 = vmatprep.subr.bf16.mxu1 %v8928_v0 }
 0x6ac   :  { %v6940_v24 = vpop.f32.mrb[39].mxu0 }
 0x6ae   :  { %8158 = vmatpush3.bf16.msra.mxu1 %v9181_v61 }
 0x6af   :  { %8159 = vmatprep.subr.bf16.mxu1 %v8928_v0 }
 0x6b2   :  { %8161 = vmatpush3.bf16.msra.mxu1 %v9187_v2 }
 0x6b3   :  { %8162 = vmatprep.subr.bf16.mxu1 %v8928_v0 }
 0x6b5   :  { %v2301_v26 = vpop.f32.mrb[26].mxu1 }
 0x6b6   :  { %v2372_v27 = vadd.f32 %v2371_v23, %v2301_v26  ;;  %v6921_v28 = vpop.f32.mrb[27].mxu1  ;;  %8164 = vmatpush3.bf16.msra.mxu1 %v9191_v5 }
 0x6b7   :  { %8177 = vmatprep.subr.bf16.mxu1 %v8928_v0 }
 0x6b8   :  { %v2375_v29 = vadd.f32 %v9238_v45, %v2372_v27  ;;  %v9674_v27 = vld [vmem:[%s10044_s5 + $0x1] ss:$0 sm:$0xff] }
 0x6b9   :  { %7034 = vmatmul.mubr.msk.f32.vlgmr.msra.gmra.mrb[32].mxu1 %vm317_vm2, %v8677_v22 }
 0x6ba   :  { %8678 = vtanh.f32 %v2375_v29  ;;  %8179 = vmatpush3.bf16.msra.mxu1 %v9247_v54  ;;  %7071 = vmatprep.mubr.msk.f32.mxu1 %vm8929_vm0, %v8930_v1 }
 0x6bb   :  { %v2515_v31 = vpop.f32.mrb[40].mxu0  ;;  %8180 = vmatprep.subr.bf16.mxu1 %v8928_v0 }
 0x6bc   :  { %v6978_v32 = vpop.f32.mrb[41].mxu0 }
 0x6be   :  { %8182 = vmatpush3.bf16.msra.mxu1 %v9254_v63 }
 0x6bf   :  { %8183 = vmatprep.subr.bf16.mxu1 %v8928_v0 }
 0x6c2   :  { %8185 = vmatpush3.bf16.msra.mxu1 %v9267_v10 }
 0x6c3   :  { %8186 = vmatprep.subr.bf16.mxu1 %v8928_v0 }
 0x6c4   :  { %v8679_v33 = vpop.eup %8678 }
 0x6c5   :  { %v2445_v34 = vpop.f32.mrb[28].mxu1  ;;  %7015 = vmatmul.mubr.msk.f32.vlgmr.msra.gmra.mrb[42].mxu0 %vm317_vm2, %v8679_v33 }
 0x6c6   :  { %v2516_v35 = vadd.f32 %v2515_v31, %v2445_v34  ;;  %v6959_v37 = vpop.f32.mrb[29].mxu1  ;;  %8167 = vmatpush3.bf16.msra.mxu0 %v9250_v58  ;;  %8188 = vmatpush3.bf16.msra.mxu1 %v9275_v18 }
 0x6c7   :  { %8168 = vmatprep.subr.bf16.mxu0 %v8928_v0  ;;  %7052 = vmatprep.mubr.msk.f32.mxu0 %vm8929_vm0, %v8930_v1  ;;  %v3255_v37 = vld [vmem:[#allocation2 + $0x48] sm:$0xff] }
 0x6c8   :  { %v2519_v38 = vadd.f32 %v9328_v39, %v2516_v35  ;;  %8201 = vmatprep.subr.bf16.mxu1 %v8928_v0 }
 0x6c9   :  { %7072 = vmatmul.mubr.msk.f32.vlgmr.msra.gmra.mrb[34].mxu1 %vm317_vm2, %v8679_v33 }
 0x6ca   :  { %8680 = vtanh.f32 %v2519_v38  ;;  %8170 = vmatpush3.bf16.msra.mxu0 %v9261_v6  ;;  %8203 = vmatpush3.bf16.msra.mxu1 %v9128_v25 }
 0x6cb   :  { %8171 = vmatprep.subr.bf16.mxu0 %v8928_v0  ;;  %8204 = vmatprep.subr.bf16.mxu1 %v8928_v0 }
 0x6cc   :  { %7109 = vmatprep.mubr.msk.f32.mxu1 %vm8929_vm0, %v8930_v1 }
 0x6ce   :  { %8173 = vmatpush3.bf16.msra.mxu0 %v9271_v14  ;;  %8206 = vmatpush3.bf16.msra.mxu1 %v9133_v30 }
 0x6cf   :  { %8174 = vmatprep.subr.bf16.mxu0 %v8928_v0  ;;  %8207 = vmatprep.subr.bf16.mxu1 %v8928_v0 }
 0x6d2   :  { %8176 = vmatpush3.bf16.msra.mxu0 %v9279_v20  ;;  %8209 = vmatpush3.bf16.msra.mxu1 %v9142_v36 }
 0x6d3   :  { %8189 = vmatprep.subr.bf16.mxu0 %v8928_v0  ;;  %8210 = vmatprep.subr.bf16.mxu1 %v8928_v0 }
 0x6d4   :  { %v8681_v40 = vpop.eup %8680 }
 0x6d5   :  { %7053 = vmatmul.mubr.msk.f32.vlgmr.msra.gmra.mrb[44].mxu0 %vm317_vm2, %v8681_v40 }
 0x6d6   :  { %8191 = vmatpush3.bf16.msra.mxu0 %v9097_v8  ;;  %7090 = vmatprep.mubr.msk.f32.mxu0 %vm8929_vm0, %v8930_v1 }
 0x6d7   :  { %8192 = vmatprep.subr.bf16.mxu0 %v8928_v0  ;;  %8212 = vmatpush3.bf16.msra.mxu1 %v9149_v42 }
 0x6d8   :  { %8225 = vmatprep.subr.bf16.mxu1 %v8928_v0 }
 0x6da   :  { %8194 = vmatpush3.bf16.msra.mxu0 %v9101_v12 }
 0x6db   :  { %8195 = vmatprep.subr.bf16.mxu0 %v8928_v0 }
 0x6de   :  { %8197 = vmatpush3.bf16.msra.mxu0 %v9105_v16 }
 0x6df   :  { %8198 = vmatprep.subr.bf16.mxu0 %v8928_v0 }
 0x6e2   :  { %8200 = vmatpush3.bf16.msra.mxu0 %v9111_v19 }
 0x6e3   :  { %8213 = vmatprep.subr.bf16.mxu0 %v8928_v0 }
 0x77c   :  { %v2593_v43 = vpop.f32.mrb[30].mxu1 }
 0x77d   :  { %v2597_v44 = vadd.f32 %v2593_v43, %v2523_v41  ;;  %v6997_v46 = vpop.f32.mrb[31].mxu1 }
 0x77f   :  { %8682 = vtanh.f32 %v2597_v44 }
 0x789   :  { %v8683_v47 = vpop.eup %8682 }
 0x78a   :  { %7091 = vmatmul.mubr.msk.f32.vlgmr.msra.gmra.mrb[46].mxu0 %vm317_vm2, %v8683_v47 }
 0x78b   :  { %8215 = vmatpush3.bf16.msra.mxu0 %v9177_v57  ;;  %7128 = vmatprep.mubr.msk.f32.mxu0 %vm8929_vm0, %v8930_v1 }
 0x78c   :  { %v2737_v48 = vpop.f32.mrb[32].mxu1  ;;  %8216 = vmatprep.subr.bf16.mxu0 %v8928_v0 }
 0x78d   :  { %v7035_v49 = vpop.f32.mrb[33].mxu1 }
 0x78f   :  { %8218 = vmatpush3.bf16.msra.mxu0 %v9181_v61 }
 0x790   :  { %8219 = vmatprep.subr.bf16.mxu0 %v8928_v0 }
 0x793   :  { %8221 = vmatpush3.bf16.msra.mxu0 %v9187_v2 }
 0x794   :  { %8222 = vmatprep.subr.bf16.mxu0 %v8928_v0 }
 0x797   :  { %8224 = vmatpush3.bf16.msra.mxu0 %v9191_v5 }
 0x798   :  { %v2667_v50 = vpop.f32.mrb[42].mxu0  ;;  %8237 = vmatprep.subr.bf16.mxu0 %v8928_v0 }
 0x799   :  { %v2738_v51 = vadd.f32 %v2737_v48, %v2667_v50  ;;  %v7016_v52 = vpop.f32.mrb[43].mxu0 }
 0x79a   :  { %7129 = vmatmul.mubr.msk.f32.vlgmr.msra.gmra.mrb[48].mxu0 %vm317_vm2, %v8683_v47 }
 0x79b   :  { %v2741_v53 = vadd.f32 %v9238_v45, %v2738_v51  ;;  %8239 = vmatpush3.bf16.msra.mxu0 %v9247_v54  ;;  %7166 = vmatprep.mubr.msk.f32.mxu0 %vm8929_vm0, %v8930_v1 }
 0x79c   :  { %v2881_v55 = vpop.f32.mrb[34].mxu1  ;;  %8240 = vmatprep.subr.bf16.mxu0 %v8928_v0 }
 0x79d   :  { %8684 = vtanh.f32 %v2741_v53  ;;  %v7073_v56 = vpop.f32.mrb[35].mxu1 }
 0x79f   :  { %8242 = vmatpush3.bf16.msra.mxu0 %v9254_v63 }
 0x7a0   :  { %8243 = vmatprep.subr.bf16.mxu0 %v8928_v0 }
 0x7a3   :  { %8245 = vmatpush3.bf16.msra.mxu0 %v9267_v10 }
 0x7a4   :  { %8246 = vmatprep.subr.bf16.mxu0 %v8928_v0 }
 0x7a7   :  { %v8685_v59 = vpop.eup %8684  ;;  %8248 = vmatpush3.bf16.msra.mxu0 %v9275_v18 }
 0x7a8   :  { %v2811_v45 = vpop.f32.mrb[44].mxu0  ;;  %7110 = vmatmul.mubr.msk.f32.vlgmr.msra.gmra.mrb[36].mxu1 %vm317_vm2, %v8685_v59  ;;  %8261 = vmatprep.subr.bf16.mxu0 %v8928_v0 }
 0x7a9   :  { %v2882_v60 = vadd.f32 %v2881_v55, %v2811_v45  ;;  %v7054_v62 = vpop.f32.mrb[45].mxu0  ;;  %8227 = vmatpush3.bf16.msra.mxu1 %v9250_v58  ;;  %7147 = vmatprep.mubr.msk.f32.mxu1 %vm8929_vm0, %v8930_v1  ;;  %v9750_v45 = vld [vmem:[%s10044_s5 + $0x2] ss:$0 sm:$0xff]  ;;  %s8931_s5 = smov [#allocation15]  }
 0x7aa   :  { %7167 = vmatmul.mubr.msk.f32.vlgmr.msra.gmra.mrb[50].mxu0 %vm317_vm2, %v8685_v59  ;;  %8228 = vmatprep.subr.bf16.mxu1 %v8928_v0  ;;  %s5635_s12 = sshll.u32 %s8931_s5, 4  ;;  %s5636_s12 = int_to_ptr.vmem [resolvable:$true] %s5635_s12 }
 0x7ab   :  { %v2885_v3 = vadd.f32 %v9328_v39, %v2882_v60  ;;  %8263 = vmatpush3.bf16.msra.mxu0 %v9128_v25  ;;  %7204 = vmatprep.mubr.msk.f32.mxu0 %vm8929_vm0, %v8930_v1  ;;  %s8864_s27 = scalar_lea.vmem %s5636_s12, 384  ;;  %p8869_p7 = scmp.lt.s32.totalorder %s5636_s12, %s5636_s12 }
 0x7ac   :  { %8264 = vmatprep.subr.bf16.mxu0 %v8928_v0  ;;  %p8865_p6 = scmp.ne.s32.totalorder %s5636_s12, %s8864_s27  ;;  %p8870_p8 = scmp.lt.s32.totalorder %s8864_s27, %s8864_s27 }
 0x7ad   :  { %8686 = vtanh.f32 %v2885_v3  ;;  %8230 = vmatpush3.bf16.msra.mxu1 %v9261_v6  ;;  %v3621_v3 = vld [vmem:[#allocation2 + $0x50] sm:$0xff] }
 0x7ae   :  { %8231 = vmatprep.subr.bf16.mxu1 %v8928_v0  ;;  %p8871_p9 = por %p8870_p8, %p8869_p7 }
 0x7af   :  { %8266 = vmatpush3.bf16.msra.mxu0 %v9133_v30 }
 0x7b0   :  { %8267 = vmatprep.subr.bf16.mxu0 %v8928_v0  ;;  %p8872_p10 = pnand %p8871_p9, %p8865_p6 }
 0x7b1   :  { %8233 = vmatpush3.bf16.msra.mxu1 %v9271_v14 }
 0x7b2   :  { %8234 = vmatprep.subr.bf16.mxu1 %v8928_v0 }
 0x7b3   :  { %8269 = vmatpush3.bf16.msra.mxu0 %v9142_v36 }
 0x7b4   :  { %8270 = vmatprep.subr.bf16.mxu0 %v8928_v0 }
 0x7b5   :  { %8236 = vmatpush3.bf16.msra.mxu1 %v9279_v20 }
 0x7b6   :  { %8249 = vmatprep.subr.bf16.mxu1 %v8928_v0 }
 0x7b7   :  { %v8687_v4 = vpop.eup %8686  ;;  %8272 = vmatpush3.bf16.msra.mxu0 %v9149_v42 }
 0x7b8   :  { %7148 = vmatmul.mubr.msk.f32.vlgmr.msra.gmra.mrb[38].mxu1 %vm317_vm2, %v8687_v4  ;;  %8285 = vmatprep.subr.bf16.mxu0 %v8928_v0 }
 0x7b9   :  { %8251 = vmatpush3.bf16.msra.mxu1 %v9097_v8  ;;  %7185 = vmatprep.mubr.msk.f32.mxu1 %vm8929_vm0, %v8930_v1 }
 0x7ba   :  { %8252 = vmatprep.subr.bf16.mxu1 %v8928_v0 }
 0x7bd   :  { %8254 = vmatpush3.bf16.msra.mxu1 %v9101_v12 }
 0x7be   :  { %8255 = vmatprep.subr.bf16.mxu1 %v8928_v0 }
 0x7c1   :  { %8257 = vmatpush3.bf16.msra.mxu1 %v9105_v16 }
 0x7c2   :  { %8258 = vmatprep.subr.bf16.mxu1 %v8928_v0 }
 0x7c5   :  { %8260 = vmatpush3.bf16.msra.mxu1 %v9111_v19 }
 0x7c6   :  { %8273 = vmatprep.subr.bf16.mxu1 %v8928_v0 }
 0x85d   :  { %v2959_v9 = vpop.f32.mrb[46].mxu0 }
 0x85e   :  { %v2963_v11 = vadd.f32 %v2959_v9, %v2889_v7  ;;  %v7092_v13 = vpop.f32.mrb[47].mxu0 }
 0x860   :  { %8688 = vtanh.f32 %v2963_v11 }
 0x86a   :  { %v8689_v15 = vpop.eup %8688 }
 0x86b   :  { %7186 = vmatmul.mubr.msk.f32.vlgmr.msra.gmra.mrb[40].mxu1 %vm317_vm2, %v8689_v15 }
 0x86c   :  { %8275 = vmatpush3.bf16.msra.mxu1 %v9177_v57  ;;  %7223 = vmatprep.mubr.msk.f32.mxu1 %vm8929_vm0, %v8930_v1 }
 0x86d   :  { %v3103_v17 = vpop.f32.mrb[48].mxu0  ;;  %8276 = vmatprep.subr.bf16.mxu1 %v8928_v0 }
 0x86e   :  { %v7130_v21 = vpop.f32.mrb[49].mxu0 }
 0x870   :  { %8278 = vmatpush3.bf16.msra.mxu1 %v9181_v61 }
 0x871   :  { %8279 = vmatprep.subr.bf16.mxu1 %v8928_v0 }
 0x874   :  { %8281 = vmatpush3.bf16.msra.mxu1 %v9187_v2 }
 0x875   :  { %8282 = vmatprep.subr.bf16.mxu1 %v8928_v0 }
 0x878   :  { %8284 = vmatpush3.bf16.msra.mxu1 %v9191_v5 }
 0x879   :  { %8297 = vmatprep.subr.bf16.mxu1 %v8928_v0 }
 0x87b   :  { %v3033_v22 = vpop.f32.mrb[36].mxu1  ;;  %7224 = vmatmul.mubr.msk.f32.vlgmr.msra.gmra.mrb[42].mxu1 %vm317_vm2, %v8689_v15 }
 0x87c   :  { %v3104_v23 = vadd.f32 %v3103_v17, %v3033_v22  ;;  %v7111_v24 = vpop.f32.mrb[37].mxu1  ;;  %8299 = vmatpush3.bf16.msra.mxu1 %v9247_v54  ;;  %7261 = vmatprep.mubr.msk.f32.mxu1 %vm8929_vm0, %v8930_v1 }
 0x87d   :  { %v3247_v26 = vpop.f32.mrb[50].mxu0  ;;  %8300 = vmatprep.subr.bf16.mxu1 %v8928_v0 }
 0x87e   :  { %v3107_v28 = vadd.f32 %v9674_v27, %v3104_v23  ;;  %v7168_v29 = vpop.f32.mrb[51].mxu0 }
 0x880   :  { %8690 = vtanh.f32 %v3107_v28  ;;  %8302 = vmatpush3.bf16.msra.mxu1 %v9254_v63 }
 0x881   :  { %8303 = vmatprep.subr.bf16.mxu1 %v8928_v0 }
 0x884   :  { %8305 = vmatpush3.bf16.msra.mxu1 %v9267_v10 }
 0x885   :  { %8306 = vmatprep.subr.bf16.mxu1 %v8928_v0 }
 0x888   :  { %8308 = vmatpush3.bf16.msra.mxu1 %v9275_v18 }
 0x889   :  { %8321 = vmatprep.subr.bf16.mxu1 %v8928_v0 }
 0x88a   :  { %v8691_v31 = vpop.eup %8690 }
 0x88b   :  { %v3177_v32 = vpop.f32.mrb[38].mxu1  ;;  %7205 = vmatmul.mubr.msk.f32.vlgmr.msra.gmra.mrb[52].mxu0 %vm317_vm2, %v8691_v31  ;;  %7262 = vmatmul.mubr.msk.f32.vlgmr.msra.gmra.mrb[44].mxu1 %vm317_vm2, %v8691_v31 }
 0x88c   :  { %v3248_v33 = vadd.f32 %v3247_v26, %v3177_v32  ;;  %v7149_v34 = vpop.f32.mrb[39].mxu1  ;;  %8287 = vmatpush3.bf16.msra.mxu0 %v9250_v58  ;;  %7242 = vmatprep.mubr.msk.f32.mxu0 %vm8929_vm0, %v8930_v1 }
 0x88d   :  { %8288 = vmatprep.subr.bf16.mxu0 %v8928_v0  ;;  %8323 = vmatpush3.bf16.msra.mxu1 %v9128_v25 }
 0x88e   :  { %v3251_v35 = vadd.f32 %v9328_v39, %v3248_v33  ;;  %8324 = vmatprep.subr.bf16.mxu1 %v8928_v0  ;;  %7299 = vmatprep.mubr.msk.f32.mxu1 %vm8929_vm0, %v8930_v1 }
 0x890   :  { %8692 = vtanh.f32 %v3251_v35  ;;  %8290 = vmatpush3.bf16.msra.mxu0 %v9261_v6  ;;  %v3987_v35 = vld [vmem:[#allocation2 + $0x58] sm:$0xff] }
 0x891   :  { %8291 = vmatprep.subr.bf16.mxu0 %v8928_v0  ;;  %8326 = vmatpush3.bf16.msra.mxu1 %v9133_v30 }
 0x892   :  { %8327 = vmatprep.subr.bf16.mxu1 %v8928_v0 }
 0x894   :  { %8293 = vmatpush3.bf16.msra.mxu0 %v9271_v14 }
 0x895   :  { %8294 = vmatprep.subr.bf16.mxu0 %v8928_v0  ;;  %8329 = vmatpush3.bf16.msra.mxu1 %v9142_v36 }
 0x896   :  { %8330 = vmatprep.subr.bf16.mxu1 %v8928_v0 }
 0x898   :  { %8296 = vmatpush3.bf16.msra.mxu0 %v9279_v20 }
 0x899   :  { %8309 = vmatprep.subr.bf16.mxu0 %v8928_v0  ;;  %8332 = vmatpush3.bf16.msra.mxu1 %v9149_v42 }
 0x89a   :  { %v8693_v39 = vpop.eup %8692  ;;  %8345 = vmatprep.subr.bf16.mxu1 %v8928_v0 }
 0x89b   :  { %7243 = vmatmul.mubr.msk.f32.vlgmr.msra.gmra.mrb[54].mxu0 %vm317_vm2, %v8693_v39 }
 0x89c   :  { %8311 = vmatpush3.bf16.msra.mxu0 %v9097_v8  ;;  %7280 = vmatprep.mubr.msk.f32.mxu0 %vm8929_vm0, %v8930_v1 }
 0x89d   :  { %8312 = vmatprep.subr.bf16.mxu0 %v8928_v0 }
 0x8a0   :  { %8314 = vmatpush3.bf16.msra.mxu0 %v9101_v12 }
 0x8a1   :  { %8315 = vmatprep.subr.bf16.mxu0 %v8928_v0 }
 0x8a4   :  { %8317 = vmatpush3.bf16.msra.mxu0 %v9105_v16 }
 0x8a5   :  { %8318 = vmatprep.subr.bf16.mxu0 %v8928_v0 }
 0x8a8   :  { %8320 = vmatpush3.bf16.msra.mxu0 %v9111_v19 }
 0x8a9   :  { %8333 = vmatprep.subr.bf16.mxu0 %v8928_v0 }
 0x93e   :  { %v3325_v38 = vpop.f32.mrb[40].mxu1 }
 0x93f   :  { %v3329_v40 = vadd.f32 %v3325_v38, %v3255_v37  ;;  %v7187_v41 = vpop.f32.mrb[41].mxu1 }
 0x941   :  { %8694 = vtanh.f32 %v3329_v40 }
 0x94b   :  { %v8695_v43 = vpop.eup %8694 }
 0x94c   :  { %7281 = vmatmul.mubr.msk.f32.vlgmr.msra.gmra.mrb[56].mxu0 %vm317_vm2, %v8695_v43 }
 0x94d   :  { %8335 = vmatpush3.bf16.msra.mxu0 %v9177_v57  ;;  %7318 = vmatprep.mubr.msk.f32.mxu0 %vm8929_vm0, %v8930_v1 }
 0x94e   :  { %v3469_v44 = vpop.f32.mrb[42].mxu1  ;;  %8336 = vmatprep.subr.bf16.mxu0 %v8928_v0 }
 0x94f   :  { %v7225_v46 = vpop.f32.mrb[43].mxu1 }
 0x951   :  { %8338 = vmatpush3.bf16.msra.mxu0 %v9181_v61 }
 0x952   :  { %8339 = vmatprep.subr.bf16.mxu0 %v8928_v0 }
 0x955   :  { %8341 = vmatpush3.bf16.msra.mxu0 %v9187_v2 }
 0x956   :  { %8342 = vmatprep.subr.bf16.mxu0 %v8928_v0 }
 0x959   :  { %8344 = vmatpush3.bf16.msra.mxu0 %v9191_v5 }
 0x95a   :  { %8357 = vmatprep.subr.bf16.mxu0 %v8928_v0 }
 0x95c   :  { %7319 = vmatmul.mubr.msk.f32.vlgmr.msra.gmra.mrb[58].mxu0 %vm317_vm2, %v8695_v43 }
 0x95d   :  { %8359 = vmatpush3.bf16.msra.mxu0 %v9247_v54  ;;  %7356 = vmatprep.mubr.msk.f32.mxu0 %vm8929_vm0, %v8930_v1 }
 0x95e   :  { %v3399_v47 = vpop.f32.mrb[52].mxu0  ;;  %v3613_v48 = vpop.f32.mrb[44].mxu1  ;;  %8360 = vmatprep.subr.bf16.mxu0 %v8928_v0 }
 0x95f   :  { %v3470_v49 = vadd.f32 %v3469_v44, %v3399_v47  ;;  %v7206_v50 = vpop.f32.mrb[53].mxu0  ;;  %v7263_v51 = vpop.f32.mrb[45].mxu1 }
 0x961   :  { %v3473_v52 = vadd.f32 %v9674_v27, %v3470_v49  ;;  %8362 = vmatpush3.bf16.msra.mxu0 %v9254_v63 }
 0x962   :  { %8363 = vmatprep.subr.bf16.mxu0 %v8928_v0 }
 0x963   :  { %8696 = vtanh.f32 %v3473_v52 }
 0x965   :  { %8365 = vmatpush3.bf16.msra.mxu0 %v9267_v10 }
 0x966   :  { %8366 = vmatprep.subr.bf16.mxu0 %v8928_v0 }
 0x969   :  { %8368 = vmatpush3.bf16.msra.mxu0 %v9275_v18 }
 0x96a   :  { %8381 = vmatprep.subr.bf16.mxu0 %v8928_v0 }
 0x96d   :  { %v8697_v53 = vpop.eup %8696 }
 0x96e   :  { %v3543_v55 = vpop.f32.mrb[54].mxu0  ;;  %7300 = vmatmul.mubr.msk.f32.vlgmr.msra.gmra.mrb[46].mxu1 %vm317_vm2, %v8697_v53  ;;  %7357 = vmatmul.mubr.msk.f32.vlgmr.msra.gmra.mrb[60].mxu0 %vm317_vm2, %v8697_v53 }
 0x96f   :  { %v3614_v56 = vadd.f32 %v3613_v48, %v3543_v55  ;;  %v7244_v59 = vpop.f32.mrb[55].mxu0  ;;  %8347 = vmatpush3.bf16.msra.mxu1 %v9250_v58  ;;  %7337 = vmatprep.mubr.msk.f32.mxu1 %vm8929_vm0, %v8930_v1 }
 0x970   :  { %8348 = vmatprep.subr.bf16.mxu1 %v8928_v0  ;;  %8383 = vmatpush3.bf16.msra.mxu0 %v9128_v25 }
 0x971   :  { %v3617_v60 = vadd.f32 %v9750_v45, %v3614_v56  ;;  %8384 = vmatprep.subr.bf16.mxu0 %v8928_v0  ;;  %7394 = vmatprep.mubr.msk.f32.mxu0 %vm8929_vm0, %v8930_v1 }
 0x973   :  { %8698 = vtanh.f32 %v3617_v60  ;;  %8350 = vmatpush3.bf16.msra.mxu1 %v9261_v6  ;;  %v4353_v60 = vld [vmem:[#allocation2 + $0x60] sm:$0xff] }
 0x974   :  { %8351 = vmatprep.subr.bf16.mxu1 %v8928_v0  ;;  %8386 = vmatpush3.bf16.msra.mxu0 %v9133_v30 }
 0x975   :  { %8387 = vmatprep.subr.bf16.mxu0 %v8928_v0 }
 0x977   :  { %8353 = vmatpush3.bf16.msra.mxu1 %v9271_v14 }
 0x978   :  { %8354 = vmatprep.subr.bf16.mxu1 %v8928_v0  ;;  %8389 = vmatpush3.bf16.msra.mxu0 %v9142_v36 }
 0x979   :  { %8390 = vmatprep.subr.bf16.mxu0 %v8928_v0 }
 0x97b   :  { %8356 = vmatpush3.bf16.msra.mxu1 %v9279_v20 }
 0x97c   :  { %8369 = vmatprep.subr.bf16.mxu1 %v8928_v0  ;;  %8392 = vmatpush3.bf16.msra.mxu0 %v9149_v42 }
 0x97d   :  { %v8699_v62 = vpop.eup %8698  ;;  %8405 = vmatprep.subr.bf16.mxu0 %v8928_v0 }
 0x97e   :  { %7338 = vmatmul.mubr.msk.f32.vlgmr.msra.gmra.mrb[48].mxu1 %vm317_vm2, %v8699_v62 }
 0x97f   :  { %8371 = vmatpush3.bf16.msra.mxu1 %v9097_v8  ;;  %7375 = vmatprep.mubr.msk.f32.mxu1 %vm8929_vm0, %v8930_v1 }
 0x980   :  { %8372 = vmatprep.subr.bf16.mxu1 %v8928_v0 }
 0x983   :  { %8374 = vmatpush3.bf16.msra.mxu1 %v9101_v12 }
 0x984   :  { %8375 = vmatprep.subr.bf16.mxu1 %v8928_v0 }
 0x987   :  { %8377 = vmatpush3.bf16.msra.mxu1 %v9105_v16 }
 0x988   :  { %8378 = vmatprep.subr.bf16.mxu1 %v8928_v0 }
 0x98b   :  { %8380 = vmatpush3.bf16.msra.mxu1 %v9111_v19 }
 0x98c   :  { %8393 = vmatprep.subr.bf16.mxu1 %v8928_v0 }
 0xa1f   :  { %v3691_v4 = vpop.f32.mrb[56].mxu0 }
 0xa20   :  { %v3695_v7 = vadd.f32 %v3691_v4, %v3621_v3  ;;  %v7282_v9 = vpop.f32.mrb[57].mxu0 }
 0xa22   :  { %8700 = vtanh.f32 %v3695_v7 }
 0xa2c   :  { %v8701_v11 = vpop.eup %8700 }
 0xa2d   :  { %7376 = vmatmul.mubr.msk.f32.vlgmr.msra.gmra.mrb[50].mxu1 %vm317_vm2, %v8701_v11 }
 0xa2e   :  { %8395 = vmatpush3.bf16.msra.mxu1 %v9177_v57  ;;  %7413 = vmatprep.mubr.msk.f32.mxu1 %vm8929_vm0, %v8930_v1 }
 0xa2f   :  { %v3835_v13 = vpop.f32.mrb[58].mxu0  ;;  %8396 = vmatprep.subr.bf16.mxu1 %v8928_v0 }
 0xa30   :  { %v7320_v15 = vpop.f32.mrb[59].mxu0 }
 0xa32   :  { %8398 = vmatpush3.bf16.msra.mxu1 %v9181_v61 }
 0xa33   :  { %8399 = vmatprep.subr.bf16.mxu1 %v8928_v0 }
 0xa36   :  { %8401 = vmatpush3.bf16.msra.mxu1 %v9187_v2 }
 0xa37   :  { %8402 = vmatprep.subr.bf16.mxu1 %v8928_v0 }
 0xa3a   :  { %8404 = vmatpush3.bf16.msra.mxu1 %v9191_v5 }
 0xa3b   :  { %8417 = vmatprep.subr.bf16.mxu1 %v8928_v0 }
 0xa3d   :  { %7414 = vmatmul.mubr.msk.f32.vlgmr.msra.gmra.mrb[52].mxu1 %vm317_vm2, %v8701_v11 }
 0xa3e   :  { %8419 = vmatpush3.bf16.msra.mxu1 %v9247_v54  ;;  %7451 = vmatprep.mubr.msk.f32.mxu1 %vm8929_vm0, %v8930_v1 }
 0xa3f   :  { %8420 = vmatprep.subr.bf16.mxu1 %v8928_v0 }
 0xa41   :  { %v3765_v17 = vpop.f32.mrb[46].mxu1  ;;  %v3979_v21 = vpop.f32.mrb[60].mxu0 }
 0xa42   :  { %v3836_v22 = vadd.f32 %v3835_v13, %v3765_v17  ;;  %v7301_v23 = vpop.f32.mrb[47].mxu1  ;;  %v7358_v24 = vpop.f32.mrb[61].mxu0  ;;  %8422 = vmatpush3.bf16.msra.mxu1 %v9254_v63 }
 0xa43   :  { %8423 = vmatprep.subr.bf16.mxu1 %v8928_v0 }
 0xa44   :  { %v3839_v26 = vadd.f32 %v9674_v27, %v3836_v22 }
 0xa46   :  { %8702 = vtanh.f32 %v3839_v26  ;;  %8425 = vmatpush3.bf16.msra.mxu1 %v9267_v10 }
 0xa47   :  { %8426 = vmatprep.subr.bf16.mxu1 %v8928_v0 }
 0xa4a   :  { %8428 = vmatpush3.bf16.msra.mxu1 %v9275_v18 }
 0xa4b   :  { %8441 = vmatprep.subr.bf16.mxu1 %v8928_v0 }
 0xa50   :  { %v8703_v28 = vpop.eup %8702 }
 0xa51   :  { %v3909_v29 = vpop.f32.mrb[48].mxu1  ;;  %7395 = vmatmul.mubr.msk.f32.vlgmr.msra.gmra.mrb[62].mxu0 %vm317_vm2, %v8703_v28  ;;  %7452 = vmatmul.mubr.msk.f32.vlgmr.msra.gmra.mrb[54].mxu1 %vm317_vm2, %v8703_v28 }
 0xa52   :  { %v3980_v31 = vadd.f32 %v3979_v21, %v3909_v29  ;;  %v7339_v32 = vpop.f32.mrb[49].mxu1  ;;  %8407 = vmatpush3.bf16.msra.mxu0 %v9250_v58  ;;  %7432 = vmatprep.mubr.msk.f32.mxu0 %vm8929_vm0, %v8930_v1 }
 0xa53   :  { %8408 = vmatprep.subr.bf16.mxu0 %v8928_v0  ;;  %8443 = vmatpush3.bf16.msra.mxu1 %v9128_v25 }
 0xa54   :  { %v3983_v33 = vadd.f32 %v9750_v45, %v3980_v31  ;;  %8444 = vmatprep.subr.bf16.mxu1 %v8928_v0  ;;  %7489 = vmatprep.mubr.msk.f32.mxu1 %vm8929_vm0, %v8930_v1 }
 0xa56   :  { %8704 = vtanh.f32 %v3983_v33  ;;  %8410 = vmatpush3.bf16.msra.mxu0 %v9261_v6 }
 0xa57   :  { %8411 = vmatprep.subr.bf16.mxu0 %v8928_v0  ;;  %8446 = vmatpush3.bf16.msra.mxu1 %v9133_v30 }
 0xa58   :  { %8447 = vmatprep.subr.bf16.mxu1 %v8928_v0 }
 0xa5a   :  { %8413 = vmatpush3.bf16.msra.mxu0 %v9271_v14 }
 0xa5b   :  { %8414 = vmatprep.subr.bf16.mxu0 %v8928_v0  ;;  %8449 = vmatpush3.bf16.msra.mxu1 %v9142_v36 }
 0xa5c   :  { %8450 = vmatprep.subr.bf16.mxu1 %v8928_v0 }
 0xa5e   :  { %8416 = vmatpush3.bf16.msra.mxu0 %v9279_v20 }
 0xa5f   :  { %8429 = vmatprep.subr.bf16.mxu0 %v8928_v0  ;;  %8452 = vmatpush3.bf16.msra.mxu1 %v9149_v42 }
 0xa60   :  { %v8705_v34 = vpop.eup %8704  ;;  %8465 = vmatprep.subr.bf16.mxu1 %v8928_v0 }
 0xa61   :  { %7433 = vmatmul.mubr.msk.f32.vlgmr.msra.gmra.mrb[64].mxu0 %vm317_vm2, %v8705_v34 }
 0xa62   :  { %8431 = vmatpush3.bf16.msra.mxu0 %v9097_v8  ;;  %7470 = vmatprep.mubr.msk.f32.mxu0 %vm8929_vm0, %v8930_v1 }
 0xa63   :  { %8432 = vmatprep.subr.bf16.mxu0 %v8928_v0 }
 0xa66   :  { %8434 = vmatpush3.bf16.msra.mxu0 %v9101_v12 }
 0xa67   :  { %8435 = vmatprep.subr.bf16.mxu0 %v8928_v0 }
 0xa6a   :  { %8437 = vmatpush3.bf16.msra.mxu0 %v9105_v16 }
 0xa6b   :  { %8438 = vmatprep.subr.bf16.mxu0 %v8928_v0 }
 0xa6e   :  { %8440 = vmatpush3.bf16.msra.mxu0 %v9111_v19 }
 0xa6f   :  { %8453 = vmatprep.subr.bf16.mxu0 %v8928_v0 }
 0xb00   :  { %v4057_v39 = vpop.f32.mrb[50].mxu1 }
 0xb01   :  { %v4061_v37 = vadd.f32 %v4057_v39, %v3987_v35  ;;  %v7377_v38 = vpop.f32.mrb[51].mxu1 }
 0xb03   :  { %8706 = vtanh.f32 %v4061_v37 }
 0xb0d   :  { %v8707_v40 = vpop.eup %8706 }
 0xb0e   :  { %7471 = vmatmul.mubr.msk.f32.vlgmr.msra.gmra.mrb[66].mxu0 %vm317_vm2, %v8707_v40 }
 0xb0f   :  { %8455 = vmatpush3.bf16.msra.mxu0 %v9177_v57  ;;  %7508 = vmatprep.mubr.msk.f32.mxu0 %vm8929_vm0, %v8930_v1 }
 0xb10   :  { %v4201_v41 = vpop.f32.mrb[52].mxu1  ;;  %8456 = vmatprep.subr.bf16.mxu0 %v8928_v0 }
 0xb11   :  { %v7415_v43 = vpop.f32.mrb[53].mxu1 }
 0xb13   :  { %8458 = vmatpush3.bf16.msra.mxu0 %v9181_v61 }
 0xb14   :  { %8459 = vmatprep.subr.bf16.mxu0 %v8928_v0 }
 0xb17   :  { %8461 = vmatpush3.bf16.msra.mxu0 %v9187_v2 }
 0xb18   :  { %8462 = vmatprep.subr.bf16.mxu0 %v8928_v0 }
 0xb1b   :  { %8464 = vmatpush3.bf16.msra.mxu0 %v9191_v5 }
 0xb1c   :  { %8477 = vmatprep.subr.bf16.mxu0 %v8928_v0 }
 0xb1e   :  { %7509 = vmatmul.mubr.msk.f32.vlgmr.msra.gmra.mrb[68].mxu0 %vm317_vm2, %v8707_v40 }
 0xb1f   :  { %8479 = vmatpush3.bf16.msra.mxu0 %v9247_v54  ;;  %7546 = vmatprep.mubr.msk.f32.mxu0 %vm8929_vm0, %v8930_v1 }
 0xb20   :  { %8480 = vmatprep.subr.bf16.mxu0 %v8928_v0 }
 0xb23   :  { %8482 = vmatpush3.bf16.msra.mxu0 %v9254_v63 }
 0xb24   :  { %v4131_v44 = vpop.f32.mrb[62].mxu0  ;;  %v4345_v46 = vpop.f32.mrb[54].mxu1  ;;  %8483 = vmatprep.subr.bf16.mxu0 %v8928_v0 }
 0xb25   :  { %v4202_v47 = vadd.f32 %v4201_v41, %v4131_v44  ;;  %v7396_v48 = vpop.f32.mrb[63].mxu0  ;;  %v7453_v49 = vpop.f32.mrb[55].mxu1 }
 0xb26   :  { %v5526_v49 = vld [vmem:[#allocation12] sm:$0xff] }
 0xb27   :  { %v4205_v50 = vadd.f32 %v9674_v27, %v4202_v47  ;;  %8485 = vmatpush3.bf16.msra.mxu0 %v9267_v10 }
 0xb28   :  { %8486 = vmatprep.subr.bf16.mxu0 %v8928_v0 }
 0xb29   :  { %8708 = vtanh.f32 %v4205_v50 }
 0xb2b   :  { %8488 = vmatpush3.bf16.msra.mxu0 %v9275_v18 }
 0xb2c   :  { %8501 = vmatprep.subr.bf16.mxu0 %v8928_v0 }
 0xb33   :  { %v8709_v51 = vpop.eup %8708 }
 0xb34   :  { %v4275_v52 = vpop.f32.mrb[64].mxu0  ;;  %7490 = vmatmul.mubr.msk.f32.vlgmr.msra.gmra.mrb[56].mxu1 %vm317_vm2, %v8709_v51  ;;  %7547 = vmatmul.mubr.msk.f32.vlgmr.msra.gmra.mrb[70].mxu0 %vm317_vm2, %v8709_v51  ;;  %v5528_v51 = vld [vmem:[#allocation12 + $0x10] sm:$0xff] }
 0xb35   :  { %v4346_v53 = vadd.f32 %v4345_v46, %v4275_v52  ;;  %v7434_v55 = vpop.f32.mrb[65].mxu0  ;;  %8467 = vmatpush3.bf16.msra.mxu1 %v9250_v58  ;;  %7527 = vmatprep.mubr.msk.f32.mxu1 %vm8929_vm0, %v8930_v1  ;;  %v5529_v52 = vld [vmem:[#allocation12 + $0x18] sm:$0xff] }
 0xb36   :  { %8468 = vmatprep.subr.bf16.mxu1 %v8928_v0  ;;  %8503 = vmatpush3.bf16.msra.mxu0 %v9128_v25  ;;  %v5530_v55 = vld [vmem:[#allocation12 + $0x20] sm:$0xff] }
 0xb37   :  { %v4349_v56 = vadd.f32 %v9750_v45, %v4346_v53  ;;  %8504 = vmatprep.subr.bf16.mxu0 %v8928_v0  ;;  %7584 = vmatprep.mubr.msk.f32.mxu0 %vm8929_vm0, %v8930_v1  ;;  %v8625_v53 = vpack.c.bf16 %v5529_v52, %v5528_v51 }
 0xb39   :  { %8710 = vtanh.f32 %v4349_v56  ;;  %8470 = vmatpush3.bf16.msra.mxu1 %v9261_v6  ;;  %v5531_v56 = vld [vmem:[#allocation12 + $0x28] sm:$0xff] }
 0xb3a   :  { %8471 = vmatprep.subr.bf16.mxu1 %v8928_v0  ;;  %8506 = vmatpush3.bf16.msra.mxu0 %v9133_v30 }
 0xb3b   :  { %8507 = vmatprep.subr.bf16.mxu0 %v8928_v0 }
 0xb3d   :  { %8473 = vmatpush3.bf16.msra.mxu1 %v9271_v14 }
 0xb3e   :  { %8474 = vmatprep.subr.bf16.mxu1 %v8928_v0  ;;  %8509 = vmatpush3.bf16.msra.mxu0 %v9142_v36 }
 0xb3f   :  { %8510 = vmatprep.subr.bf16.mxu0 %v8928_v0 }
 0xb41   :  { %8476 = vmatpush3.bf16.msra.mxu1 %v9279_v20 }
 0xb42   :  { %8489 = vmatprep.subr.bf16.mxu1 %v8928_v0  ;;  %8512 = vmatpush3.bf16.msra.mxu0 %v9149_v42 }
 0xb43   :  { %v8711_v59 = vpop.eup %8710  ;;  %8525 = vmatprep.subr.bf16.mxu0 %v8928_v0 }
 0xb44   :  { %7528 = vmatmul.mubr.msk.f32.vlgmr.msra.gmra.mrb[58].mxu1 %vm317_vm2, %v8711_v59  ;;  %v8628_v59 = vpack.c.bf16 %v5531_v56, %v5530_v55 }
 0xb45   :  { %8491 = vmatpush3.bf16.msra.mxu1 %v9097_v8  ;;  %7565 = vmatprep.mubr.msk.f32.mxu1 %vm8929_vm0, %v8930_v1 }
 0xb46   :  { %8492 = vmatprep.subr.bf16.mxu1 %v8928_v0 }
 0xb49   :  { %8494 = vmatpush3.bf16.msra.mxu1 %v9101_v12 }
 0xb4a   :  { %8495 = vmatprep.subr.bf16.mxu1 %v8928_v0 }
 0xb4d   :  { %8497 = vmatpush3.bf16.msra.mxu1 %v9105_v16 }
 0xb4e   :  { %8498 = vmatprep.subr.bf16.mxu1 %v8928_v0 }
 0xb51   :  { %8500 = vmatpush3.bf16.msra.mxu1 %v9111_v19 }
 0xb52   :  { %8513 = vmatprep.subr.bf16.mxu1 %v8928_v0 }
 0xbe1   :  { %v4423_v62 = vpop.f32.mrb[66].mxu0 }
 0xbe2   :  { %v4427_v8 = vadd.f32 %v4423_v62, %v4353_v60  ;;  %v7472_v3 = vpop.f32.mrb[67].mxu0  ;;  %v5532_v60 = vld [vmem:[#allocation12 + $0x30] sm:$0xff] }
 0xbe4   :  { %8712 = vtanh.f32 %v4427_v8 }
 0xbee   :  { %v8713_v4 = vpop.eup %8712 }
 0xbef   :  { %7566 = vmatmul.mubr.msk.f32.vlgmr.msra.gmra.mrb[60].mxu1 %vm317_vm2, %v8713_v4 }
 0xbf0   :  { %8515 = vmatpush3.bf16.msra.mxu1 %v9177_v57  ;;  %7603 = vmatprep.mubr.msk.f32.mxu1 %vm8929_vm0, %v8930_v1 }
 0xbf1   :  { %v4567_v12 = vpop.f32.mrb[68].mxu0  ;;  %8516 = vmatprep.subr.bf16.mxu1 %v8928_v0 }
 0xbf2   :  { %v7510_v16 = vpop.f32.mrb[69].mxu0 }
 0xbf4   :  { %8518 = vmatpush3.bf16.msra.mxu1 %v9181_v61 }
 0xbf5   :  { %8519 = vmatprep.subr.bf16.mxu1 %v8928_v0 }
 0xbf8   :  { %8521 = vmatpush3.bf16.msra.mxu1 %v9187_v2 }
 0xbf9   :  { %8522 = vmatprep.subr.bf16.mxu1 %v8928_v0 }
 0xbfc   :  { %8524 = vmatpush3.bf16.msra.mxu1 %v9191_v5 }
 0xbfd   :  { %8537 = vmatprep.subr.bf16.mxu1 %v8928_v0 }
 0xbff   :  { %7604 = vmatmul.mubr.msk.f32.vlgmr.msra.gmra.mrb[62].mxu1 %vm317_vm2, %v8713_v4 }
 0xc00   :  { %8539 = vmatpush3.bf16.msra.mxu1 %v9247_v54  ;;  %7641 = vmatprep.mubr.msk.f32.mxu1 %vm8929_vm0, %v8930_v1 }
 0xc01   :  { %8540 = vmatprep.subr.bf16.mxu1 %v8928_v0 }
 0xc04   :  { %8542 = vmatpush3.bf16.msra.mxu1 %v9254_v63 }
 0xc05   :  { %8543 = vmatprep.subr.bf16.mxu1 %v8928_v0 }
 0xc07   :  { %v4497_v19 = vpop.f32.mrb[56].mxu1  ;;  %v4711_v7 = vpop.f32.mrb[70].mxu0 }
 0xc08   :  { %v4568_v9 = vadd.f32 %v4567_v12, %v4497_v19  ;;  %v7491_v11 = vpop.f32.mrb[57].mxu1  ;;  %v7548_v13 = vpop.f32.mrb[71].mxu0  ;;  %8545 = vmatpush3.bf16.msra.mxu1 %v9267_v10 }
 0xc09   :  { %8546 = vmatprep.subr.bf16.mxu1 %v8928_v0 }
 0xc0a   :  { %v4571_v15 = vadd.f32 %v9674_v27, %v4568_v9 }
 0xc0c   :  { %8714 = vtanh.f32 %v4571_v15  ;;  %8548 = vmatpush3.bf16.msra.mxu1 %v9275_v18 }
 0xc0d   :  { %8561 = vmatprep.subr.bf16.mxu1 %v8928_v0 }
 0xc16   :  { %v8715_v17 = vpop.eup %8714 }
 0xc17   :  { %v4641_v21 = vpop.f32.mrb[58].mxu1  ;;  %7585 = vmatmul.mubr.msk.f32.vlgmr.msra.gmra.mrb[72].mxu0 %vm317_vm2, %v8715_v17  ;;  %7642 = vmatmul.mubr.msk.f32.vlgmr.msra.gmra.mrb[64].mxu1 %vm317_vm2, %v8715_v17 }
 0xc18   :  { %v4712_v22 = vadd.f32 %v4711_v7, %v4641_v21  ;;  %v7529_v23 = vpop.f32.mrb[59].mxu1  ;;  %8527 = vmatpush3.bf16.msra.mxu0 %v9250_v58  ;;  %7622 = vmatprep.mubr.msk.f32.mxu0 %vm8929_vm0, %v8930_v1 }
 0xc19   :  { %8528 = vmatprep.subr.bf16.mxu0 %v8928_v0  ;;  %8563 = vmatpush3.bf16.msra.mxu1 %v9177_v57 }
 0xc1a   :  { %v4715_v24 = vadd.f32 %v9750_v45, %v4712_v22  ;;  %8564 = vmatprep.subr.bf16.mxu1 %v8928_v0  ;;  %7679 = vmatprep.mubr.msk.f32.mxu1 %vm8929_vm0, %v8930_v1 }
 0xc1c   :  { %8716 = vtanh.f32 %v4715_v24  ;;  %8530 = vmatpush3.bf16.msra.mxu0 %v9261_v6 }
 0xc1d   :  { %8531 = vmatprep.subr.bf16.mxu0 %v8928_v0  ;;  %8566 = vmatpush3.bf16.msra.mxu1 %v9181_v61  ;;  %v4719_v61 = vld [vmem:[#allocation2 + $0x68] sm:$0xff] }
 0xc1e   :  { %8567 = vmatprep.subr.bf16.mxu1 %v8928_v0 }
 0xc20   :  { %8533 = vmatpush3.bf16.msra.mxu0 %v9271_v14 }
 0xc21   :  { %8534 = vmatprep.subr.bf16.mxu0 %v8928_v0  ;;  %8569 = vmatpush3.bf16.msra.mxu1 %v9187_v2 }
 0xc22   :  { %8570 = vmatprep.subr.bf16.mxu1 %v8928_v0 }
 0xc24   :  { %8536 = vmatpush3.bf16.msra.mxu0 %v9279_v20 }
 0xc25   :  { %8572 = vmatpush3.bf16.msra.mxu1 %v9191_v5  ;;  %8549 = vmatprep.subr.bf16.mxu0 %v8928_v0 }
 0xc26   :  { %v8717_v57 = vpop.eup %8716  ;;  %8585 = vmatprep.subr.bf16.mxu1 %v8928_v0 }
 0xc27   :  { %7623 = vmatmul.mubr.msk.f32.vlgmr.msra.gmra.mrb[74].mxu0 %vm317_vm2, %v8717_v57 }
 0xc28   :  { %8551 = vmatpush3.bf16.msra.mxu0 %v9128_v25  ;;  %7660 = vmatprep.mubr.msk.f32.mxu0 %vm8929_vm0, %v8930_v1 }
 0xc29   :  { %8552 = vmatprep.subr.bf16.mxu0 %v8928_v0 }
 0xc2c   :  { %8554 = vmatpush3.bf16.msra.mxu0 %v9133_v30 }
 0xc2d   :  { %8555 = vmatprep.subr.bf16.mxu0 %v8928_v0 }
 0xc30   :  { %8557 = vmatpush3.bf16.msra.mxu0 %v9142_v36 }
 0xc31   :  { %8558 = vmatprep.subr.bf16.mxu0 %v8928_v0 }
 0xc34   :  { %8560 = vmatpush3.bf16.msra.mxu0 %v9149_v42 }
 0xc35   :  { %8573 = vmatprep.subr.bf16.mxu0 %v8928_v0 }
 0xcc2   :  { %v4789_v2 = vpop.f32.mrb[60].mxu1 }
 0xcc3   :  { %v4793_v25 = vadd.f32 %v4789_v2, %v4719_v61  ;;  %v7567_v5 = vpop.f32.mrb[61].mxu1 }
 0xcc5   :  { %8718 = vtanh.f32 %v4793_v25 }
 0xccf   :  { %v8719_v26 = vpop.eup %8718 }
 0xcd0   :  { %5615 = vst.msk [vmem:[#allocation15] sm:$0xff] %vm317_vm2, %v8719_v26  ;;  %7680 = vmatmul.mubr.msk.f32.vlgmr.msra.gmra.mrb[66].mxu1 %vm317_vm2, %v8719_v26 }
 0xcd1   :  { %8587 = vmatpush3.bf16.msra.mxu1 %v9247_v54  ;;  %7717 = vmatprep.mubr.msk.f32.mxu1 %vm8929_vm0, %v8930_v1 }
 0xcd2   :  { %v4933_v30 = vpop.f32.mrb[62].mxu1  ;;  %8588 = vmatprep.subr.bf16.mxu1 %v8928_v0 }
 0xcd3   :  { %v7605_v36 = vpop.f32.mrb[63].mxu1 }
 0xcd5   :  { %8590 = vmatpush3.bf16.msra.mxu1 %v9254_v63 }
 0xcd6   :  { %8591 = vmatprep.subr.bf16.mxu1 %v8928_v0 }
 0xcd9   :  { %8593 = vmatpush3.bf16.msra.mxu1 %v9267_v10 }
 0xcda   :  { %8594 = vmatprep.subr.bf16.mxu1 %v8928_v0 }
 0xcdd   :  { %8596 = vmatpush3.bf16.msra.mxu1 %v9275_v18 }
 0xcde   :  { %8609 = vmatprep.subr.bf16.mxu1 %v8928_v0 }
 0xcea   :  { %v4863_v42 = vpop.f32.mrb[72].mxu0  ;;  %v5077_v28 = vpop.f32.mrb[64].mxu1 }
 0xceb   :  { %v4934_v29 = vadd.f32 %v4933_v30, %v4863_v42  ;;  %v7586_v31 = vpop.f32.mrb[73].mxu0  ;;  %v7643_v32 = vpop.f32.mrb[65].mxu1 }
 0xced   :  { %v4937_v33 = vadd.f32 %v9674_v27, %v4934_v29 }
 0xcef   :  { %8720 = vtanh.f32 %v4937_v33 }
 0xcf9   :  { %v8721_v34 = vpop.eup %8720 }
 0xcfa   :  { %v5007_v35 = vpop.f32.mrb[74].mxu0  ;;  %7661 = vmatmul.mubr.msk.f32.vlgmr.msra.gmra.mrb[76].mxu0 %vm317_vm2, %v8721_v34  ;;  %7718 = vmatmul.mubr.msk.f32.vlgmr.msra.gmra.mrb[68].mxu1 %vm317_vm2, %v8721_v34 }
 0xcfb   :  { %v5078_v39 = vadd.f32 %v5077_v28, %v5007_v35  ;;  %v7624_v37 = vpop.f32.mrb[75].mxu0  ;;  %8575 = vmatpush3.bf16.msra.mxu0 %v9250_v58  ;;  %7698 = vmatprep.mubr.msk.f32.mxu0 %vm8929_vm0, %v8930_v1 }
 0xcfc   :  { %8576 = vmatprep.subr.bf16.mxu0 %v8928_v0  ;;  %8611 = vmatpush3.bf16.msra.mxu1 %v9247_v54 }
 0xcfd   :  { %v5081_v38 = vadd.f32 %v9750_v45, %v5078_v39  ;;  %8612 = vmatprep.subr.bf16.mxu1 %v8928_v0  ;;  %7755 = vmatprep.mubr.msk.f32.mxu1 %vm8929_vm0, %v8930_v1 }
 0xcff   :  { %8722 = vtanh.f32 %v5081_v38  ;;  %8578 = vmatpush3.bf16.msra.mxu0 %v9261_v6 }
 0xd00   :  { %8579 = vmatprep.subr.bf16.mxu0 %v8928_v0  ;;  %8614 = vmatpush3.bf16.msra.mxu1 %v9254_v63 }
 0xd01   :  { %8615 = vmatprep.subr.bf16.mxu1 %v8928_v0 }
 0xd03   :  { %8581 = vmatpush3.bf16.msra.mxu0 %v9271_v14 }
 0xd04   :  { %8582 = vmatprep.subr.bf16.mxu0 %v8928_v0  ;;  %8617 = vmatpush3.bf16.msra.mxu1 %v9267_v10 }
 0xd05   :  { %8618 = vmatprep.subr.bf16.mxu1 %v8928_v0 }
 0xd07   :  { %8584 = vmatpush3.bf16.msra.mxu0 %v9279_v20 }
 0xd08   :  { %8620 = vmatpush3.bf16.msra.mxu1 %v9275_v18  ;;  %8597 = vmatprep.subr.bf16.mxu0 %v8928_v0 }
 0xd09   :  { %v8723_v54 = vpop.eup %8722 }
 0xd0a   :  { %7699 = vmatmul.mubr.msk.f32.vlgmr.msra.gmra.mrb[78].mxu0 %vm317_vm2, %v8723_v54 }
 0xd0b   :  { %8599 = vmatpush3.bf16.msra.mxu0 %v9250_v58  ;;  %7736 = vmatprep.mubr.msk.f32.mxu0 %vm8929_vm0, %v8930_v1 }
 0xd0c   :  { %8600 = vmatprep.subr.bf16.mxu0 %v8928_v0 }
 0xd0f   :  { %8602 = vmatpush3.bf16.msra.mxu0 %v9261_v6 }
 0xd10   :  { %8603 = vmatprep.subr.bf16.mxu0 %v8928_v0 }
 0xd13   :  { %8605 = vmatpush3.bf16.msra.mxu0 %v9271_v14 }
 0xd14   :  { %8606 = vmatprep.subr.bf16.mxu0 %v8928_v0 }
 0xd17   :  { %8608 = vmatpush3.bf16.msra.mxu0 %v9279_v20 }
 0xd18   :  { %8621 = vmatprep.subr.bf16.mxu0 %v8928_v0 }
 0xda3   :  { %v5227_v63 = vpop.f32.mrb[66].mxu1 }
 0xda4   :  { %v7681_v10 = vpop.f32.mrb[67].mxu1 }
 0xdcd   :  { %v5154_v58 = vpop.f32.mrb[76].mxu0  ;;  %v5371_v18 = vpop.f32.mrb[68].mxu1 }
 0xdce   :  { %v5228_v40 = vadd.f32 %v5227_v63, %v5154_v58  ;;  %v7662_v41 = vpop.f32.mrb[77].mxu0  ;;  %v7719_v43 = vpop.f32.mrb[69].mxu1 }
 0xdd0   :  { %v5231_v44 = vadd.f32 %v9674_v27, %v5228_v40  ;;  %v5527_v27 = vld [vmem:[#allocation12 + $0x8] sm:$0xff] }
 0xdd1   :  { %v8622_v50 = vpack.c.bf16 %v5527_v27, %v5526_v49 }
 0xdd2   :  { %8724 = vtanh.f32 %v5231_v44 }
 0xddc   :  { %v8725_v6 = vpop.eup %8724 }
 0xddd   :  { %5617 = vst.msk [vmem:[#allocation15 + $0x8] sm:$0xff] %vm317_vm2, %v8725_v6  ;;  %v5301_v14 = vpop.f32.mrb[78].mxu0  ;;  %7756 = vmatmul.mubr.msk.f32.vlgmr.msra.gmra.mrb[70].mxu1 %vm317_vm2, %v8725_v6 }
 0xdde   :  { %v5372_v46 = vadd.f32 %v5371_v18, %v5301_v14  ;;  %v7700_v20 = vpop.f32.mrb[79].mxu0 }
 0xde0   :  { %v5375_v47 = vadd.f32 %v9750_v45, %v5372_v46 }
 0xde2   :  { %8726 = vtanh.f32 %v5375_v47 }
 0xdec   :  { %v8727_v48 = vpop.eup %8726 }
 0xded   :  { %7737 = vmatmul.mubr.msk.f32.vlgmr.msra.gmra.mrb[80].mxu0 %vm317_vm2, %v8727_v48 }
 0xdee   :  { %7774 = vmatprep.mubr.msk.f32.mxu0 %vm8929_vm0, %v8930_v1  ;;  %8623 = vmatpush3.bf16.msra.mxu0 %v8622_v50  ;;  %v5533_v1 = vld [vmem:[#allocation12 + $0x38] sm:$0xff] }
 0xdef   :  { %8624 = vmatprep.subr.bf16.mxu0 %v8928_v0  ;;  %v8631_v62 = vpack.c.bf16 %v5533_v1, %v5532_v60 }
 0xdf2   :  { %8626 = vmatpush3.bf16.msra.mxu0 %v8625_v53 }
 0xdf3   :  { %8627 = vmatprep.subr.bf16.mxu0 %v8928_v0 }
 0xdf6   :  { %8629 = vmatpush3.bf16.msra.mxu0 %v8628_v59 }
 0xdf7   :  { %8630 = vmatprep.subr.bf16.mxu0 %v8928_v0 }
 0xdfa   :  { %8632 = vmatpush3.bf16.msra.mxu0 %v8631_v62 }
 0xeb0   :  { %v5520_v8 = vpop.f32.mrb[70].mxu1 }
 0xeb1   :  { %v7757_v3 = vpop.f32.mrb[71].mxu1 }
 0xec0   :  { %v5447_v4 = vpop.f32.mrb[80].mxu0 }
 0xec1   :  { %v5521_v12 = vadd.f32 %v5520_v8, %v5447_v4  ;;  %v7738_v16 = vpop.f32.mrb[81].mxu0 }
 0xec3   :  { %v5524_v19 = vadd.f32 %v9750_v45, %v5521_v12 }
 0xec5   :  { %8728 = vtanh.f32 %v5524_v19 }
 0xecf   :  { %v8729_v7 = vpop.eup %8728 }
 0xed0   :  { %5619 = vst.msk [vmem:[#allocation15 + $0x10] sm:$0xff] %vm317_vm2, %v8729_v7  ;;  %7775 = vmatmul.mubr.msk.f32.vlgmr.msra.gmra.mrb[82].mxu0 %vm317_vm2, %v8729_v7 }
 0xed1   :  { %8875 = shalt.err (!%p8872_p10)
}
 0xed2   :  { %s8876_s28 = scalar_lea.hbm %s10048_s9, 384 }
 0xed3   :  { %p8877_p11 = scmp.ne.s32.totalorder %s10048_s9, %s8876_s28  ;;  %p8880_p12 = scmp.lt.u32.totalorder %s8876_s28, %s10048_s9 }
 0xed5   :  { %p8882_p13 = pnand %p8880_p12, %p8877_p11 }
 0xed7   :  { %8885 = shalt.err (!%p8882_p13)
}
 0xed8   :  { %5641 = dma.vmem_to_hbm [thread:$0]  %s5636_s12, 384, %s10048_s9, [#allocation16], %s8922_s21, %s8922_s21, %s8923_s22  }
 0xed9   :  { %v5743_v0 = vld [vmem:[%s10046_s7] ss:$0 sm:$0xff]  ;;  %s8932_s4 = smov [#allocation14]  }
 0xeda   :  { %s5626_s15 = sshll.u32 %s8932_s4, 4  ;;  %s5627_s15 = int_to_ptr.vmem [resolvable:$true] %s5626_s15 }
 0xedb   :  { %s8886_s6 = scalar_lea.vmem %s5627_s15, 128  ;;  %p8891_p1 = scmp.lt.s32.totalorder %s5627_s15, %s5627_s15 }
 0xedc   :  { %p8887_p0 = scmp.ne.s32.totalorder %s5627_s15, %s8886_s6  ;;  %p8892_p2 = scmp.lt.s32.totalorder %s8886_s6, %s8886_s6 }
 0xede   :  { %p8893_p3 = por %p8892_p2, %p8891_p1 }
 0xee0   :  { %p8894_p4 = pnand %p8893_p3, %p8887_p0 }
 0xfa3   :  { %v5610_v45 = vpop.f32.mrb[82].mxu0 }
 0xfa4   :  { %v5611_v9 = vadd.f32 %v5743_v0, %v5610_v45  ;;  %v7776_v11 = vpop.f32.mrb[83].mxu0 }
 0xfa6   :  { %5614 = vst [vmem:[#allocation14] sm:$0xff] %v5611_v9 }
 0xfa7   :  { %8897 = shalt.err (!%p8894_p4)
}
 0xfa8   :  { %s8898_s21 = scalar_lea.hbm %s10047_s8, 128 }
 0xfa9   :  { %p8899_p5 = scmp.ne.s32.totalorder %s10047_s8, %s8898_s21  ;;  %p8902_p6 = scmp.lt.u32.totalorder %s8898_s21, %s10047_s8 }
 0xfab   :  { %p8904_p7 = pnand %p8902_p6, %p8899_p5 }
 0xfad   :  { %8907 = shalt.err (!%p8904_p7)
}
 0xfae   :  { %5629 = dma.vmem_to_hbm [thread:$0]  %s5627_s15, 128, %s10047_s8, [#allocation5]  }
 0xfaf   :  { %8916 = dma.done.wait [#allocation5], 128  }
 0xfb0   :  { %8917 = vsyncadd [#allocation5], 4294967168 }
 0xfb1   :  { %8918 = dma.done.wait [#allocation16], 384  }
 0xfb2   :  { %8919 = vsyncadd [#allocation16], 4294966912 }
 0xfb3   :  { %5648 = vsyncpa [#allocation4], 1 }
 0xfb4   :  { %5649 = vsyncpa [#allocation7], 1 }
 0xfb5   :  { %5650 = vsyncpa [#allocation10], 1 }
 0xfb6   :  { %5651 = vsyncpa [#allocation13], 1 }
 0xfb7   :  { %5652 = vsyncpa [#allocation5], 1 }
 0xfb8   :  { %5653 = vsyncpa [#allocation16], 1 }

</bundles_post_ra>
